<compile_context>
chip_gen: v6e
topology: v6e:2x2x1
jax: 0.10.0
libtpu: 0.0.40
codegen_flags: <defaults>
</compile_context>

<pallas_src>
import numpy as np
import jax
import jax.numpy as jnp
from jax.experimental import pallas as pl
from jax.experimental.pallas import tpu as pltpu


def _round_up(x, m):
    return (x + m - 1) // m * m


def _leaky_relu(x, slope=0.2):
    return jnp.where(x > 0, x, slope * x)


def generator_kernel(z_ref,
                     w1_ref, b1_ref,
                     w2_ref, b2_ref,
                     w3_ref, b3_ref,
                     w4_ref, b4_ref,
                     w5_ref, b5_ref,
                     out_ref,
                     h_ref):
    """Grid = (batch tiles, output-N tiles).

    At j == 0 compute the 4 hidden layers for this batch tile into the f32
    VMEM scratch `h_ref`; every j then runs only the (1024, TN) slice of the
    final Linear + Tanh. Weights 1-4 are VMEM-resident (constant block index),
    W5/b5 stream one N tile per step.
    """
    j = pl.program_id(1)

    @pl.when(j == 0)
    def _compute_hidden():
        h = z_ref[...]
        for w_ref, b_ref in ((w1_ref, b1_ref), (w2_ref, b2_ref),
                             (w3_ref, b3_ref), (w4_ref, b4_ref)):
            y = jnp.dot(h.astype(w_ref.dtype), w_ref[...],
                        preferred_element_type=jnp.float32) + b_ref[...]
            h = _leaky_relu(y)
        h_ref[...] = h

    y5 = jnp.dot(h_ref[...].astype(w5_ref.dtype), w5_ref[...],
                 preferred_element_type=jnp.float32) + b5_ref[...]
    out_ref[...] = jnp.tanh(y5).astype(out_ref.dtype)


def init_generator_params(key, latent_dim, input_shape):
    """torch.nn.Linear default init: U(-1/sqrt(fan_in), 1/sqrt(fan_in)).
    Weights stored as (in, out) — transpose of torch's (out, in)."""
    out_dim = int(np.prod(input_shape))
    dims = [latent_dim, 128, 256, 512, 1024, out_dim]
    params = []
    for i in range(len(dims) - 1):
        fan_in, fan_out = dims[i], dims[i + 1]
        key, kw, kb = jax.random.split(key, 3)
        bound = 1.0 / np.sqrt(fan_in)
        w = jax.random.uniform(kw, (fan_in, fan_out), jnp.float32, -bound, bound)
        b = jax.random.uniform(kb, (1, fan_out), jnp.float32, -bound, bound)
        params.append((w, b))
    return params


def generator_forward(z, params, input_shape, *,
                      param_dtype=jnp.float32, tb=256, tn=512):
    """z: (B, latent_dim) -> img: (B, *input_shape) float32."""
    B, latent_dim = z.shape
    out_dim = int(np.prod(input_shape))

    # ---- padded / tiled geometry -------------------------------------------
    k_pad = _round_up(latent_dim, 128)                 # lane-dense first matmul
    if out_dim <= tn:
        tn = _round_up(out_dim, 128)                   # single lane-dense N tile
    out_pad = _round_up(out_dim, tn)

    b_pad8 = _round_up(B, 8)
    tb = min(tb, b_pad8)                               # tb is a multiple of 8
    b_pad = _round_up(B, tb)

    grid = (b_pad // tb, out_pad // tn)

    # ---- pad inputs / params -----------------------------------------------
    z_p = jnp.zeros((b_pad, k_pad), jnp.float32)
    z_p = z_p.at[:B, :latent_dim].set(z.astype(jnp.float32))

    (w1, b1), (w2, b2), (w3, b3), (w4, b4), (w5, b5) = params

    def pad_w(w, rows, cols):
        w = w.astype(param_dtype)
        if w.shape == (rows, cols):
            return w
        return jnp.zeros((rows, cols), param_dtype).at[:w.shape[0], :w.shape[1]].set(w)

    w1p = pad_w(w1, k_pad, 128)
    w2p = w2.astype(param_dtype)
    w3p = w3.astype(param_dtype)
    w4p = w4.astype(param_dtype)
    w5p = pad_w(w5, 1024, out_pad)

    b1p = b1.astype(jnp.float32)
    b2p = b2.astype(jnp.float32)
    b3p = b3.astype(jnp.float32)
    b4p = b4.astype(jnp.float32)
    b5p = jnp.zeros((1, out_pad), jnp.float32).at[:, :out_dim].set(b5.astype(jnp.float32))

    flat_args = (z_p, w1p, b1p, w2p, b2p, w3p, b3p, w4p, b4p, w5p, b5p)

    # ---- block specs ---------------------------------------------------------
    in_specs = [
        pl.BlockSpec((tb, k_pad), lambda i, j: (i, 0)),     # z tile
        pl.BlockSpec((k_pad, 128), lambda i, j: (0, 0)),    # W1 (resident)
        pl.BlockSpec((1, 128), lambda i, j: (0, 0)),
        pl.BlockSpec((128, 256), lambda i, j: (0, 0)),      # W2 (resident)
        pl.BlockSpec((1, 256), lambda i, j: (0, 0)),
        pl.BlockSpec((256, 512), lambda i, j: (0, 0)),      # W3 (resident)
        pl.BlockSpec((1, 512), lambda i, j: (0, 0)),
        pl.BlockSpec((512, 1024), lambda i, j: (0, 0)),     # W4 (resident)
        pl.BlockSpec((1, 1024), lambda i, j: (0, 0)),
        pl.BlockSpec((1024, tn), lambda i, j: (0, j)),      # W5 N-tiled
        pl.BlockSpec((1, tn), lambda i, j: (0, j)),         # b5 N-tiled
    ]
    out_specs = pl.BlockSpec((tb, tn), lambda i, j: (i, j))

    # ---- VMEM budget + cost estimate ----------------------------------------
    wsize = np.dtype(param_dtype).itemsize
    resident = 2 * (
        (k_pad * 128 + 128 * 256 + 256 * 512 + 512 * 1024) * wsize   # W1..W4
        + (128 + 256 + 512 + 1024) * 4                               # b1..b4
        + (1024 * tn) * wsize + tn * 4                               # W5/b5 tile
        + tb * k_pad * 4 + tb * tn * 4)                              # z / out tiles
    resident += tb * 1024 * 4                                        # hidden scratch
    vmem_limit = int(min(max(resident + (4 << 20), 32 << 20), 64 << 20))

    dims = [k_pad, 128, 256, 512, 1024, out_pad]
    flops = int(2 * b_pad * sum(dims[i] * dims[i + 1] for i in range(5)))
    bytes_accessed = int(z_p.size * 4 + b_pad * out_pad * 4
                         + sum(int(a.size) * a.dtype.itemsize for a in flat_args[1:]))
    cost = pl.CostEstimate(flops=flops,
                           transcendentals=int(b_pad * out_pad),
                           bytes_accessed=bytes_accessed)

    flat_out = pl.pallas_call(
        generator_kernel,
        out_shape=jax.ShapeDtypeStruct((b_pad, out_pad), jnp.float32),
        grid_spec=pltpu.PrefetchScalarGridSpec(
            num_scalar_prefetch=0,
            grid=grid,
            in_specs=in_specs,
            out_specs=out_specs,
            scratch_shapes=[pltpu.VMEM((tb, 1024), jnp.float32)],
        ),
        compiler_params=pltpu.CompilerParams(
            dimension_semantics=("parallel", "arbitrary"),
            vmem_limit_bytes=vmem_limit,
        ),
        cost_estimate=cost,
    )(*flat_args)

    return flat_out[:B, :out_dim].reshape(B, *input_shape)


def generator_reference(z, params, input_shape, *, param_dtype=jnp.float32):
    """Pure-JAX reference mirroring the kernel's dtype handling."""
    h = z.astype(jnp.float32)
    for i, (w, b) in enumerate(params):
        w = w.astype(param_dtype)
        y = jnp.dot(h.astype(param_dtype), w,
                    preferred_element_type=jnp.float32) + b.astype(jnp.float32)
        if i < len(params) - 1:
            h = jnp.where(y > 0, y, 0.2 * y)
        else:
            h = jnp.tanh(y)
    return h.reshape(z.shape[0], *input_shape)


if __name__ == "__main__":
    # Small, shape-consistent example: batch=2, latent_dim=32, img (1, 16, 16)
    batch = 2
    latent_dim = 32
    input_shape = (1, 16, 16)

    key = jax.random.PRNGKey(0)
    key, kz, kp = jax.random.split(key, 3)

    z = jax.random.normal(kz, (batch, latent_dim), dtype=jnp.float32)
    params = init_generator_params(kp, latent_dim, input_shape)

    # f32 weights: tight check against the pure-JAX reference.
    img = generator_forward(z, params, input_shape, param_dtype=jnp.float32)
    img = jax.block_until_ready(img)
    img_ref = generator_reference(z, params, input_shape, param_dtype=jnp.float32)
    assert img.shape == (batch,) + input_shape
    np.testing.assert_allclose(np.asarray(img), np.asarray(img_ref),
                               rtol=2e-5, atol=2e-5)

    # bf16 weights (MXU fast path / half the weight DMA): looser check against
    # a reference that applies the same casts.
    img_bf = generator_forward(z, params, input_shape, param_dtype=jnp.bfloat16)
    img_bf = jax.block_until_ready(img_bf)
    ref_bf = generator_reference(z, params, input_shape, param_dtype=jnp.bfloat16)
    np.testing.assert_allclose(np.asarray(img_bf), np.asarray(ref_bf),
                               rtol=2e-2, atol=2e-2)

    print("KERNEL_OK")
</pallas_src>

<mosaic_0001>
module attributes {stable_mosaic.version = 11 : i64} {
  func.func @generator_kernel(%arg0: i32, %arg1: i32, %arg2: memref<8x128xf32, #tpu.memory_space<vmem>>, %arg3: memref<128x128xf32, #tpu.memory_space<vmem>>, %arg4: memref<1x128xf32, #tpu.memory_space<vmem>>, %arg5: memref<128x256xf32, #tpu.memory_space<vmem>>, %arg6: memref<1x256xf32, #tpu.memory_space<vmem>>, %arg7: memref<256x512xf32, #tpu.memory_space<vmem>>, %arg8: memref<1x512xf32, #tpu.memory_space<vmem>>, %arg9: memref<512x1024xf32, #tpu.memory_space<vmem>>, %arg10: memref<1x1024xf32, #tpu.memory_space<vmem>>, %arg11: memref<1024x256xf32, #tpu.memory_space<vmem>>, %arg12: memref<1x256xf32, #tpu.memory_space<vmem>>, %arg13: memref<8x256xf32, #tpu.memory_space<vmem>>, %arg14: memref<8x1024xf32, #tpu.memory_space<vmem>>) attributes {dimension_semantics = [#tpu.dimension_semantics<parallel>, #tpu.dimension_semantics<arbitrary>], iteration_bounds = array<i64: 1, 1>, scalar_prefetch = 0 : i64, scratch_operands = 1 : i64, tpu.core_type = #tpu.core_type<tc>, window_params = [{transform_indices = @transform_0, window_bounds = array<i64: 8, 128>}, {pipeline_mode = #tpu.pipeline_mode<synchronous>, transform_indices = @transform_1, window_bounds = array<i64: 128, 128>}, {pipeline_mode = #tpu.pipeline_mode<synchronous>, transform_indices = @transform_2, window_bounds = array<i64: 1, 128>}, {pipeline_mode = #tpu.pipeline_mode<synchronous>, transform_indices = @transform_3, window_bounds = array<i64: 128, 256>}, {pipeline_mode = #tpu.pipeline_mode<synchronous>, transform_indices = @transform_4, window_bounds = array<i64: 1, 256>}, {pipeline_mode = #tpu.pipeline_mode<synchronous>, transform_indices = @transform_5, window_bounds = array<i64: 256, 512>}, {pipeline_mode = #tpu.pipeline_mode<synchronous>, transform_indices = @transform_6, window_bounds = array<i64: 1, 512>}, {pipeline_mode = #tpu.pipeline_mode<synchronous>, transform_indices = @transform_7, window_bounds = array<i64: 512, 1024>}, {pipeline_mode = #tpu.pipeline_mode<synchronous>, transform_indices = @transform_8, window_bounds = array<i64: 1, 1024>}, {transform_indices = @transform_9, window_bounds = array<i64: 1024, 256>}, {transform_indices = @transform_10, window_bounds = array<i64: 1, 256>}, {transform_indices = @transform_11, window_bounds = array<i64: 8, 256>}]} {
    %c0_i32 = arith.constant 0 : i32
    %0 = arith.cmpi eq, %arg1, %c0_i32 : i32
    %1 = arith.extui %0 : i1 to i32
    %c0_i32_0 = arith.constant 0 : i32
    %2 = arith.cmpi ne, %1, %c0_i32_0 : i32
    scf.if %2 {
      %c0_8 = arith.constant 0 : index
      %c0_9 = arith.constant 0 : index
      %11 = vector.load %arg2[%c0_8, %c0_9] : memref<8x128xf32, #tpu.memory_space<vmem>>, vector<8x128xf32>
      %c0_10 = arith.constant 0 : index
      %c0_11 = arith.constant 0 : index
      %12 = vector.load %arg3[%c0_10, %c0_11] : memref<128x128xf32, #tpu.memory_space<vmem>>, vector<128x128xf32>
      %cst_12 = arith.constant dense<0.000000e+00> : vector<8x128xf32>
      %13 = tpu.matmul %11, %12, %cst_12 {dimension_numbers = #tpu.dot_dimension_numbers<[1], [0], [0], [1], [0, 0, 1, 1], [], []>} : vector<8x128xf32>, vector<128x128xf32>, vector<8x128xf32> -> vector<8x128xf32>
      %c0_13 = arith.constant 0 : index
      %c0_14 = arith.constant 0 : index
      %14 = vector.load %arg4[%c0_13, %c0_14] : memref<1x128xf32, #tpu.memory_space<vmem>>, vector<1x128xf32>
      %15 = vector.broadcast %14 : vector<1x128xf32> to vector<8x128xf32>
      %16 = arith.addf %13, %15 : vector<8x128xf32>
      %cst_15 = arith.constant 0.000000e+00 : f32
      %17 = vector.broadcast %cst_15 : f32 to vector<8x128xf32>
      %18 = arith.cmpf ogt, %16, %17 : vector<8x128xf32>
      %cst_16 = arith.constant 2.000000e-01 : f32
      %19 = vector.broadcast %cst_16 : f32 to vector<8x128xf32>
      %20 = arith.mulf %19, %16 : vector<8x128xf32>
      %21 = arith.select %18, %16, %20 : vector<8x128xi1>, vector<8x128xf32>
      %c0_17 = arith.constant 0 : index
      %c0_18 = arith.constant 0 : index
      %22 = vector.load %arg5[%c0_17, %c0_18] : memref<128x256xf32, #tpu.memory_space<vmem>>, vector<128x256xf32>
      %cst_19 = arith.constant dense<0.000000e+00> : vector<8x256xf32>
      %23 = tpu.matmul %21, %22, %cst_19 {dimension_numbers = #tpu.dot_dimension_numbers<[1], [0], [0], [1], [0, 0, 1, 1], [], []>} : vector<8x128xf32>, vector<128x256xf32>, vector<8x256xf32> -> vector<8x256xf32>
      %c0_20 = arith.constant 0 : index
      %c0_21 = arith.constant 0 : index
      %24 = vector.load %arg6[%c0_20, %c0_21] : memref<1x256xf32, #tpu.memory_space<vmem>>, vector<1x256xf32>
      %25 = vector.broadcast %24 : vector<1x256xf32> to vector<8x256xf32>
      %26 = arith.addf %23, %25 : vector<8x256xf32>
      %cst_22 = arith.constant 0.000000e+00 : f32
      %27 = vector.broadcast %cst_22 : f32 to vector<8x256xf32>
      %28 = arith.cmpf ogt, %26, %27 : vector<8x256xf32>
      %cst_23 = arith.constant 2.000000e-01 : f32
      %29 = vector.broadcast %cst_23 : f32 to vector<8x256xf32>
      %30 = arith.mulf %29, %26 : vector<8x256xf32>
      %31 = arith.select %28, %26, %30 : vector<8x256xi1>, vector<8x256xf32>
      %c0_24 = arith.constant 0 : index
      %c0_25 = arith.constant 0 : index
      %32 = vector.load %arg7[%c0_24, %c0_25] : memref<256x512xf32, #tpu.memory_space<vmem>>, vector<256x512xf32>
      %cst_26 = arith.constant dense<0.000000e+00> : vector<8x512xf32>
      %33 = tpu.matmul %31, %32, %cst_26 {dimension_numbers = #tpu.dot_dimension_numbers<[1], [0], [0], [1], [0, 0, 1, 1], [], []>} : vector<8x256xf32>, vector<256x512xf32>, vector<8x512xf32> -> vector<8x512xf32>
      %c0_27 = arith.constant 0 : index
      %c0_28 = arith.constant 0 : index
      %34 = vector.load %arg8[%c0_27, %c0_28] : memref<1x512xf32, #tpu.memory_space<vmem>>, vector<1x512xf32>
      %35 = vector.broadcast %34 : vector<1x512xf32> to vector<8x512xf32>
      %36 = arith.addf %33, %35 : vector<8x512xf32>
      %cst_29 = arith.constant 0.000000e+00 : f32
      %37 = vector.broadcast %cst_29 : f32 to vector<8x512xf32>
      %38 = arith.cmpf ogt, %36, %37 : vector<8x512xf32>
      %cst_30 = arith.constant 2.000000e-01 : f32
      %39 = vector.broadcast %cst_30 : f32 to vector<8x512xf32>
      %40 = arith.mulf %39, %36 : vector<8x512xf32>
      %41 = arith.select %38, %36, %40 : vector<8x512xi1>, vector<8x512xf32>
      %c0_31 = arith.constant 0 : index
      %c0_32 = arith.constant 0 : index
      %42 = vector.load %arg9[%c0_31, %c0_32] : memref<512x1024xf32, #tpu.memory_space<vmem>>, vector<512x1024xf32>
      %cst_33 = arith.constant dense<0.000000e+00> : vector<8x1024xf32>
      %43 = tpu.matmul %41, %42, %cst_33 {dimension_numbers = #tpu.dot_dimension_numbers<[1], [0], [0], [1], [0, 0, 1, 1], [], []>} : vector<8x512xf32>, vector<512x1024xf32>, vector<8x1024xf32> -> vector<8x1024xf32>
      %c0_34 = arith.constant 0 : index
      %c0_35 = arith.constant 0 : index
      %44 = vector.load %arg10[%c0_34, %c0_35] : memref<1x1024xf32, #tpu.memory_space<vmem>>, vector<1x1024xf32>
      %45 = vector.broadcast %44 : vector<1x1024xf32> to vector<8x1024xf32>
      %46 = arith.addf %43, %45 : vector<8x1024xf32>
      %cst_36 = arith.constant 0.000000e+00 : f32
      %47 = vector.broadcast %cst_36 : f32 to vector<8x1024xf32>
      %48 = arith.cmpf ogt, %46, %47 : vector<8x1024xf32>
      %cst_37 = arith.constant 2.000000e-01 : f32
      %49 = vector.broadcast %cst_37 : f32 to vector<8x1024xf32>
      %50 = arith.mulf %49, %46 : vector<8x1024xf32>
      %51 = arith.select %48, %46, %50 : vector<8x1024xi1>, vector<8x1024xf32>
      %c0_38 = arith.constant 0 : index
      %c0_39 = arith.constant 0 : index
      %52 = vector.load %arg14[%c0_38, %c0_39] : memref<8x1024xf32, #tpu.memory_space<vmem>>, vector<8x1024xf32>
      tpu.vector_store %arg14[%c0_38, %c0_39], %51 {strides = array<i32>} : memref<8x1024xf32, #tpu.memory_space<vmem>>, vector<8x1024xf32>,
    } else {
    }
    %c0 = arith.constant 0 : index
    %c0_1 = arith.constant 0 : index
    %3 = vector.load %arg14[%c0, %c0_1] : memref<8x1024xf32, #tpu.memory_space<vmem>>, vector<8x1024xf32>
    %c0_2 = arith.constant 0 : index
    %c0_3 = arith.constant 0 : index
    %4 = vector.load %arg11[%c0_2, %c0_3] : memref<1024x256xf32, #tpu.memory_space<vmem>>, vector<1024x256xf32>
    %cst = arith.constant dense<0.000000e+00> : vector<8x256xf32>
    %5 = tpu.matmul %3, %4, %cst {dimension_numbers = #tpu.dot_dimension_numbers<[1], [0], [0], [1], [0, 0, 1, 1], [], []>} : vector<8x1024xf32>, vector<1024x256xf32>, vector<8x256xf32> -> vector<8x256xf32>
    %c0_4 = arith.constant 0 : index
    %c0_5 = arith.constant 0 : index
    %6 = vector.load %arg12[%c0_4, %c0_5] : memref<1x256xf32, #tpu.memory_space<vmem>>, vector<1x256xf32>
    %7 = vector.broadcast %6 : vector<1x256xf32> to vector<8x256xf32>
    %8 = arith.addf %5, %7 : vector<8x256xf32>
    %9 = math.tanh %8 : vector<8x256xf32>
    %c0_6 = arith.constant 0 : index
    %c0_7 = arith.constant 0 : index
    %10 = vector.load %arg13[%c0_6, %c0_7] : memref<8x256xf32, #tpu.memory_space<vmem>>, vector<8x256xf32>
    tpu.vector_store %arg13[%c0_6, %c0_7], %9 {strides = array<i32>} : memref<8x256xf32, #tpu.memory_space<vmem>>, vector<8x256xf32>,
    return
  }
  func.func @transform_0(%arg0: i32, %arg1: i32) -> (i32, i32) {
    %c0_i32 = arith.constant 0 : i32
    %c0_i32_0 = arith.constant 0 : i32
    return %arg0, %c0_i32 : i32, i32
  }
  func.func @transform_1(%arg0: i32, %arg1: i32) -> (i32, i32) {
    %c0_i32 = arith.constant 0 : i32
    %c0_i32_0 = arith.constant 0 : i32
    %c0_i32_1 = arith.constant 0 : i32
    return %c0_i32, %c0_i32_0 : i32, i32
  }
  func.func @transform_2(%arg0: i32, %arg1: i32) -> (i32, i32) {
    %c0_i32 = arith.constant 0 : i32
    %c0_i32_0 = arith.constant 0 : i32
    %c0_i32_1 = arith.constant 0 : i32
    return %c0_i32, %c0_i32_0 : i32, i32
  }
  func.func @transform_3(%arg0: i32, %arg1: i32) -> (i32, i32) {
    %c0_i32 = arith.constant 0 : i32
    %c0_i32_0 = arith.constant 0 : i32
    %c0_i32_1 = arith.constant 0 : i32
    return %c0_i32, %c0_i32_0 : i32, i32
  }
  func.func @transform_4(%arg0: i32, %arg1: i32) -> (i32, i32) {
    %c0_i32 = arith.constant 0 : i32
    %c0_i32_0 = arith.constant 0 : i32
    %c0_i32_1 = arith.constant 0 : i32
    return %c0_i32, %c0_i32_0 : i32, i32
  }
  func.func @transform_5(%arg0: i32, %arg1: i32) -> (i32, i32) {
    %c0_i32 = arith.constant 0 : i32
    %c0_i32_0 = arith.constant 0 : i32
    %c0_i32_1 = arith.constant 0 : i32
    return %c0_i32, %c0_i32_0 : i32, i32
  }
  func.func @transform_6(%arg0: i32, %arg1: i32) -> (i32, i32) {
    %c0_i32 = arith.constant 0 : i32
    %c0_i32_0 = arith.constant 0 : i32
    %c0_i32_1 = arith.constant 0 : i32
    return %c0_i32, %c0_i32_0 : i32, i32
  }
  func.func @transform_7(%arg0: i32, %arg1: i32) -> (i32, i32) {
    %c0_i32 = arith.constant 0 : i32
    %c0_i32_0 = arith.constant 0 : i32
    %c0_i32_1 = arith.constant 0 : i32
    return %c0_i32, %c0_i32_0 : i32, i32
  }
  func.func @transform_8(%arg0: i32, %arg1: i32) -> (i32, i32) {
    %c0_i32 = arith.constant 0 : i32
    %c0_i32_0 = arith.constant 0 : i32
    %c0_i32_1 = arith.constant 0 : i32
    return %c0_i32, %c0_i32_0 : i32, i32
  }
  func.func @transform_9(%arg0: i32, %arg1: i32) -> (i32, i32) {
    %c0_i32 = arith.constant 0 : i32
    %c0_i32_0 = arith.constant 0 : i32
    return %c0_i32, %arg1 : i32, i32
  }
  func.func @transform_10(%arg0: i32, %arg1: i32) -> (i32, i32) {
    %c0_i32 = arith.constant 0 : i32
    %c0_i32_0 = arith.constant 0 : i32
    return %c0_i32, %arg1 : i32, i32
  }
  func.func @transform_11(%arg0: i32, %arg1: i32) -> (i32, i32) {
    %c0_i32 = arith.constant 0 : i32
    return %arg0, %arg1 : i32, i32
  }
}

</mosaic_0001>

<bundles_post_ra>
// kernel: tpu_custom_call.1
= control target key start
LH: loop header
LB: loop body
LE: loop exit
PB: predicated region body
PF: predicated region fallthrough
CT: control target
= control target key end

     0   :  { %16 = vsyncpa [#allocation4], 0  ;;  %s2983_s0 = inlined_call_operand.hbm [shape: f32[8,128], index: 0, kind: input, shape index: {}]   ;;  %s2984_s1 = inlined_call_operand.hbm [shape: f32[128,128], index: 1, kind: input, shape index: {}]   ;;  %s2985_s2 = inlined_call_operand.hbm [shape: f32[1,128], index: 2, kind: input, shape index: {}]   ;;  %s2986_s3 = inlined_call_operand.hbm [shape: f32[128,256], index: 3, kind: input, shape index: {}]   ;;  %s2987_s4 = inlined_call_operand.hbm [shape: f32[1,256], index: 4, kind: input, shape index: {}]   ;;  %s2988_s5 = inlined_call_operand.hbm [shape: f32[256,512], index: 5, kind: input, shape index: {}]   ;;  %s2989_s6 = inlined_call_operand.hbm [shape: f32[1,512], index: 6, kind: input, shape index: {}]   ;;  %s2990_s7 = inlined_call_operand.hbm [shape: f32[512,1024], index: 7, kind: input, shape index: {}]   ;;  %s2991_s8 = inlined_call_operand.hbm [shape: f32[1,1024], index: 8, kind: input, shape index: {}]   ;;  %s2992_s9 = inlined_call_operand.hbm [shape: f32[1024,256], index: 9, kind: input, shape index: {}]   ;;  %s2993_s10 = inlined_call_operand.hbm [shape: f32[1,256], index: 10, kind: input, shape index: {}]   ;;  %s2994_s11 = inlined_call_operand.hbm [shape: f32[8,256], index: 11, kind: output, shape index: {}]  }
   0x1   :  { %17 = vsyncpa [#allocation7], 0 }
   0x2   :  { %18 = vsyncpa [#allocation10], 0 }
   0x3   :  { %19 = vsyncpa [#allocation13], 0 }
   0x4   :  { %20 = vsyncpa [#allocation16], 0 }
   0x5   :  { %21 = vsyncpa [#allocation19], 0 }
   0x6   :  { %22 = vsyncpa [#allocation5], 0  ;;  %s2774_s17 = smov [#allocation6]  }
   0x7   :  { %s38_s18 = sshll.u32 %s2774_s17, 4  ;;  %s39_s18 = int_to_ptr.vmem [resolvable:$true] %s38_s18 }
   0x8   :  { %s2528_s19 = scalar_lea.vmem %s39_s18, 2048  ;;  %p2533_p1 = scmp.lt.s32.totalorder %s39_s18, %s39_s18 }
   0x9   :  { %p2529_p0 = scmp.ne.s32.totalorder %s39_s18, %s2528_s19  ;;  %p2534_p2 = scmp.lt.s32.totalorder %s2528_s19, %s2528_s19 }
   0xb   :  { %p2535_p3 = por %p2534_p2, %p2533_p1 }
   0xd   :  { %p2536_p4 = pnand %p2535_p3, %p2529_p0 }
   0xf   :  { %2539 = shalt.err (!%p2536_p4)
}
  0x10   :  { %s2775_s20 = smov 128   ;;  %s2776_s21 = smov 8  }
  0x11   :  { %44 = dma.hbm_to_vmem [thread:$0]  %s2984_s1, 2048, %s39_s18, [#allocation7], %s2775_s20, %s2775_s20, %s2776_s21  }
  0x12   :  { %s2777_s24 = smov [#allocation9]  }
  0x13   :  { %s60_s25 = sshll.u32 %s2777_s24, 4  ;;  %s61_s25 = int_to_ptr.vmem [resolvable:$true] %s60_s25 }
  0x14   :  { %s2548_s26 = scalar_lea.vmem %s61_s25, 4096  ;;  %p2553_p6 = scmp.lt.s32.totalorder %s61_s25, %s61_s25 }
  0x15   :  { %p2549_p5 = scmp.ne.s32.totalorder %s61_s25, %s2548_s26  ;;  %p2554_p7 = scmp.lt.s32.totalorder %s2548_s26, %s2548_s26 }
  0x17   :  { %p2555_p8 = por %p2554_p7, %p2553_p6 }
  0x19   :  { %p2556_p9 = pnand %p2555_p8, %p2549_p5 }
  0x1b   :  { %2559 = shalt.err (!%p2556_p9)
}
  0x1c   :  { %s2778_s27 = smov 256   ;;  %s2779_s28 = smov 16  }
  0x1d   :  { %66 = dma.hbm_to_vmem [thread:$0]  %s2986_s3, 4096, %s61_s25, [#allocation10], %s2778_s27, %s2778_s27, %s2779_s28  }
  0x1e   :  { %s2780_s1 = smov [#allocation12]  }
  0x1f   :  { %s82_s12 = sshll.u32 %s2780_s1, 4  ;;  %s83_s12 = int_to_ptr.vmem [resolvable:$true] %s82_s12 }
  0x20   :  { %s2568_s13 = scalar_lea.vmem %s83_s12, 16384  ;;  %p2573_p11 = scmp.lt.s32.totalorder %s83_s12, %s83_s12 }
  0x21   :  { %p2569_p10 = scmp.ne.s32.totalorder %s83_s12, %s2568_s13  ;;  %p2574_p12 = scmp.lt.s32.totalorder %s2568_s13, %s2568_s13 }
  0x23   :  { %p2575_p13 = por %p2574_p12, %p2573_p11 }
  0x25   :  { %p2576_p0 = pnand %p2575_p13, %p2569_p10 }
  0x27   :  { %2579 = shalt.err (!%p2576_p0)
}
  0x28   :  { %s2781_s14 = smov 512   ;;  %s2782_s15 = smov 32  }
  0x29   :  { %88 = dma.hbm_to_vmem [thread:$0]  %s2988_s5, 16384, %s83_s12, [#allocation13], %s2781_s14, %s2781_s14, %s2782_s15  }
  0x2a   :  { %s2783_s18 = smov [#allocation15]  }
  0x2b   :  { %s104_s19 = sshll.u32 %s2783_s18, 4  ;;  %s105_s19 = int_to_ptr.vmem [resolvable:$true] %s104_s19 }
  0x2c   :  { %s2588_s3 = scalar_lea.vmem %s105_s19, 65536  ;;  %p2593_p2 = scmp.lt.s32.totalorder %s105_s19, %s105_s19 }
  0x2d   :  { %p2589_p1 = scmp.ne.s32.totalorder %s105_s19, %s2588_s3  ;;  %p2594_p3 = scmp.lt.s32.totalorder %s2588_s3, %s2588_s3 }
  0x2f   :  { %p2595_p4 = por %p2594_p3, %p2593_p2 }
  0x31   :  { %p2596_p5 = pnand %p2595_p4, %p2589_p1 }
  0x33   :  { %2599 = shalt.err (!%p2596_p5)
}
  0x34   :  { %s2784_s20 = smov 1024   ;;  %s2785_s21 = smov 64  }
  0x35   :  { %110 = dma.hbm_to_vmem [thread:$0]  %s2990_s7, 65536, %s105_s19, [#allocation16], %s2784_s20, %s2784_s20, %s2785_s21  }
  0x36   :  { %s2786_s24 = smov [#allocation18]   ;;  %s2787_s26 = smov [#allocation3]  }
  0x37   :  { %s126_s25 = sshll.u32 %s2786_s24, 4  ;;  %s29_s5 = sshll.u32 %s2787_s26, 4  ;;  %s127_s25 = int_to_ptr.vmem [resolvable:$true] %s126_s25  ;;  %s30_s5 = int_to_ptr.vmem [resolvable:$true] %s29_s5 }
  0x38   :  { %s2608_s29 = scalar_lea.vmem %s127_s25, 32768  ;;  %p2613_p7 = scmp.lt.s32.totalorder %s127_s25, %s127_s25 }
  0x39   :  { %p2609_p6 = scmp.ne.s32.totalorder %s127_s25, %s2608_s29  ;;  %p2614_p8 = scmp.lt.s32.totalorder %s2608_s29, %s2608_s29 }
  0x3b   :  { %p2615_p9 = por %p2614_p8, %p2613_p7 }
  0x3d   :  { %p2616_p10 = pnand %p2615_p9, %p2609_p6 }
  0x3f   :  { %2619 = shalt.err (!%p2616_p10)
}
  0x40   :  { %132 = dma.hbm_to_vmem [thread:$0]  %s2992_s9, 32768, %s127_s25, [#allocation19], %s2778_s27, %s2778_s27, %s2779_s28  }
  0x41   :  { %s2628_s7 = scalar_lea.vmem %s30_s5, 128  ;;  %p2633_p12 = scmp.lt.s32.totalorder %s30_s5, %s30_s5 }
  0x42   :  { %p2629_p11 = scmp.ne.s32.totalorder %s30_s5, %s2628_s7  ;;  %p2634_p13 = scmp.lt.s32.totalorder %s2628_s7, %s2628_s7 }
  0x44   :  { %p2635_p0 = por %p2634_p13, %p2633_p12 }
  0x46   :  { %p2636_p1 = pnand %p2635_p0, %p2629_p11 }
  0x48   :  { %2639 = shalt.err (!%p2636_p1)
}
  0x49   :  { %32 = dma.hbm_to_vmem [thread:$0]  %s2983_s0, 128, %s30_s5, [#allocation4]  }
  0x4a   :  { %s2788_s14 = smov [#allocation8]   ;;  %s2789_s16 = smov [#allocation11]  }
  0x4b   :  { %s51_s15 = sshll.u32 %s2788_s14, 4  ;;  %s73_s17 = sshll.u32 %s2789_s16, 4  ;;  %s52_s15 = int_to_ptr.vmem [resolvable:$true] %s51_s15  ;;  %s74_s17 = int_to_ptr.vmem [resolvable:$true] %s73_s17 }
  0x4c   :  { %s2648_s18 = scalar_lea.vmem %s52_s15, 16  ;;  %s2652_s9 = scalar_lea.vmem %s52_s15, 32 }
  0x4d   :  { %p2649_p2 = scmp.ne.s32.totalorder %s52_s15, %s2648_s18  ;;  %p2653_p3 = scmp.lt.s32.totalorder %s52_s15, %s52_s15 }
  0x4e   :  { %p2654_p4 = scmp.lt.s32.totalorder %s2652_s9, %s2648_s18 }
  0x50   :  { %p2655_p5 = por %p2654_p4, %p2653_p3 }
  0x52   :  { %p2656_p6 = pnand %p2655_p5, %p2649_p2 }
  0x54   :  { %2659 = shalt.err (!%p2656_p6)
}
  0x55   :  { %54 = dma.hbm_to_vmem [thread:$0]  %s2985_s2, 16, %s52_s15, [#allocation7]  }
  0x56   :  { %s2668_s19 = scalar_lea.vmem %s74_s17, 32  ;;  %p2673_p8 = scmp.lt.s32.totalorder %s74_s17, %s74_s17 }
  0x57   :  { %p2669_p7 = scmp.ne.s32.totalorder %s74_s17, %s2668_s19  ;;  %p2674_p9 = scmp.lt.s32.totalorder %s2668_s19, %s2668_s19 }
  0x59   :  { %p2675_p10 = por %p2674_p9, %p2673_p8 }
  0x5b   :  { %p2676_p11 = pnand %p2675_p10, %p2669_p7 }
  0x5d   :  { %2679 = shalt.err (!%p2676_p11)
}
  0x5e   :  { %76 = dma.hbm_to_vmem [thread:$0]  %s2987_s4, 32, %s74_s17, [#allocation10]  }
  0x5f   :  { %s2790_s20 = smov [#allocation14]   ;;  %s2791_s22 = smov [#allocation17]  }
  0x60   :  { %s95_s21 = sshll.u32 %s2790_s20, 4  ;;  %s117_s23 = sshll.u32 %s2791_s22, 4  ;;  %s96_s21 = int_to_ptr.vmem [resolvable:$true] %s95_s21  ;;  %s118_s23 = int_to_ptr.vmem [resolvable:$true] %s117_s23 }
  0x61   :  { %s2688_s24 = scalar_lea.vmem %s96_s21, 64  ;;  %p2693_p13 = scmp.lt.s32.totalorder %s96_s21, %s96_s21 }
  0x62   :  { %p2689_p12 = scmp.ne.s32.totalorder %s96_s21, %s2688_s24  ;;  %p2694_p0 = scmp.lt.s32.totalorder %s2688_s24, %s2688_s24 }
  0x64   :  { %p2695_p1 = por %p2694_p0, %p2693_p13 }
  0x66   :  { %p2696_p2 = pnand %p2695_p1, %p2689_p12 }
  0x68   :  { %2699 = shalt.err (!%p2696_p2)
}
  0x69   :  { %98 = dma.hbm_to_vmem [thread:$0]  %s2989_s6, 64, %s96_s21, [#allocation13]  }
  0x6a   :  { %s2708_s26 = scalar_lea.vmem %s118_s23, 128  ;;  %p2713_p4 = scmp.lt.s32.totalorder %s118_s23, %s118_s23 }
  0x6b   :  { %p2709_p3 = scmp.ne.s32.totalorder %s118_s23, %s2708_s26  ;;  %p2714_p5 = scmp.lt.s32.totalorder %s2708_s26, %s2708_s26 }
  0x6d   :  { %p2715_p6 = por %p2714_p5, %p2713_p4 }
  0x6f   :  { %p2716_p7 = pnand %p2715_p6, %p2709_p3 }
  0x71   :  { %2719 = shalt.err (!%p2716_p7)
}
  0x72   :  { %120 = dma.hbm_to_vmem [thread:$0]  %s2991_s8, 128, %s118_s23, [#allocation16]  }
  0x73   :  { %s2792_s29 = smov [#allocation20]  }
  0x74   :  { %s139_s30 = sshll.u32 %s2792_s29, 4  ;;  %s140_s30 = int_to_ptr.vmem [resolvable:$true] %s139_s30 }
  0x75   :  { %s2728_s1 = scalar_lea.vmem %s140_s30, 32  ;;  %p2733_p9 = scmp.lt.s32.totalorder %s140_s30, %s140_s30 }
  0x76   :  { %p2729_p8 = scmp.ne.s32.totalorder %s140_s30, %s2728_s1  ;;  %p2734_p10 = scmp.lt.s32.totalorder %s2728_s1, %s2728_s1 }
  0x78   :  { %p2735_p11 = por %p2734_p10, %p2733_p9 }
  0x7a   :  { %p2736_p12 = pnand %p2735_p11, %p2729_p8 }
  0x7c   :  { %2739 = shalt.err (!%p2736_p12)
}
  0x7d   :  { %142 = dma.hbm_to_vmem [thread:$0]  %s2993_s10, 32, %s140_s30, [#allocation19]  }
  0x7e   :  { %2760 = dma.done.wait [#allocation4], 128  }
  0x7f   :  { %2761 = vsyncadd [#allocation4], 4294967168 }
  0x80   :  { %2762 = dma.done.wait [#allocation7], 2064  }
  0x81   :  { %2763 = vsyncadd [#allocation7], 4294965232 }
  0x82   :  { %2764 = dma.done.wait [#allocation10], 4128  }
  0x83   :  { %2765 = vsyncadd [#allocation10], 4294963168 }
  0x84   :  { %2766 = dma.done.wait [#allocation13], 16448  }
  0x85   :  { %2767 = vsyncadd [#allocation13], 4294950848 }
  0x86   :  { %2768 = dma.done.wait [#allocation16], 65664  }
  0x87   :  { %2769 = vsyncadd [#allocation16], 4294901632 }
  0x88   :  { %2770 = dma.done.wait [#allocation19], 32800  }
  0x89   :  { %2771 = vsyncadd [#allocation19], 4294934496  ;;  %v2793_v0 = vmov 0.0   ;;  %vm2794_vm0 = vmmov 0   ;;  %v196_v1 = vld [vmem:[#allocation6 + $0x78] sm:$0xff]  ;;  %v195_v2 = vld [vmem:[#allocation6 + $0x70] sm:$0xff] }
  0x8a   :  { %2458 = vmatprep.subr.mxu0 %v2793_v0  ;;  %2490 = vmatprep.mubr.msk.f32.mxu0 %vm2794_vm0, %v2793_v0  ;;  %v194_v3 = vld [vmem:[#allocation6 + $0x68] sm:$0xff]  ;;  %v193_v4 = vld [vmem:[#allocation6 + $0x60] sm:$0xff]  ;;  %v192_v5 = vld [vmem:[#allocation6 + $0x58] sm:$0xff]  ;;  %s2795_s8 = smov [#allocation21]  }
  0x8b   :  { %385 = vmatprep.mubr.f32.mxu1 %v2793_v0  ;;  %2459 = vmatpush3.msra.mxu0 %v196_v1  ;;  %v308_v6 = vld [vmem:[#allocation9 + $0xf8] sm:$0xff]  ;;  %v307_v7 = vld [vmem:[#allocation9 + $0xf0] sm:$0xff]  ;;  %v306_v8 = vld [vmem:[#allocation9 + $0xe8] sm:$0xff]  ;;  %s2426_s10 = sshll.u32 %s2795_s8, 4  ;;  %s2427_s10 = int_to_ptr.vmem [resolvable:$true] %s2426_s10 }
  0x8c   :  { %2460 = vmatprep.subr.mxu0 %v2793_v0  ;;  %321 = vmatprep.subr.mxu1 %v308_v6  ;;  %v305_v9 = vld [vmem:[#allocation9 + $0xe0] sm:$0xff]  ;;  %v304_v10 = vld [vmem:[#allocation9 + $0xd8] sm:$0xff]  ;;  %v191_v11 = vld [vmem:[#allocation6 + $0x50] sm:$0xff]  ;;  %s2740_s12 = scalar_lea.vmem %s2427_s10, 256  ;;  %p2745_p0 = scmp.lt.s32.totalorder %s2427_s10, %s2427_s10 }
  0x8d   :  { %2461 = vmatpush3.msra.mxu0 %v195_v2  ;;  %322 = vmatpush1.msra.mxu1 %v307_v7  ;;  %v303_v12 = vld [vmem:[#allocation9 + $0xd0] sm:$0xff]  ;;  %v302_v13 = vld [vmem:[#allocation9 + $0xc8] sm:$0xff]  ;;  %v301_v15 = vld [vmem:[#allocation9 + $0xc0] sm:$0xff]  ;;  %p2741_p13 = scmp.ne.s32.totalorder %s2427_s10, %s2740_s12  ;;  %p2746_p1 = scmp.lt.s32.totalorder %s2740_s12, %s2740_s12 }
  0x8e   :  { %2462 = vmatprep.subr.mxu0 %v2793_v0  ;;  %323 = vmatprep.subr.mxu1 %v306_v8  ;;  %v190_v14 = vld [vmem:[#allocation6 + $0x48] sm:$0xff]  ;;  %v300_v16 = vld [vmem:[#allocation9 + $0xb8] sm:$0xff]  ;;  %v299_v18 = vld [vmem:[#allocation9 + $0xb0] sm:$0xff] }
  0x8f   :  { %2463 = vmatpush3.msra.mxu0 %v194_v3  ;;  %324 = vmatpush1.msra.mxu1 %v305_v9  ;;  %v189_v17 = vld [vmem:[#allocation6 + $0x40] sm:$0xff]  ;;  %v298_v19 = vld [vmem:[#allocation9 + $0xa8] sm:$0xff]  ;;  %v188_v20 = vld [vmem:[#allocation6 + $0x38] sm:$0xff]  ;;  %p2747_p2 = por %p2746_p1, %p2745_p0 }
  0x90   :  { %2464 = vmatprep.subr.mxu0 %v2793_v0  ;;  %325 = vmatprep.subr.mxu1 %v304_v10  ;;  %v297_v21 = vld [vmem:[#allocation9 + $0xa0] sm:$0xff]  ;;  %v296_v22 = vld [vmem:[#allocation9 + $0x98] sm:$0xff]  ;;  %v187_v23 = vld [vmem:[#allocation6 + $0x30] sm:$0xff] }
  0x91   :  { %2465 = vmatpush3.msra.mxu0 %v193_v4  ;;  %326 = vmatpush1.msra.mxu1 %v303_v12  ;;  %v295_v24 = vld [vmem:[#allocation9 + $0x90] sm:$0xff]  ;;  %v294_v25 = vld [vmem:[#allocation9 + $0x88] sm:$0xff]  ;;  %v293_v27 = vld [vmem:[#allocation9 + $0x80] sm:$0xff]  ;;  %p2748_p3 = pnand %p2747_p2, %p2741_p13 }
  0x92   :  { %2466 = vmatprep.subr.mxu0 %v2793_v0  ;;  %327 = vmatprep.subr.mxu1 %v302_v13  ;;  %v186_v26 = vld [vmem:[#allocation6 + $0x28] sm:$0xff]  ;;  %v292_v28 = vld [vmem:[#allocation9 + $0x78] sm:$0xff]  ;;  %v291_v30 = vld [vmem:[#allocation9 + $0x70] sm:$0xff] }
  0x93   :  { %2467 = vmatpush3.msra.mxu0 %v192_v5  ;;  %328 = vmatpush1.msra.mxu1 %v301_v15  ;;  %v185_v29 = vld [vmem:[#allocation6 + $0x20] sm:$0xff]  ;;  %v290_v31 = vld [vmem:[#allocation9 + $0x68] sm:$0xff]  ;;  %v184_v32 = vld [vmem:[#allocation6 + $0x18] sm:$0xff] }
  0x94   :  { %2468 = vmatprep.subr.mxu0 %v2793_v0  ;;  %329 = vmatprep.subr.mxu1 %v300_v16  ;;  %v289_v33 = vld [vmem:[#allocation9 + $0x60] sm:$0xff]  ;;  %v288_v34 = vld [vmem:[#allocation9 + $0x58] sm:$0xff]  ;;  %v183_v35 = vld [vmem:[#allocation6 + $0x10] sm:$0xff] }
  0x95   :  { %2469 = vmatpush3.msra.mxu0 %v191_v11  ;;  %330 = vmatpush1.msra.mxu1 %v299_v18  ;;  %v287_v36 = vld [vmem:[#allocation9 + $0x50] sm:$0xff]  ;;  %v286_v37 = vld [vmem:[#allocation9 + $0x48] sm:$0xff]  ;;  %v285_v39 = vld [vmem:[#allocation9 + $0x40] sm:$0xff] }
  0x96   :  { %2470 = vmatprep.subr.mxu0 %v2793_v0  ;;  %331 = vmatprep.subr.mxu1 %v298_v19  ;;  %v182_v38 = vld [vmem:[#allocation6 + $0x8] sm:$0xff]  ;;  %v284_v40 = vld [vmem:[#allocation9 + $0x38] sm:$0xff]  ;;  %v283_v42 = vld [vmem:[#allocation9 + $0x30] sm:$0xff] }
  0x97   :  { %2471 = vmatpush3.msra.mxu0 %v190_v14  ;;  %332 = vmatpush1.msra.mxu1 %v297_v21  ;;  %v181_v41 = vld [vmem:[#allocation6] sm:$0xff]  ;;  %v180_v43 = vld [vmem:[#allocation3] sm:$0xff]  ;;  %v282_v44 = vld [vmem:[#allocation9 + $0x28] sm:$0xff] }
  0x98   :  { %2472 = vmatprep.subr.mxu0 %v2793_v0  ;;  %333 = vmatprep.subr.mxu1 %v296_v22  ;;  %v281_v45 = vld [vmem:[#allocation9 + $0x20] sm:$0xff]  ;;  %v280_v46 = vld [vmem:[#allocation9 + $0x18] sm:$0xff]  ;;  %v279_v47 = vld [vmem:[#allocation9 + $0x10] sm:$0xff] }
  0x99   :  { %2473 = vmatpush3.msra.mxu0 %v189_v17  ;;  %334 = vmatpush1.msra.mxu1 %v295_v24  ;;  %v278_v48 = vld [vmem:[#allocation9 + $0x8] sm:$0xff]  ;;  %v277_v49 = vld [vmem:[#allocation9] sm:$0xff] }
  0x9a   :  { %2474 = vmatprep.subr.mxu0 %v2793_v0  ;;  %335 = vmatprep.subr.mxu1 %v294_v25  ;;  %v459_v50 = vld [vmem:[#allocation12 + $0x1e8] sm:$0xff]  ;;  %v461_v51 = vld [vmem:[#allocation12 + $0x1f8] sm:$0xff]  ;;  %v458_v52 = vld [vmem:[#allocation12 + $0x1e0] sm:$0xff] }
  0x9b   :  { %2475 = vmatpush3.msra.mxu0 %v188_v20  ;;  %336 = vmatpush1.msra.mxu1 %v293_v27  ;;  %v455_v53 = vld [vmem:[#allocation12 + $0x1c8] sm:$0xff]  ;;  %v454_v54 = vld [vmem:[#allocation12 + $0x1c0] sm:$0xff] }
  0x9c   :  { %2476 = vmatprep.subr.mxu0 %v2793_v0  ;;  %337 = vmatprep.subr.mxu1 %v292_v28  ;;  %v451_v55 = vld [vmem:[#allocation12 + $0x1a8] sm:$0xff]  ;;  %v450_v56 = vld [vmem:[#allocation12 + $0x1a0] sm:$0xff] }
  0x9d   :  { %2477 = vmatpush3.msra.mxu0 %v187_v23  ;;  %338 = vmatpush1.msra.mxu1 %v291_v30  ;;  %v447_v57 = vld [vmem:[#allocation12 + $0x188] sm:$0xff]  ;;  %v446_v58 = vld [vmem:[#allocation12 + $0x180] sm:$0xff] }
  0x9e   :  { %2478 = vmatprep.subr.mxu0 %v2793_v0  ;;  %339 = vmatprep.subr.mxu1 %v290_v31  ;;  %v443_v59 = vld [vmem:[#allocation12 + $0x168] sm:$0xff]  ;;  %v442_v60 = vld [vmem:[#allocation12 + $0x160] sm:$0xff] }
  0x9f   :  { %2479 = vmatpush3.msra.mxu0 %v186_v26  ;;  %340 = vmatpush1.msra.mxu1 %v289_v33  ;;  %v439_v61 = vld [vmem:[#allocation12 + $0x148] sm:$0xff]  ;;  %v438_v62 = vld [vmem:[#allocation12 + $0x140] sm:$0xff] }
  0xa0   :  { %2480 = vmatprep.subr.mxu0 %v2793_v0  ;;  %341 = vmatprep.subr.mxu1 %v288_v34  ;;  %v435_v63 = vld [vmem:[#allocation12 + $0x128] sm:$0xff]  ;;  %v430_v2 = vld [vmem:[#allocation12 + $0x100] sm:$0xff] }
  0xa1   :  { %2481 = vmatpush3.msra.mxu0 %v185_v29  ;;  %342 = vmatpush1.msra.mxu1 %v287_v36  ;;  %v431_v1 = vld [vmem:[#allocation12 + $0x108] sm:$0xff]  ;;  %v426_v4 = vld [vmem:[#allocation12 + $0xe0] sm:$0xff] }
  0xa2   :  { %2482 = vmatprep.subr.mxu0 %v2793_v0  ;;  %343 = vmatprep.subr.mxu1 %v286_v37  ;;  %v427_v3 = vld [vmem:[#allocation12 + $0xe8] sm:$0xff]  ;;  %v422_v6 = vld [vmem:[#allocation12 + $0xc0] sm:$0xff] }
  0xa3   :  { %2483 = vmatpush3.msra.mxu0 %v184_v32  ;;  %344 = vmatpush1.msra.mxu1 %v285_v39  ;;  %v423_v5 = vld [vmem:[#allocation12 + $0xc8] sm:$0xff]  ;;  %v418_v8 = vld [vmem:[#allocation12 + $0xa0] sm:$0xff] }
  0xa4   :  { %2484 = vmatprep.subr.mxu0 %v2793_v0  ;;  %345 = vmatprep.subr.mxu1 %v284_v40  ;;  %v419_v7 = vld [vmem:[#allocation12 + $0xa8] sm:$0xff]  ;;  %v414_v10 = vld [vmem:[#allocation12 + $0x80] sm:$0xff] }
  0xa5   :  { %2485 = vmatpush3.msra.mxu0 %v183_v35  ;;  %346 = vmatpush1.msra.mxu1 %v283_v42  ;;  %v415_v9 = vld [vmem:[#allocation12 + $0x88] sm:$0xff]  ;;  %v410_v12 = vld [vmem:[#allocation12 + $0x60] sm:$0xff]  ;;  %v2440_v42 = vld [vmem:[#allocation8] ss:$0 sm:$0xff] }
  0xa6   :  { %2486 = vmatprep.subr.mxu0 %v2793_v0  ;;  %347 = vmatprep.subr.mxu1 %v282_v44  ;;  %v411_v11 = vld [vmem:[#allocation12 + $0x68] sm:$0xff]  ;;  %v406_v14 = vld [vmem:[#allocation12 + $0x40] sm:$0xff] }
  0xa7   :  { %2487 = vmatpush3.msra.mxu0 %v182_v38  ;;  %348 = vmatpush1.msra.mxu1 %v281_v45  ;;  %v407_v13 = vld [vmem:[#allocation12 + $0x48] sm:$0xff]  ;;  %v402_v16 = vld [vmem:[#allocation12 + $0x20] sm:$0xff] }
  0xa8   :  { %2488 = vmatprep.subr.mxu0 %v2793_v0  ;;  %349 = vmatprep.subr.mxu1 %v280_v46  ;;  %v434_v0 = vld [vmem:[#allocation12 + $0x120] sm:$0xff]  ;;  %v403_v15 = vld [vmem:[#allocation12 + $0x28] sm:$0xff] }
  0xa9   :  { %2489 = vmatpush3.msra.mxu0 %v181_v41  ;;  %350 = vmatpush1.msra.mxu1 %v279_v47  ;;  %v399_v17 = vld [vmem:[#allocation12 + $0x8] sm:$0xff]  ;;  %v398_v18 = vld [vmem:[#allocation12] sm:$0xff]  ;;  %v460_v47 = vld [vmem:[#allocation12 + $0x1f0] sm:$0xff] }
  0xaa   :  { %2491 = vmatmul.mubr.f32.vlgmr.msra.gmra.mxu0 %v180_v43  ;;  %351 = vmatprep.subr.mxu1 %v278_v48  ;;  %v523_v19 = vld [vmem:[#allocation12 + $0x3e8] sm:$0xff]  ;;  %v522_v20 = vld [vmem:[#allocation12 + $0x3e0] sm:$0xff] }
  0xab   :  { %352 = vmatpush1.msra.mxu1 %v277_v49  ;;  %548 = vmatprep.subr.mxu0 %v459_v50  ;;  %v519_v21 = vld [vmem:[#allocation12 + $0x3c8] sm:$0xff]  ;;  %v518_v22 = vld [vmem:[#allocation12 + $0x3c0] sm:$0xff]  ;;  %v457_v49 = vld [vmem:[#allocation12 + $0x1d8] sm:$0xff] }
  0xac   :  { %619 = vmatprep.subr.mxu1 %v461_v51  ;;  %549 = vmatpush1.msra.mxu0 %v458_v52  ;;  %v515_v23 = vld [vmem:[#allocation12 + $0x3a8] sm:$0xff]  ;;  %v514_v24 = vld [vmem:[#allocation12 + $0x3a0] sm:$0xff]  ;;  %v456_v50 = vld [vmem:[#allocation12 + $0x1d0] sm:$0xff] }
  0xad   :  { %550 = vmatprep.subr.mxu0 %v455_v53  ;;  %v511_v25 = vld [vmem:[#allocation12 + $0x388] sm:$0xff]  ;;  %v510_v26 = vld [vmem:[#allocation12 + $0x380] sm:$0xff]  ;;  %v453_v51 = vld [vmem:[#allocation12 + $0x1b8] sm:$0xff] }
  0xae   :  { %551 = vmatpush1.msra.mxu0 %v454_v54  ;;  %v507_v27 = vld [vmem:[#allocation12 + $0x368] sm:$0xff]  ;;  %v506_v28 = vld [vmem:[#allocation12 + $0x360] sm:$0xff]  ;;  %v452_v52 = vld [vmem:[#allocation12 + $0x1b0] sm:$0xff] }
  0xaf   :  { %552 = vmatprep.subr.mxu0 %v451_v55  ;;  %v503_v29 = vld [vmem:[#allocation12 + $0x348] sm:$0xff]  ;;  %v502_v30 = vld [vmem:[#allocation12 + $0x340] sm:$0xff]  ;;  %v449_v53 = vld [vmem:[#allocation12 + $0x198] sm:$0xff] }
  0xb0   :  { %553 = vmatpush1.msra.mxu0 %v450_v56  ;;  %v499_v31 = vld [vmem:[#allocation12 + $0x328] sm:$0xff]  ;;  %v498_v32 = vld [vmem:[#allocation12 + $0x320] sm:$0xff]  ;;  %v448_v54 = vld [vmem:[#allocation12 + $0x190] sm:$0xff] }
  0xb1   :  { %554 = vmatprep.subr.mxu0 %v447_v57  ;;  %v495_v33 = vld [vmem:[#allocation12 + $0x308] sm:$0xff]  ;;  %v494_v34 = vld [vmem:[#allocation12 + $0x300] sm:$0xff]  ;;  %v445_v55 = vld [vmem:[#allocation12 + $0x178] sm:$0xff] }
  0xb2   :  { %555 = vmatpush1.msra.mxu0 %v446_v58  ;;  %v491_v35 = vld [vmem:[#allocation12 + $0x2e8] sm:$0xff]  ;;  %v490_v36 = vld [vmem:[#allocation12 + $0x2e0] sm:$0xff]  ;;  %v444_v56 = vld [vmem:[#allocation12 + $0x170] sm:$0xff] }
  0xb3   :  { %556 = vmatprep.subr.mxu0 %v443_v59  ;;  %v487_v37 = vld [vmem:[#allocation12 + $0x2c8] sm:$0xff]  ;;  %v486_v38 = vld [vmem:[#allocation12 + $0x2c0] sm:$0xff]  ;;  %v441_v57 = vld [vmem:[#allocation12 + $0x158] sm:$0xff] }
  0xb4   :  { %557 = vmatpush1.msra.mxu0 %v442_v60  ;;  %v483_v39 = vld [vmem:[#allocation12 + $0x2a8] sm:$0xff]  ;;  %v482_v40 = vld [vmem:[#allocation12 + $0x2a0] sm:$0xff]  ;;  %v440_v58 = vld [vmem:[#allocation12 + $0x150] sm:$0xff] }
  0xb5   :  { %558 = vmatprep.subr.mxu0 %v439_v61  ;;  %v479_v41 = vld [vmem:[#allocation12 + $0x288] sm:$0xff]  ;;  %v437_v59 = vld [vmem:[#allocation12 + $0x138] sm:$0xff]  ;;  %v436_v60 = vld [vmem:[#allocation12 + $0x130] sm:$0xff] }
  0xb6   :  { %559 = vmatpush1.msra.mxu0 %v438_v62  ;;  %v433_v61 = vld [vmem:[#allocation12 + $0x118] sm:$0xff]  ;;  %v432_v62 = vld [vmem:[#allocation12 + $0x110] sm:$0xff] }
  0xb7   :  { %560 = vmatprep.subr.mxu0 %v435_v63  ;;  %v429_v63 = vld [vmem:[#allocation12 + $0xf8] sm:$0xff] }
  0xb8   :  { %561 = vmatpush1.msra.mxu0 %v434_v0  ;;  %v428_v0 = vld [vmem:[#allocation12 + $0xf0] sm:$0xff] }
  0xb9   :  { %562 = vmatprep.subr.mxu0 %v431_v1  ;;  %v425_v1 = vld [vmem:[#allocation12 + $0xd8] sm:$0xff] }
  0xba   :  { %563 = vmatpush1.msra.mxu0 %v430_v2  ;;  %v424_v2 = vld [vmem:[#allocation12 + $0xd0] sm:$0xff] }
  0xbb   :  { %564 = vmatprep.subr.mxu0 %v427_v3  ;;  %v421_v3 = vld [vmem:[#allocation12 + $0xb8] sm:$0xff] }
  0xbc   :  { %565 = vmatpush1.msra.mxu0 %v426_v4  ;;  %v420_v4 = vld [vmem:[#allocation12 + $0xb0] sm:$0xff] }
  0xbd   :  { %566 = vmatprep.subr.mxu0 %v423_v5  ;;  %v417_v5 = vld [vmem:[#allocation12 + $0x98] sm:$0xff] }
  0xbe   :  { %567 = vmatpush1.msra.mxu0 %v422_v6  ;;  %v416_v6 = vld [vmem:[#allocation12 + $0x90] sm:$0xff] }
  0xbf   :  { %568 = vmatprep.subr.mxu0 %v419_v7  ;;  %v413_v7 = vld [vmem:[#allocation12 + $0x78] sm:$0xff] }
  0xc0   :  { %569 = vmatpush1.msra.mxu0 %v418_v8  ;;  %v412_v8 = vld [vmem:[#allocation12 + $0x70] sm:$0xff] }
  0xc1   :  { %570 = vmatprep.subr.mxu0 %v415_v9  ;;  %v409_v9 = vld [vmem:[#allocation12 + $0x58] sm:$0xff] }
  0xc2   :  { %571 = vmatpush1.msra.mxu0 %v414_v10  ;;  %v408_v10 = vld [vmem:[#allocation12 + $0x50] sm:$0xff] }
  0xc3   :  { %572 = vmatprep.subr.mxu0 %v411_v11  ;;  %v405_v11 = vld [vmem:[#allocation12 + $0x38] sm:$0xff] }
  0xc4   :  { %573 = vmatpush1.msra.mxu0 %v410_v12  ;;  %v404_v12 = vld [vmem:[#allocation12 + $0x30] sm:$0xff] }
  0xc5   :  { %574 = vmatprep.subr.mxu0 %v407_v13  ;;  %v401_v13 = vld [vmem:[#allocation12 + $0x18] sm:$0xff] }
  0xc6   :  { %575 = vmatpush1.msra.mxu0 %v406_v14  ;;  %v400_v14 = vld [vmem:[#allocation12 + $0x10] sm:$0xff] }
  0xc7   :  { %576 = vmatprep.subr.mxu0 %v403_v15  ;;  %v525_v15 = vld [vmem:[#allocation12 + $0x3f8] sm:$0xff] }
  0xc8   :  { %577 = vmatpush1.msra.mxu0 %v402_v16  ;;  %v524_v16 = vld [vmem:[#allocation12 + $0x3f0] sm:$0xff] }
  0xc9   :  { %578 = vmatprep.subr.mxu0 %v399_v17  ;;  %v521_v17 = vld [vmem:[#allocation12 + $0x3d8] sm:$0xff] }
  0xca   :  { %579 = vmatpush1.msra.mxu0 %v398_v18  ;;  %v520_v18 = vld [vmem:[#allocation12 + $0x3d0] sm:$0xff] }
  0xcb   :  { %580 = vmatprep.subr.mxu0 %v523_v19  ;;  %v517_v19 = vld [vmem:[#allocation12 + $0x3b8] sm:$0xff] }
  0xcc   :  { %581 = vmatpush2.msra.mxu0 %v522_v20  ;;  %v516_v20 = vld [vmem:[#allocation12 + $0x3b0] sm:$0xff] }
  0xcd   :  { %582 = vmatprep.subr.mxu0 %v519_v21  ;;  %v513_v21 = vld [vmem:[#allocation12 + $0x398] sm:$0xff] }
  0xce   :  { %583 = vmatpush2.msra.mxu0 %v518_v22  ;;  %v512_v22 = vld [vmem:[#allocation12 + $0x390] sm:$0xff] }
  0xcf   :  { %584 = vmatprep.subr.mxu0 %v515_v23  ;;  %v509_v23 = vld [vmem:[#allocation12 + $0x378] sm:$0xff] }
  0xd0   :  { %585 = vmatpush2.msra.mxu0 %v514_v24  ;;  %v508_v24 = vld [vmem:[#allocation12 + $0x370] sm:$0xff] }
  0xd1   :  { %586 = vmatprep.subr.mxu0 %v511_v25  ;;  %v505_v25 = vld [vmem:[#allocation12 + $0x358] sm:$0xff] }
  0xd2   :  { %587 = vmatpush2.msra.mxu0 %v510_v26  ;;  %v504_v26 = vld [vmem:[#allocation12 + $0x350] sm:$0xff] }
  0xd3   :  { %588 = vmatprep.subr.mxu0 %v507_v27  ;;  %v501_v27 = vld [vmem:[#allocation12 + $0x338] sm:$0xff] }
  0xd4   :  { %589 = vmatpush2.msra.mxu0 %v506_v28  ;;  %v500_v28 = vld [vmem:[#allocation12 + $0x330] sm:$0xff] }
  0xd5   :  { %590 = vmatprep.subr.mxu0 %v503_v29  ;;  %v497_v29 = vld [vmem:[#allocation12 + $0x318] sm:$0xff] }
  0xd6   :  { %591 = vmatpush2.msra.mxu0 %v502_v30  ;;  %v496_v30 = vld [vmem:[#allocation12 + $0x310] sm:$0xff] }
  0xd7   :  { %592 = vmatprep.subr.mxu0 %v499_v31  ;;  %v493_v31 = vld [vmem:[#allocation12 + $0x2f8] sm:$0xff] }
  0xd8   :  { %593 = vmatpush2.msra.mxu0 %v498_v32  ;;  %v492_v32 = vld [vmem:[#allocation12 + $0x2f0] sm:$0xff] }
  0xd9   :  { %594 = vmatprep.subr.mxu0 %v495_v33  ;;  %v489_v33 = vld [vmem:[#allocation12 + $0x2d8] sm:$0xff] }
  0xda   :  { %595 = vmatpush2.msra.mxu0 %v494_v34  ;;  %v488_v34 = vld [vmem:[#allocation12 + $0x2d0] sm:$0xff] }
  0xdb   :  { %596 = vmatprep.subr.mxu0 %v491_v35  ;;  %v485_v35 = vld [vmem:[#allocation12 + $0x2b8] sm:$0xff] }
  0xdc   :  { %597 = vmatpush2.msra.mxu0 %v490_v36  ;;  %v484_v36 = vld [vmem:[#allocation12 + $0x2b0] sm:$0xff] }
  0xdd   :  { %598 = vmatprep.subr.mxu0 %v487_v37  ;;  %v481_v37 = vld [vmem:[#allocation12 + $0x298] sm:$0xff] }
  0xde   :  { %599 = vmatpush2.msra.mxu0 %v486_v38  ;;  %v478_v38 = vld [vmem:[#allocation12 + $0x280] sm:$0xff] }
  0xdf   :  { %600 = vmatprep.subr.mxu0 %v483_v39  ;;  %v480_v39 = vld [vmem:[#allocation12 + $0x290] sm:$0xff] }
  0xe0   :  { %601 = vmatpush2.msra.mxu0 %v482_v40  ;;  %v475_v40 = vld [vmem:[#allocation12 + $0x268] sm:$0xff] }
  0xe1   :  { %602 = vmatprep.subr.mxu0 %v479_v41  ;;  %v477_v41 = vld [vmem:[#allocation12 + $0x278] sm:$0xff] }
  0xe2   :  { %603 = vmatpush2.msra.mxu0 %v478_v38  ;;  %v1022_v38 = vld [vmem:[#allocation15 + $0xa00] sm:$0xff] }
  0xe3   :  { %604 = vmatprep.subr.mxu0 %v475_v40  ;;  %v1015_v40 = vld [vmem:[#allocation15 + $0x9c8] sm:$0xff] }
 0x16a   :  { %v270_v43 = vpop.f32.mrf.mxu0 }
 0x16b   :  { %v271_v44 = vadd.f32 %v2440_v42, %v270_v43  ;;  %v474_v42 = vld [vmem:[#allocation12 + $0x260] sm:$0xff]  ;;  %v476_v43 = vld [vmem:[#allocation12 + $0x270] sm:$0xff] }
 0x16c   :  { %v2492_v45 = vpop.f32.mrf.mxu0  ;;  %605 = vmatpush2.msra.mxu0 %v474_v42  ;;  %v1014_v42 = vld [vmem:[#allocation15 + $0x9c0] sm:$0xff] }
 0x16d   :  { %v275_v46 = vmul.f32 0.2, %v271_v44  ;;  %vm274_vm1 = vcmp.gt.f32.partialorder %v271_v44, 0.0  ;;  %v473_v45 = vld [vmem:[#allocation12 + $0x258] sm:$0xff] }
 0x16f   :  { %v276_v48 = vsel %vm274_vm1, %v271_v44, %v275_v46  ;;  %v471_v44 = vld [vmem:[#allocation12 + $0x248] sm:$0xff]  ;;  %v470_v46 = vld [vmem:[#allocation12 + $0x240] sm:$0xff] }
 0x170   :  { %386 = vmatmul.mubr.f32.vlgmr.msra.gmra.mxu1 %v276_v48  ;;  %606 = vmatprep.subr.mxu0 %v471_v44  ;;  %v467_v48 = vld [vmem:[#allocation12 + $0x228] sm:$0xff] }
 0x171   :  { %620 = vmatpush1.msra.mxu1 %v460_v47  ;;  %v472_v47 = vld [vmem:[#allocation12 + $0x250] sm:$0xff]  ;;  %607 = vmatpush2.msra.mxu0 %v470_v46  ;;  %v1006_v46 = vld [vmem:[#allocation15 + $0x980] sm:$0xff] }
 0x172   :  { %621 = vmatprep.subr.mxu1 %v457_v49  ;;  %v469_v49 = vld [vmem:[#allocation12 + $0x238] sm:$0xff]  ;;  %608 = vmatprep.subr.mxu0 %v467_v48  ;;  %v1007_v44 = vld [vmem:[#allocation15 + $0x988] sm:$0xff] }
 0x173   :  { %622 = vmatpush1.msra.mxu1 %v456_v50  ;;  %v466_v50 = vld [vmem:[#allocation12 + $0x220] sm:$0xff]  ;;  %v999_v48 = vld [vmem:[#allocation15 + $0x948] sm:$0xff] }
 0x174   :  { %623 = vmatprep.subr.mxu1 %v453_v51  ;;  %v468_v51 = vld [vmem:[#allocation12 + $0x230] sm:$0xff]  ;;  %609 = vmatpush2.msra.mxu0 %v466_v50  ;;  %v998_v50 = vld [vmem:[#allocation15 + $0x940] sm:$0xff] }
 0x175   :  { %624 = vmatpush1.msra.mxu1 %v452_v52  ;;  %v463_v52 = vld [vmem:[#allocation12 + $0x208] sm:$0xff] }
 0x176   :  { %625 = vmatprep.subr.mxu1 %v449_v53  ;;  %v465_v53 = vld [vmem:[#allocation12 + $0x218] sm:$0xff]  ;;  %610 = vmatprep.subr.mxu0 %v463_v52  ;;  %v991_v52 = vld [vmem:[#allocation15 + $0x908] sm:$0xff] }
 0x177   :  { %626 = vmatpush1.msra.mxu1 %v448_v54  ;;  %v462_v54 = vld [vmem:[#allocation12 + $0x200] sm:$0xff] }
 0x178   :  { %627 = vmatprep.subr.mxu1 %v445_v55  ;;  %v464_v55 = vld [vmem:[#allocation12 + $0x210] sm:$0xff]  ;;  %611 = vmatpush2.msra.mxu0 %v462_v54  ;;  %v990_v54 = vld [vmem:[#allocation15 + $0x900] sm:$0xff] }
 0x179   :  { %628 = vmatpush1.msra.mxu1 %v444_v56  ;;  %v823_v56 = vld [vmem:[#allocation15 + $0x3c8] sm:$0xff] }
 0x17a   :  { %629 = vmatprep.subr.mxu1 %v441_v57  ;;  %v1079_v57 = vld [vmem:[#allocation15 + $0xbc8] sm:$0xff]  ;;  %1256 = vmatprep.subr.mxu0 %v823_v56 }
 0x17b   :  { %630 = vmatpush1.msra.mxu1 %v440_v58  ;;  %v311_v58 = vlaneseq  ;;  %v983_v56 = vld [vmem:[#allocation15 + $0x8c8] sm:$0xff] }
 0x17c   :  { %631 = vmatprep.subr.mxu1 %v437_v59 }
 0x17d   :  { %632 = vmatpush1.msra.mxu1 %v436_v60  ;;  %v2913_v59 = vshrl.u32 %v311_v58, 7  ;;  %v982_v58 = vld [vmem:[#allocation15 + $0x8c0] sm:$0xff] }
 0x17e   :  { %633 = vmatprep.subr.mxu1 %v433_v61  ;;  %v309_v61 = vld [vmem:[#allocation11] sm:$0x3] }
 0x17f   :  { %634 = vmatpush1.msra.mxu1 %v432_v62  ;;  %v2916_v60 = vsub.s32 0, %v2913_v59  ;;  %v2919_v62 = vsub.s32 1, %v2913_v59 }
 0x180   :  { %635 = vmatprep.subr.mxu1 %v429_v63 }
 0x181   :  { %636 = vmatpush1.msra.mxu1 %v428_v0  ;;  %v314_v63 = vrot.slane %v309_v61, %v2916_v60  ;;  %v318_v0 = vrot.slane %v309_v61, %v2919_v62  ;;  %v719_v61 = vld [vmem:[#allocation15 + $0x88] sm:$0xff] }
 0x182   :  { %637 = vmatprep.subr.mxu1 %v425_v1 }
 0x183   :  { %638 = vmatpush1.msra.mxu1 %v424_v2 }
 0x184   :  { %639 = vmatprep.subr.mxu1 %v421_v3 }
 0x185   :  { %640 = vmatpush1.msra.mxu1 %v420_v4 }
 0x186   :  { %641 = vmatprep.subr.mxu1 %v417_v5 }
 0x187   :  { %642 = vmatpush1.msra.mxu1 %v416_v6 }
 0x188   :  { %643 = vmatprep.subr.mxu1 %v413_v7 }
 0x189   :  { %644 = vmatpush1.msra.mxu1 %v412_v8  ;;  %v822_v8 = vld [vmem:[#allocation15 + $0x3c0] sm:$0xff] }
 0x18a   :  { %645 = vmatprep.subr.mxu1 %v409_v9  ;;  %v1078_v9 = vld [vmem:[#allocation15 + $0xbc0] sm:$0xff] }
 0x18b   :  { %646 = vmatpush1.msra.mxu1 %v408_v10 }
 0x18c   :  { %647 = vmatprep.subr.mxu1 %v405_v11  ;;  %v815_v11 = vld [vmem:[#allocation15 + $0x388] sm:$0xff] }
 0x18d   :  { %648 = vmatpush1.msra.mxu1 %v404_v12  ;;  %v1071_v12 = vld [vmem:[#allocation15 + $0xb88] sm:$0xff] }
 0x18e   :  { %649 = vmatprep.subr.mxu1 %v401_v13  ;;  %v814_v13 = vld [vmem:[#allocation15 + $0x380] sm:$0xff] }
 0x18f   :  { %650 = vmatpush1.msra.mxu1 %v400_v14  ;;  %v1070_v14 = vld [vmem:[#allocation15 + $0xb80] sm:$0xff] }
 0x190   :  { %651 = vmatprep.subr.mxu1 %v525_v15  ;;  %v807_v15 = vld [vmem:[#allocation15 + $0x348] sm:$0xff] }
 0x191   :  { %652 = vmatpush2.msra.mxu1 %v524_v16  ;;  %v1063_v16 = vld [vmem:[#allocation15 + $0xb48] sm:$0xff] }
 0x192   :  { %653 = vmatprep.subr.mxu1 %v521_v17  ;;  %v806_v17 = vld [vmem:[#allocation15 + $0x340] sm:$0xff] }
 0x193   :  { %654 = vmatpush2.msra.mxu1 %v520_v18  ;;  %v1062_v18 = vld [vmem:[#allocation15 + $0xb40] sm:$0xff] }
 0x194   :  { %655 = vmatprep.subr.mxu1 %v517_v19  ;;  %v799_v19 = vld [vmem:[#allocation15 + $0x308] sm:$0xff] }
 0x195   :  { %656 = vmatpush2.msra.mxu1 %v516_v20  ;;  %v1055_v20 = vld [vmem:[#allocation15 + $0xb08] sm:$0xff] }
 0x196   :  { %657 = vmatprep.subr.mxu1 %v513_v21  ;;  %v798_v21 = vld [vmem:[#allocation15 + $0x300] sm:$0xff] }
 0x197   :  { %658 = vmatpush2.msra.mxu1 %v512_v22  ;;  %v1054_v22 = vld [vmem:[#allocation15 + $0xb00] sm:$0xff] }
 0x198   :  { %659 = vmatprep.subr.mxu1 %v509_v23  ;;  %v791_v23 = vld [vmem:[#allocation15 + $0x2c8] sm:$0xff] }
 0x199   :  { %660 = vmatpush2.msra.mxu1 %v508_v24  ;;  %v1047_v24 = vld [vmem:[#allocation15 + $0xac8] sm:$0xff] }
 0x19a   :  { %661 = vmatprep.subr.mxu1 %v505_v25  ;;  %v790_v25 = vld [vmem:[#allocation15 + $0x2c0] sm:$0xff] }
 0x19b   :  { %662 = vmatpush2.msra.mxu1 %v504_v26  ;;  %v1046_v26 = vld [vmem:[#allocation15 + $0xac0] sm:$0xff] }
 0x19c   :  { %663 = vmatprep.subr.mxu1 %v501_v27  ;;  %v783_v27 = vld [vmem:[#allocation15 + $0x288] sm:$0xff] }
 0x19d   :  { %664 = vmatpush2.msra.mxu1 %v500_v28  ;;  %v1039_v28 = vld [vmem:[#allocation15 + $0xa88] sm:$0xff] }
 0x19e   :  { %665 = vmatprep.subr.mxu1 %v497_v29  ;;  %v782_v29 = vld [vmem:[#allocation15 + $0x280] sm:$0xff] }
 0x19f   :  { %666 = vmatpush2.msra.mxu1 %v496_v30  ;;  %v1038_v30 = vld [vmem:[#allocation15 + $0xa80] sm:$0xff] }
 0x1a0   :  { %667 = vmatprep.subr.mxu1 %v493_v31  ;;  %v775_v31 = vld [vmem:[#allocation15 + $0x248] sm:$0xff] }
 0x1a1   :  { %668 = vmatpush2.msra.mxu1 %v492_v32  ;;  %v1031_v32 = vld [vmem:[#allocation15 + $0xa48] sm:$0xff] }
 0x1a2   :  { %669 = vmatprep.subr.mxu1 %v489_v33  ;;  %v774_v33 = vld [vmem:[#allocation15 + $0x240] sm:$0xff] }
 0x1a3   :  { %670 = vmatpush2.msra.mxu1 %v488_v34  ;;  %v1030_v34 = vld [vmem:[#allocation15 + $0xa40] sm:$0xff] }
 0x1a4   :  { %671 = vmatprep.subr.mxu1 %v485_v35  ;;  %v767_v35 = vld [vmem:[#allocation15 + $0x208] sm:$0xff] }
 0x1a5   :  { %672 = vmatpush2.msra.mxu1 %v484_v36  ;;  %v1023_v36 = vld [vmem:[#allocation15 + $0xa08] sm:$0xff] }
 0x1a6   :  { %673 = vmatprep.subr.mxu1 %v481_v37  ;;  %v766_v37 = vld [vmem:[#allocation15 + $0x200] sm:$0xff] }
 0x1a7   :  { %674 = vmatpush2.msra.mxu1 %v480_v39  ;;  %v759_v39 = vld [vmem:[#allocation15 + $0x1c8] sm:$0xff] }
 0x1a8   :  { %675 = vmatprep.subr.mxu1 %v477_v41  ;;  %v758_v41 = vld [vmem:[#allocation15 + $0x1c0] sm:$0xff] }
 0x1a9   :  { %676 = vmatpush2.msra.mxu1 %v476_v43  ;;  %v751_v43 = vld [vmem:[#allocation15 + $0x188] sm:$0xff] }
 0x1aa   :  { %677 = vmatprep.subr.mxu1 %v473_v45  ;;  %v750_v45 = vld [vmem:[#allocation15 + $0x180] sm:$0xff] }
 0x1ab   :  { %678 = vmatpush2.msra.mxu1 %v472_v47  ;;  %v743_v47 = vld [vmem:[#allocation15 + $0x148] sm:$0xff] }
 0x1ac   :  { %679 = vmatprep.subr.mxu1 %v469_v49  ;;  %v742_v49 = vld [vmem:[#allocation15 + $0x140] sm:$0xff] }
 0x1ad   :  { %680 = vmatpush2.msra.mxu1 %v468_v51  ;;  %v735_v51 = vld [vmem:[#allocation15 + $0x108] sm:$0xff] }
 0x1ae   :  { %681 = vmatprep.subr.mxu1 %v465_v53  ;;  %v734_v53 = vld [vmem:[#allocation15 + $0x100] sm:$0xff] }
 0x1af   :  { %682 = vmatpush2.msra.mxu1 %v464_v55  ;;  %v727_v55 = vld [vmem:[#allocation15 + $0xc8] sm:$0xff] }
 0x1b0   :  { %1327 = vmatprep.subr.mxu1 %v1079_v57  ;;  %v726_v57 = vld [vmem:[#allocation15 + $0xc0] sm:$0xff] }
 0x230   :  { %v387_v1 = vpop.f32.mrf.mxu1 }
 0x231   :  { %v388_v2 = vadd.f32 %v387_v1, %v314_v63  ;;  %v975_v63 = vld [vmem:[#allocation15 + $0x888] sm:$0xff]  ;;  %v974_v1 = vld [vmem:[#allocation15 + $0x880] sm:$0xff] }
 0x232   :  { %v389_v3 = vpop.f32.mrf.mxu1 }
 0x233   :  { %v390_v4 = vadd.f32 %v389_v3, %v318_v0  ;;  %v394_v5 = vmul.f32 0.2, %v388_v2  ;;  %vm392_vm2 = vcmp.gt.f32.partialorder %v388_v2, 0.0  ;;  %v718_v0 = vld [vmem:[#allocation15 + $0x80] sm:$0xff]  ;;  %v967_v3 = vld [vmem:[#allocation15 + $0x848] sm:$0xff] }
 0x235   :  { %v395_v6 = vmul.f32 0.2, %v390_v4  ;;  %vm393_vm3 = vcmp.gt.f32.partialorder %v390_v4, 0.0  ;;  %v396_v10 = vsel %vm392_vm2, %v388_v2, %v394_v5  ;;  %v711_v2 = vld [vmem:[#allocation15 + $0x48] sm:$0xff]  ;;  %v966_v5 = vld [vmem:[#allocation15 + $0x840] sm:$0xff] }
 0x237   :  { %v397_v7 = vsel %vm393_vm3, %v390_v4, %v395_v6  ;;  %v710_v4 = vld [vmem:[#allocation15 + $0x40] sm:$0xff]  ;;  %v703_v6 = vld [vmem:[#allocation15 + $0x8] sm:$0xff] }
 0x238   :  { %612 = vmatprep.mubr.f32.mxu0 %v397_v7  ;;  %683 = vmatprep.mubr.f32.mxu1 %v397_v7  ;;  %v959_v7 = vld [vmem:[#allocation15 + $0x808] sm:$0xff] }
 0x239   :  { %613 = vmatmul.mubr.f32.vlgmr.msra.gmra.mxu0 %v396_v10  ;;  %684 = vmatmul.mubr.f32.vlgmr.msra.gmra.mxu1 %v396_v10  ;;  %v951_v10 = vld [vmem:[#allocation15 + $0x7c8] sm:$0xff] }
 0x23a   :  { %1257 = vmatpush1.msra.mxu0 %v822_v8  ;;  %1328 = vmatpush1.msra.mxu1 %v1078_v9  ;;  %v702_v8 = vld [vmem:[#allocation15] sm:$0xff] }
 0x23b   :  { %1258 = vmatprep.subr.mxu0 %v815_v11  ;;  %1329 = vmatprep.subr.mxu1 %v1071_v12  ;;  %v958_v9 = vld [vmem:[#allocation15 + $0x800] sm:$0xff]  ;;  %v1207_v11 = vld [vmem:[#allocation15 + $0xfc8] sm:$0xff] }
 0x23c   :  { %1259 = vmatpush1.msra.mxu0 %v814_v13  ;;  %1330 = vmatpush1.msra.mxu1 %v1070_v14  ;;  %v950_v12 = vld [vmem:[#allocation15 + $0x7c0] sm:$0xff]  ;;  %v943_v14 = vld [vmem:[#allocation15 + $0x788] sm:$0xff] }
 0x23d   :  { %1260 = vmatprep.subr.mxu0 %v807_v15  ;;  %1331 = vmatprep.subr.mxu1 %v1063_v16  ;;  %v1206_v13 = vld [vmem:[#allocation15 + $0xfc0] sm:$0xff]  ;;  %v1199_v15 = vld [vmem:[#allocation15 + $0xf88] sm:$0xff] }
 0x23e   :  { %1261 = vmatpush1.msra.mxu0 %v806_v17  ;;  %1332 = vmatpush1.msra.mxu1 %v1062_v18  ;;  %v942_v16 = vld [vmem:[#allocation15 + $0x780] sm:$0xff]  ;;  %v935_v18 = vld [vmem:[#allocation15 + $0x748] sm:$0xff] }
 0x23f   :  { %1262 = vmatprep.subr.mxu0 %v799_v19  ;;  %1333 = vmatprep.subr.mxu1 %v1055_v20  ;;  %v1198_v17 = vld [vmem:[#allocation15 + $0xf80] sm:$0xff]  ;;  %v1191_v19 = vld [vmem:[#allocation15 + $0xf48] sm:$0xff] }
 0x240   :  { %1263 = vmatpush1.msra.mxu0 %v798_v21  ;;  %1334 = vmatpush1.msra.mxu1 %v1054_v22  ;;  %v934_v20 = vld [vmem:[#allocation15 + $0x740] sm:$0xff]  ;;  %v927_v22 = vld [vmem:[#allocation15 + $0x708] sm:$0xff] }
 0x241   :  { %1264 = vmatprep.subr.mxu0 %v791_v23  ;;  %1335 = vmatprep.subr.mxu1 %v1047_v24  ;;  %v1190_v21 = vld [vmem:[#allocation15 + $0xf40] sm:$0xff]  ;;  %v1183_v23 = vld [vmem:[#allocation15 + $0xf08] sm:$0xff] }
 0x242   :  { %1265 = vmatpush1.msra.mxu0 %v790_v25  ;;  %1336 = vmatpush1.msra.mxu1 %v1046_v26  ;;  %v926_v24 = vld [vmem:[#allocation15 + $0x700] sm:$0xff]  ;;  %v919_v26 = vld [vmem:[#allocation15 + $0x6c8] sm:$0xff] }
 0x243   :  { %1266 = vmatprep.subr.mxu0 %v783_v27  ;;  %1337 = vmatprep.subr.mxu1 %v1039_v28  ;;  %v1182_v25 = vld [vmem:[#allocation15 + $0xf00] sm:$0xff]  ;;  %v1175_v27 = vld [vmem:[#allocation15 + $0xec8] sm:$0xff] }
 0x244   :  { %1267 = vmatpush1.msra.mxu0 %v782_v29  ;;  %1338 = vmatpush1.msra.mxu1 %v1038_v30  ;;  %v918_v28 = vld [vmem:[#allocation15 + $0x6c0] sm:$0xff]  ;;  %v911_v30 = vld [vmem:[#allocation15 + $0x688] sm:$0xff] }
 0x245   :  { %1268 = vmatprep.subr.mxu0 %v775_v31  ;;  %1339 = vmatprep.subr.mxu1 %v1031_v32  ;;  %v1174_v29 = vld [vmem:[#allocation15 + $0xec0] sm:$0xff]  ;;  %v1167_v31 = vld [vmem:[#allocation15 + $0xe88] sm:$0xff] }
 0x246   :  { %1269 = vmatpush1.msra.mxu0 %v774_v33  ;;  %1340 = vmatpush1.msra.mxu1 %v1030_v34  ;;  %v910_v32 = vld [vmem:[#allocation15 + $0x680] sm:$0xff]  ;;  %v903_v34 = vld [vmem:[#allocation15 + $0x648] sm:$0xff] }
 0x247   :  { %1270 = vmatprep.subr.mxu0 %v767_v35  ;;  %1341 = vmatprep.subr.mxu1 %v1023_v36  ;;  %v1166_v33 = vld [vmem:[#allocation15 + $0xe80] sm:$0xff]  ;;  %v1159_v35 = vld [vmem:[#allocation15 + $0xe48] sm:$0xff] }
 0x248   :  { %1271 = vmatpush1.msra.mxu0 %v766_v37  ;;  %1342 = vmatpush1.msra.mxu1 %v1022_v38  ;;  %v902_v36 = vld [vmem:[#allocation15 + $0x640] sm:$0xff]  ;;  %v895_v38 = vld [vmem:[#allocation15 + $0x608] sm:$0xff] }
 0x249   :  { %1272 = vmatprep.subr.mxu0 %v759_v39  ;;  %1343 = vmatprep.subr.mxu1 %v1015_v40  ;;  %v1158_v37 = vld [vmem:[#allocation15 + $0xe40] sm:$0xff]  ;;  %v1151_v39 = vld [vmem:[#allocation15 + $0xe08] sm:$0xff] }
 0x24a   :  { %1273 = vmatpush1.msra.mxu0 %v758_v41  ;;  %1344 = vmatpush1.msra.mxu1 %v1014_v42  ;;  %v894_v40 = vld [vmem:[#allocation15 + $0x600] sm:$0xff]  ;;  %v887_v42 = vld [vmem:[#allocation15 + $0x5c8] sm:$0xff] }
 0x24b   :  { %1274 = vmatprep.subr.mxu0 %v751_v43  ;;  %1345 = vmatprep.subr.mxu1 %v1007_v44  ;;  %v1150_v41 = vld [vmem:[#allocation15 + $0xe00] sm:$0xff]  ;;  %v1143_v43 = vld [vmem:[#allocation15 + $0xdc8] sm:$0xff] }
 0x24c   :  { %1275 = vmatpush1.msra.mxu0 %v750_v45  ;;  %1346 = vmatpush1.msra.mxu1 %v1006_v46  ;;  %v886_v44 = vld [vmem:[#allocation15 + $0x5c0] sm:$0xff]  ;;  %v879_v46 = vld [vmem:[#allocation15 + $0x588] sm:$0xff] }
 0x24d   :  { %1276 = vmatprep.subr.mxu0 %v743_v47  ;;  %1347 = vmatprep.subr.mxu1 %v999_v48  ;;  %v1142_v45 = vld [vmem:[#allocation15 + $0xdc0] sm:$0xff]  ;;  %v1135_v47 = vld [vmem:[#allocation15 + $0xd88] sm:$0xff] }
 0x24e   :  { %1277 = vmatpush1.msra.mxu0 %v742_v49  ;;  %1348 = vmatpush1.msra.mxu1 %v998_v50  ;;  %v878_v48 = vld [vmem:[#allocation15 + $0x580] sm:$0xff]  ;;  %v871_v50 = vld [vmem:[#allocation15 + $0x548] sm:$0xff] }
 0x24f   :  { %1278 = vmatprep.subr.mxu0 %v735_v51  ;;  %1349 = vmatprep.subr.mxu1 %v991_v52  ;;  %v1134_v49 = vld [vmem:[#allocation15 + $0xd80] sm:$0xff]  ;;  %v1127_v51 = vld [vmem:[#allocation15 + $0xd48] sm:$0xff] }
 0x250   :  { %1279 = vmatpush1.msra.mxu0 %v734_v53  ;;  %1350 = vmatpush1.msra.mxu1 %v990_v54  ;;  %v870_v52 = vld [vmem:[#allocation15 + $0x540] sm:$0xff]  ;;  %v863_v54 = vld [vmem:[#allocation15 + $0x508] sm:$0xff] }
 0x251   :  { %1280 = vmatprep.subr.mxu0 %v727_v55  ;;  %1351 = vmatprep.subr.mxu1 %v983_v56  ;;  %v1126_v53 = vld [vmem:[#allocation15 + $0xd40] sm:$0xff]  ;;  %v1119_v55 = vld [vmem:[#allocation15 + $0xd08] sm:$0xff] }
 0x252   :  { %1281 = vmatpush1.msra.mxu0 %v726_v57  ;;  %1352 = vmatpush1.msra.mxu1 %v982_v58  ;;  %v862_v56 = vld [vmem:[#allocation15 + $0x500] sm:$0xff]  ;;  %v855_v58 = vld [vmem:[#allocation15 + $0x4c8] sm:$0xff] }
 0x253   :  { %1282 = vmatprep.subr.mxu0 %v719_v61  ;;  %1353 = vmatprep.subr.mxu1 %v975_v63  ;;  %v1118_v57 = vld [vmem:[#allocation15 + $0xd00] sm:$0xff]  ;;  %v1111_v61 = vld [vmem:[#allocation15 + $0xcc8] sm:$0xff] }
 0x254   :  { %1283 = vmatpush1.msra.mxu0 %v718_v0  ;;  %1354 = vmatpush1.msra.mxu1 %v974_v1  ;;  %v854_v63 = vld [vmem:[#allocation15 + $0x4c0] sm:$0xff]  ;;  %v847_v1 = vld [vmem:[#allocation15 + $0x488] sm:$0xff] }
 0x255   :  { %1284 = vmatprep.subr.mxu0 %v711_v2  ;;  %1355 = vmatprep.subr.mxu1 %v967_v3  ;;  %v1110_v0 = vld [vmem:[#allocation15 + $0xcc0] sm:$0xff]  ;;  %v1103_v2 = vld [vmem:[#allocation15 + $0xc88] sm:$0xff] }
 0x256   :  { %1285 = vmatpush1.msra.mxu0 %v710_v4  ;;  %1356 = vmatpush1.msra.mxu1 %v966_v5  ;;  %v846_v3 = vld [vmem:[#allocation15 + $0x480] sm:$0xff]  ;;  %v839_v5 = vld [vmem:[#allocation15 + $0x448] sm:$0xff] }
 0x257   :  { %1286 = vmatprep.subr.mxu0 %v703_v6  ;;  %1357 = vmatprep.subr.mxu1 %v959_v7  ;;  %v1102_v4 = vld [vmem:[#allocation15 + $0xc80] sm:$0xff]  ;;  %v1095_v6 = vld [vmem:[#allocation15 + $0xc48] sm:$0xff] }
 0x258   :  { %1287 = vmatpush1.msra.mxu0 %v702_v8  ;;  %1358 = vmatpush1.msra.mxu1 %v958_v9  ;;  %v838_v7 = vld [vmem:[#allocation15 + $0x440] sm:$0xff]  ;;  %v831_v9 = vld [vmem:[#allocation15 + $0x408] sm:$0xff] }
 0x259   :  { %1288 = vmatprep.subr.mxu0 %v951_v10  ;;  %1359 = vmatprep.subr.mxu1 %v1207_v11  ;;  %v1094_v8 = vld [vmem:[#allocation15 + $0xc40] sm:$0xff]  ;;  %v1087_v10 = vld [vmem:[#allocation15 + $0xc08] sm:$0xff] }
 0x25a   :  { %1289 = vmatpush2.msra.mxu0 %v950_v12  ;;  %1360 = vmatpush2.msra.mxu1 %v1206_v13  ;;  %v830_v11 = vld [vmem:[#allocation15 + $0x400] sm:$0xff]  ;;  %v825_v13 = vld [vmem:[#allocation15 + $0x3d8] sm:$0xff] }
 0x25b   :  { %1290 = vmatprep.subr.mxu0 %v943_v14  ;;  %1361 = vmatprep.subr.mxu1 %v1199_v15  ;;  %v1086_v12 = vld [vmem:[#allocation15 + $0xc00] sm:$0xff]  ;;  %v1081_v14 = vld [vmem:[#allocation15 + $0xbd8] sm:$0xff]  ;;  %v538_v15 = vsub.s32 2, %v2913_v59 }
 0x25c   :  { %1291 = vmatpush2.msra.mxu0 %v942_v16  ;;  %1362 = vmatpush2.msra.mxu1 %v1198_v17  ;;  %v526_v16 = vld [vmem:[#allocation14] sm:$0xf]  ;;  %v542_v17 = vsub.s32 3, %v2913_v59 }
 0x25d   :  { %1292 = vmatprep.subr.mxu0 %v935_v18  ;;  %1363 = vmatprep.subr.mxu1 %v1191_v19  ;;  %v531_v18 = vrot.slane %v526_v16, %v2916_v60  ;;  %v539_v19 = vrot.slane %v526_v16, %v538_v15 }
 0x25e   :  { %1293 = vmatpush2.msra.mxu0 %v934_v20  ;;  %1364 = vmatpush2.msra.mxu1 %v1190_v21 }
 0x25f   :  { %1294 = vmatprep.subr.mxu0 %v927_v22  ;;  %1365 = vmatprep.subr.mxu1 %v1183_v23  ;;  %v535_v22 = vrot.slane %v526_v16, %v2919_v62  ;;  %v543_v23 = vrot.slane %v526_v16, %v542_v17  ;;  %v745_v16 = vld [vmem:[#allocation15 + $0x158] sm:$0xff] }
 0x260   :  { %1295 = vmatpush2.msra.mxu0 %v926_v24  ;;  %1366 = vmatpush2.msra.mxu1 %v1182_v25 }
 0x261   :  { %1296 = vmatprep.subr.mxu0 %v919_v26  ;;  %1367 = vmatprep.subr.mxu1 %v1175_v27 }
 0x262   :  { %1297 = vmatpush2.msra.mxu0 %v918_v28  ;;  %1368 = vmatpush2.msra.mxu1 %v1174_v29 }
 0x263   :  { %1298 = vmatprep.subr.mxu0 %v911_v30  ;;  %1369 = vmatprep.subr.mxu1 %v1167_v31 }
 0x264   :  { %1299 = vmatpush2.msra.mxu0 %v910_v32  ;;  %1370 = vmatpush2.msra.mxu1 %v1166_v33 }
 0x265   :  { %1300 = vmatprep.subr.mxu0 %v903_v34  ;;  %1371 = vmatprep.subr.mxu1 %v1159_v35 }
 0x266   :  { %1301 = vmatpush2.msra.mxu0 %v902_v36  ;;  %1372 = vmatpush2.msra.mxu1 %v1158_v37  ;;  %v824_v36 = vld [vmem:[#allocation15 + $0x3d0] sm:$0xff] }
 0x267   :  { %1302 = vmatprep.subr.mxu0 %v895_v38  ;;  %1373 = vmatprep.subr.mxu1 %v1151_v39  ;;  %v1080_v37 = vld [vmem:[#allocation15 + $0xbd0] sm:$0xff] }
 0x268   :  { %1303 = vmatpush2.msra.mxu0 %v894_v40  ;;  %1374 = vmatpush2.msra.mxu1 %v1150_v41  ;;  %v817_v40 = vld [vmem:[#allocation15 + $0x398] sm:$0xff] }
 0x269   :  { %1304 = vmatprep.subr.mxu0 %v887_v42  ;;  %1375 = vmatprep.subr.mxu1 %v1143_v43  ;;  %v1073_v41 = vld [vmem:[#allocation15 + $0xb98] sm:$0xff]  ;;  %v816_v42 = vld [vmem:[#allocation15 + $0x390] sm:$0xff] }
 0x26a   :  { %1305 = vmatpush2.msra.mxu0 %v886_v44  ;;  %1376 = vmatpush2.msra.mxu1 %v1142_v45  ;;  %v1072_v43 = vld [vmem:[#allocation15 + $0xb90] sm:$0xff]  ;;  %v809_v44 = vld [vmem:[#allocation15 + $0x358] sm:$0xff] }
 0x26b   :  { %1306 = vmatprep.subr.mxu0 %v879_v46  ;;  %1377 = vmatprep.subr.mxu1 %v1135_v47  ;;  %v1065_v45 = vld [vmem:[#allocation15 + $0xb58] sm:$0xff]  ;;  %v808_v46 = vld [vmem:[#allocation15 + $0x350] sm:$0xff] }
 0x26c   :  { %1307 = vmatpush2.msra.mxu0 %v878_v48  ;;  %1378 = vmatpush2.msra.mxu1 %v1134_v49  ;;  %v1064_v47 = vld [vmem:[#allocation15 + $0xb50] sm:$0xff]  ;;  %v801_v48 = vld [vmem:[#allocation15 + $0x318] sm:$0xff] }
 0x26d   :  { %1308 = vmatprep.subr.mxu0 %v871_v50  ;;  %1379 = vmatprep.subr.mxu1 %v1127_v51  ;;  %v1057_v49 = vld [vmem:[#allocation15 + $0xb18] sm:$0xff]  ;;  %v800_v50 = vld [vmem:[#allocation15 + $0x310] sm:$0xff] }
 0x26e   :  { %1309 = vmatpush2.msra.mxu0 %v870_v52  ;;  %1380 = vmatpush2.msra.mxu1 %v1126_v53  ;;  %v1056_v51 = vld [vmem:[#allocation15 + $0xb10] sm:$0xff]  ;;  %v793_v52 = vld [vmem:[#allocation15 + $0x2d8] sm:$0xff] }
 0x26f   :  { %1310 = vmatprep.subr.mxu0 %v863_v54  ;;  %1381 = vmatprep.subr.mxu1 %v1119_v55  ;;  %v1049_v53 = vld [vmem:[#allocation15 + $0xad8] sm:$0xff]  ;;  %v792_v54 = vld [vmem:[#allocation15 + $0x2d0] sm:$0xff] }
 0x270   :  { %1311 = vmatpush2.msra.mxu0 %v862_v56  ;;  %1382 = vmatpush2.msra.mxu1 %v1118_v57  ;;  %v1048_v55 = vld [vmem:[#allocation15 + $0xad0] sm:$0xff]  ;;  %v785_v56 = vld [vmem:[#allocation15 + $0x298] sm:$0xff] }
 0x271   :  { %1312 = vmatprep.subr.mxu0 %v855_v58  ;;  %1383 = vmatprep.subr.mxu1 %v1111_v61  ;;  %v1041_v57 = vld [vmem:[#allocation15 + $0xa98] sm:$0xff]  ;;  %v784_v58 = vld [vmem:[#allocation15 + $0x290] sm:$0xff] }
 0x272   :  { %1313 = vmatpush2.msra.mxu0 %v854_v63  ;;  %1384 = vmatpush2.msra.mxu1 %v1110_v0  ;;  %v1040_v61 = vld [vmem:[#allocation15 + $0xa90] sm:$0xff]  ;;  %v777_v63 = vld [vmem:[#allocation15 + $0x258] sm:$0xff] }
 0x273   :  { %1314 = vmatprep.subr.mxu0 %v847_v1  ;;  %1385 = vmatprep.subr.mxu1 %v1103_v2  ;;  %v1033_v0 = vld [vmem:[#allocation15 + $0xa58] sm:$0xff]  ;;  %v776_v1 = vld [vmem:[#allocation15 + $0x250] sm:$0xff] }
 0x274   :  { %1315 = vmatpush2.msra.mxu0 %v846_v3  ;;  %1386 = vmatpush2.msra.mxu1 %v1102_v4  ;;  %v1032_v2 = vld [vmem:[#allocation15 + $0xa50] sm:$0xff]  ;;  %v769_v3 = vld [vmem:[#allocation15 + $0x218] sm:$0xff] }
 0x275   :  { %1316 = vmatprep.subr.mxu0 %v839_v5  ;;  %1387 = vmatprep.subr.mxu1 %v1095_v6  ;;  %v1025_v4 = vld [vmem:[#allocation15 + $0xa18] sm:$0xff]  ;;  %v768_v5 = vld [vmem:[#allocation15 + $0x210] sm:$0xff] }
 0x276   :  { %1317 = vmatpush2.msra.mxu0 %v838_v7  ;;  %1388 = vmatpush2.msra.mxu1 %v1094_v8  ;;  %v1024_v6 = vld [vmem:[#allocation15 + $0xa10] sm:$0xff]  ;;  %v761_v7 = vld [vmem:[#allocation15 + $0x1d8] sm:$0xff] }
 0x277   :  { %1318 = vmatprep.subr.mxu0 %v831_v9  ;;  %1389 = vmatprep.subr.mxu1 %v1087_v10  ;;  %v1017_v8 = vld [vmem:[#allocation15 + $0x9d8] sm:$0xff]  ;;  %v760_v9 = vld [vmem:[#allocation15 + $0x1d0] sm:$0xff] }
 0x278   :  { %1319 = vmatpush2.msra.mxu0 %v830_v11  ;;  %1390 = vmatpush2.msra.mxu1 %v1086_v12  ;;  %v1016_v10 = vld [vmem:[#allocation15 + $0x9d0] sm:$0xff]  ;;  %v753_v11 = vld [vmem:[#allocation15 + $0x198] sm:$0xff] }
 0x279   :  { %1398 = vmatprep.subr.mxu0 %v825_v13  ;;  %1469 = vmatprep.subr.mxu1 %v1081_v14  ;;  %v1009_v12 = vld [vmem:[#allocation15 + $0x998] sm:$0xff]  ;;  %v752_v13 = vld [vmem:[#allocation15 + $0x190] sm:$0xff] }
 0x27a   :  { %v1008_v14 = vld [vmem:[#allocation15 + $0x990] sm:$0xff] }
 0x2f9   :  { %v614_v20 = vpop.f32.mrf.mxu0  ;;  %v685_v21 = vpop.f32.mrf.mxu1 }
 0x2fa   :  { %v615_v24 = vadd.f32 %v614_v20, %v531_v18  ;;  %v686_v25 = vadd.f32 %v685_v21, %v539_v19  ;;  %v1001_v18 = vld [vmem:[#allocation15 + $0x958] sm:$0xff]  ;;  %v744_v19 = vld [vmem:[#allocation15 + $0x150] sm:$0xff] }
 0x2fb   :  { %v616_v26 = vpop.f32.mrf.mxu0  ;;  %v687_v27 = vpop.f32.mrf.mxu1  ;;  %v1000_v20 = vld [vmem:[#allocation15 + $0x950] sm:$0xff]  ;;  %v737_v21 = vld [vmem:[#allocation15 + $0x118] sm:$0xff] }
 0x2fc   :  { %v617_v28 = vadd.f32 %v616_v26, %v535_v22  ;;  %v688_v29 = vadd.f32 %v687_v27, %v543_v23  ;;  %vm690_vm4 = vcmp.gt.f32.partialorder %v615_v24, 0.0  ;;  %v694_v30 = vmul.f32 0.2, %v615_v24  ;;  %v993_v22 = vld [vmem:[#allocation15 + $0x918] sm:$0xff]  ;;  %v736_v23 = vld [vmem:[#allocation15 + $0x110] sm:$0xff] }
 0x2fd   :  { %vm692_vm5 = vcmp.gt.f32.partialorder %v686_v25, 0.0  ;;  %v696_v31 = vmul.f32 0.2, %v686_v25  ;;  %v985_v26 = vld [vmem:[#allocation15 + $0x8d8] sm:$0xff]  ;;  %v728_v27 = vld [vmem:[#allocation15 + $0xd0] sm:$0xff] }
 0x2fe   :  { %vm691_vm6 = vcmp.gt.f32.partialorder %v617_v28, 0.0  ;;  %v695_v32 = vmul.f32 0.2, %v617_v28  ;;  %vm693_vm7 = vcmp.gt.f32.partialorder %v688_v29, 0.0  ;;  %v697_v33 = vmul.f32 0.2, %v688_v29 }
 0x2ff   :  { %v2937_v38 = vsel %vm690_vm4, %v615_v24, %v694_v30  ;;  %v2939_v39 = vsel %vm692_vm5, %v686_v25, %v696_v31  ;;  %v992_v24 = vld [vmem:[#allocation15 + $0x910] sm:$0xff]  ;;  %v729_v25 = vld [vmem:[#allocation15 + $0xd8] sm:$0xff] }
 0x300   :  { %v2931_v34 = vsel %vm691_vm6, %v617_v28, %v695_v32  ;;  %v2933_v35 = vsel %vm693_vm7, %v688_v29, %v697_v33  ;;  %v984_v28 = vld [vmem:[#allocation15 + $0x8d0] sm:$0xff]  ;;  %v721_v29 = vld [vmem:[#allocation15 + $0x98] sm:$0xff] }
 0x301   :  { %1320 = vmatprep.mubr.f32.mxu0 %v2931_v34  ;;  %1391 = vmatprep.mubr.f32.mxu1 %v2933_v35  ;;  %v977_v30 = vld [vmem:[#allocation15 + $0x898] sm:$0xff]  ;;  %v720_v31 = vld [vmem:[#allocation15 + $0x90] sm:$0xff] }
 0x302   :  { %1321 = vmatmul.mubr.f32.vlgmr.msra.gmra.mxu0 %v2937_v38  ;;  %1392 = vmatmul.mubr.f32.vlgmr.msra.gmra.mxu1 %v2939_v39  ;;  %v976_v32 = vld [vmem:[#allocation15 + $0x890] sm:$0xff]  ;;  %v713_v33 = vld [vmem:[#allocation15 + $0x58] sm:$0xff] }
 0x303   :  { %1399 = vmatpush1.msra.mxu0 %v824_v36  ;;  %1470 = vmatpush1.msra.mxu1 %v1080_v37  ;;  %v969_v36 = vld [vmem:[#allocation15 + $0x858] sm:$0xff]  ;;  %v712_v37 = vld [vmem:[#allocation15 + $0x50] sm:$0xff] }
 0x304   :  { %1400 = vmatprep.subr.mxu0 %v817_v40  ;;  %1462 = vmatprep.mubr.f32.mxu0 %v2931_v34  ;;  %v968_v40 = vld [vmem:[#allocation15 + $0x850] sm:$0xff] }
 0x305   :  { %1471 = vmatprep.subr.mxu1 %v1073_v41  ;;  %1533 = vmatprep.mubr.f32.mxu1 %v2933_v35  ;;  %v705_v41 = vld [vmem:[#allocation15 + $0x18] sm:$0xff] }
 0x306   :  { %1401 = vmatpush1.msra.mxu0 %v816_v42  ;;  %1472 = vmatpush1.msra.mxu1 %v1072_v43  ;;  %v961_v42 = vld [vmem:[#allocation15 + $0x818] sm:$0xff]  ;;  %v704_v43 = vld [vmem:[#allocation15 + $0x10] sm:$0xff] }
 0x307   :  { %1402 = vmatprep.subr.mxu0 %v809_v44  ;;  %1473 = vmatprep.subr.mxu1 %v1065_v45  ;;  %v960_v44 = vld [vmem:[#allocation15 + $0x810] sm:$0xff]  ;;  %v953_v45 = vld [vmem:[#allocation15 + $0x7d8] sm:$0xff] }
 0x308   :  { %1403 = vmatpush1.msra.mxu0 %v808_v46  ;;  %1474 = vmatpush1.msra.mxu1 %v1064_v47  ;;  %v1209_v46 = vld [vmem:[#allocation15 + $0xfd8] sm:$0xff]  ;;  %v952_v47 = vld [vmem:[#allocation15 + $0x7d0] sm:$0xff] }
 0x309   :  { %1404 = vmatprep.subr.mxu0 %v801_v48  ;;  %1475 = vmatprep.subr.mxu1 %v1057_v49  ;;  %v1208_v48 = vld [vmem:[#allocation15 + $0xfd0] sm:$0xff]  ;;  %v945_v49 = vld [vmem:[#allocation15 + $0x798] sm:$0xff] }
 0x30a   :  { %1405 = vmatpush1.msra.mxu0 %v800_v50  ;;  %1476 = vmatpush1.msra.mxu1 %v1056_v51  ;;  %v1201_v50 = vld [vmem:[#allocation15 + $0xf98] sm:$0xff]  ;;  %v944_v51 = vld [vmem:[#allocation15 + $0x790] sm:$0xff] }
 0x30b   :  { %1406 = vmatprep.subr.mxu0 %v793_v52  ;;  %1477 = vmatprep.subr.mxu1 %v1049_v53  ;;  %v1200_v52 = vld [vmem:[#allocation15 + $0xf90] sm:$0xff]  ;;  %v937_v53 = vld [vmem:[#allocation15 + $0x758] sm:$0xff] }
 0x30c   :  { %1407 = vmatpush1.msra.mxu0 %v792_v54  ;;  %1478 = vmatpush1.msra.mxu1 %v1048_v55  ;;  %v1193_v54 = vld [vmem:[#allocation15 + $0xf58] sm:$0xff]  ;;  %v936_v55 = vld [vmem:[#allocation15 + $0x750] sm:$0xff] }
 0x30d   :  { %1408 = vmatprep.subr.mxu0 %v785_v56  ;;  %1479 = vmatprep.subr.mxu1 %v1041_v57  ;;  %v1192_v56 = vld [vmem:[#allocation15 + $0xf50] sm:$0xff]  ;;  %v929_v57 = vld [vmem:[#allocation15 + $0x718] sm:$0xff] }
 0x30e   :  { %1409 = vmatpush1.msra.mxu0 %v784_v58  ;;  %1480 = vmatpush1.msra.mxu1 %v1040_v61  ;;  %v1185_v58 = vld [vmem:[#allocation15 + $0xf18] sm:$0xff]  ;;  %v928_v61 = vld [vmem:[#allocation15 + $0x710] sm:$0xff] }
 0x30f   :  { %1410 = vmatprep.subr.mxu0 %v777_v63  ;;  %1481 = vmatprep.subr.mxu1 %v1033_v0  ;;  %v1184_v63 = vld [vmem:[#allocation15 + $0xf10] sm:$0xff]  ;;  %v921_v0 = vld [vmem:[#allocation15 + $0x6d8] sm:$0xff] }
 0x310   :  { %1411 = vmatpush1.msra.mxu0 %v776_v1  ;;  %1482 = vmatpush1.msra.mxu1 %v1032_v2  ;;  %v1177_v1 = vld [vmem:[#allocation15 + $0xed8] sm:$0xff]  ;;  %v920_v2 = vld [vmem:[#allocation15 + $0x6d0] sm:$0xff] }
 0x311   :  { %1412 = vmatprep.subr.mxu0 %v769_v3  ;;  %1483 = vmatprep.subr.mxu1 %v1025_v4  ;;  %v1176_v3 = vld [vmem:[#allocation15 + $0xed0] sm:$0xff]  ;;  %v913_v4 = vld [vmem:[#allocation15 + $0x698] sm:$0xff] }
 0x312   :  { %1413 = vmatpush1.msra.mxu0 %v768_v5  ;;  %1484 = vmatpush1.msra.mxu1 %v1024_v6  ;;  %v1169_v5 = vld [vmem:[#allocation15 + $0xe98] sm:$0xff]  ;;  %v912_v6 = vld [vmem:[#allocation15 + $0x690] sm:$0xff] }
 0x313   :  { %1414 = vmatprep.subr.mxu0 %v761_v7  ;;  %1485 = vmatprep.subr.mxu1 %v1017_v8  ;;  %v1168_v7 = vld [vmem:[#allocation15 + $0xe90] sm:$0xff]  ;;  %v905_v8 = vld [vmem:[#allocation15 + $0x658] sm:$0xff] }
 0x314   :  { %1415 = vmatpush1.msra.mxu0 %v760_v9  ;;  %1486 = vmatpush1.msra.mxu1 %v1016_v10  ;;  %v1161_v9 = vld [vmem:[#allocation15 + $0xe58] sm:$0xff]  ;;  %v904_v10 = vld [vmem:[#allocation15 + $0x650] sm:$0xff] }
 0x315   :  { %1416 = vmatprep.subr.mxu0 %v753_v11  ;;  %1487 = vmatprep.subr.mxu1 %v1009_v12  ;;  %v1160_v11 = vld [vmem:[#allocation15 + $0xe50] sm:$0xff]  ;;  %v897_v12 = vld [vmem:[#allocation15 + $0x618] sm:$0xff] }
 0x316   :  { %1417 = vmatpush1.msra.mxu0 %v752_v13  ;;  %1488 = vmatpush1.msra.mxu1 %v1008_v14  ;;  %v1153_v13 = vld [vmem:[#allocation15 + $0xe18] sm:$0xff]  ;;  %v896_v14 = vld [vmem:[#allocation15 + $0x610] sm:$0xff] }
 0x317   :  { %1418 = vmatprep.subr.mxu0 %v745_v16  ;;  %1489 = vmatprep.subr.mxu1 %v1001_v18  ;;  %v1152_v16 = vld [vmem:[#allocation15 + $0xe10] sm:$0xff]  ;;  %v889_v18 = vld [vmem:[#allocation15 + $0x5d8] sm:$0xff] }
 0x318   :  { %1419 = vmatpush1.msra.mxu0 %v744_v19  ;;  %1490 = vmatpush1.msra.mxu1 %v1000_v20  ;;  %v1145_v19 = vld [vmem:[#allocation15 + $0xdd8] sm:$0xff]  ;;  %v888_v20 = vld [vmem:[#allocation15 + $0x5d0] sm:$0xff] }
 0x319   :  { %1420 = vmatprep.subr.mxu0 %v737_v21  ;;  %1491 = vmatprep.subr.mxu1 %v993_v22  ;;  %v1144_v21 = vld [vmem:[#allocation15 + $0xdd0] sm:$0xff]  ;;  %v881_v22 = vld [vmem:[#allocation15 + $0x598] sm:$0xff] }
 0x31a   :  { %1421 = vmatpush1.msra.mxu0 %v736_v23  ;;  %1492 = vmatpush1.msra.mxu1 %v992_v24  ;;  %v1137_v23 = vld [vmem:[#allocation15 + $0xd98] sm:$0xff]  ;;  %v880_v24 = vld [vmem:[#allocation15 + $0x590] sm:$0xff] }
 0x31b   :  { %1422 = vmatprep.subr.mxu0 %v729_v25  ;;  %1493 = vmatprep.subr.mxu1 %v985_v26  ;;  %v1136_v25 = vld [vmem:[#allocation15 + $0xd90] sm:$0xff]  ;;  %v873_v26 = vld [vmem:[#allocation15 + $0x558] sm:$0xff] }
 0x31c   :  { %1423 = vmatpush1.msra.mxu0 %v728_v27  ;;  %1494 = vmatpush1.msra.mxu1 %v984_v28  ;;  %v1129_v27 = vld [vmem:[#allocation15 + $0xd58] sm:$0xff]  ;;  %v872_v28 = vld [vmem:[#allocation15 + $0x550] sm:$0xff] }
 0x31d   :  { %1424 = vmatprep.subr.mxu0 %v721_v29  ;;  %1495 = vmatprep.subr.mxu1 %v977_v30  ;;  %v1128_v29 = vld [vmem:[#allocation15 + $0xd50] sm:$0xff]  ;;  %v865_v30 = vld [vmem:[#allocation15 + $0x518] sm:$0xff] }
 0x31e   :  { %1425 = vmatpush1.msra.mxu0 %v720_v31  ;;  %1496 = vmatpush1.msra.mxu1 %v976_v32  ;;  %v1121_v31 = vld [vmem:[#allocation15 + $0xd18] sm:$0xff]  ;;  %v864_v32 = vld [vmem:[#allocation15 + $0x510] sm:$0xff] }
 0x31f   :  { %1426 = vmatprep.subr.mxu0 %v713_v33  ;;  %1497 = vmatprep.subr.mxu1 %v969_v36  ;;  %v1120_v33 = vld [vmem:[#allocation15 + $0xd10] sm:$0xff]  ;;  %v857_v36 = vld [vmem:[#allocation15 + $0x4d8] sm:$0xff] }
 0x320   :  { %1427 = vmatpush1.msra.mxu0 %v712_v37  ;;  %1498 = vmatpush1.msra.mxu1 %v968_v40  ;;  %v1113_v37 = vld [vmem:[#allocation15 + $0xcd8] sm:$0xff]  ;;  %v856_v40 = vld [vmem:[#allocation15 + $0x4d0] sm:$0xff] }
 0x321   :  { %1428 = vmatprep.subr.mxu0 %v705_v41  ;;  %1499 = vmatprep.subr.mxu1 %v961_v42  ;;  %v1112_v41 = vld [vmem:[#allocation15 + $0xcd0] sm:$0xff]  ;;  %v849_v42 = vld [vmem:[#allocation15 + $0x498] sm:$0xff] }
 0x322   :  { %1429 = vmatpush1.msra.mxu0 %v704_v43  ;;  %1500 = vmatpush1.msra.mxu1 %v960_v44  ;;  %v1105_v43 = vld [vmem:[#allocation15 + $0xc98] sm:$0xff]  ;;  %v848_v44 = vld [vmem:[#allocation15 + $0x490] sm:$0xff] }
 0x323   :  { %1430 = vmatprep.subr.mxu0 %v953_v45  ;;  %1501 = vmatprep.subr.mxu1 %v1209_v46  ;;  %v1104_v45 = vld [vmem:[#allocation15 + $0xc90] sm:$0xff]  ;;  %v841_v46 = vld [vmem:[#allocation15 + $0x458] sm:$0xff] }
 0x324   :  { %1431 = vmatpush2.msra.mxu0 %v952_v47  ;;  %1502 = vmatpush2.msra.mxu1 %v1208_v48  ;;  %v1097_v47 = vld [vmem:[#allocation15 + $0xc58] sm:$0xff]  ;;  %v840_v48 = vld [vmem:[#allocation15 + $0x450] sm:$0xff] }
 0x325   :  { %1432 = vmatprep.subr.mxu0 %v945_v49  ;;  %1503 = vmatprep.subr.mxu1 %v1201_v50  ;;  %v1096_v49 = vld [vmem:[#allocation15 + $0xc50] sm:$0xff]  ;;  %v833_v50 = vld [vmem:[#allocation15 + $0x418] sm:$0xff] }
 0x326   :  { %1433 = vmatpush2.msra.mxu0 %v944_v51  ;;  %1504 = vmatpush2.msra.mxu1 %v1200_v52  ;;  %v1089_v51 = vld [vmem:[#allocation15 + $0xc18] sm:$0xff]  ;;  %v832_v52 = vld [vmem:[#allocation15 + $0x410] sm:$0xff] }
 0x327   :  { %1434 = vmatprep.subr.mxu0 %v937_v53  ;;  %1505 = vmatprep.subr.mxu1 %v1193_v54  ;;  %v1088_v53 = vld [vmem:[#allocation15 + $0xc10] sm:$0xff]  ;;  %v827_v54 = vld [vmem:[#allocation15 + $0x3e8] sm:$0xff] }
 0x328   :  { %1435 = vmatpush2.msra.mxu0 %v936_v55  ;;  %1506 = vmatpush2.msra.mxu1 %v1192_v56  ;;  %v1083_v55 = vld [vmem:[#allocation15 + $0xbe8] sm:$0xff]  ;;  %v826_v56 = vld [vmem:[#allocation15 + $0x3e0] sm:$0xff] }
 0x329   :  { %1436 = vmatprep.subr.mxu0 %v929_v57  ;;  %1507 = vmatprep.subr.mxu1 %v1185_v58  ;;  %v1082_v57 = vld [vmem:[#allocation15 + $0xbe0] sm:$0xff]  ;;  %v819_v58 = vld [vmem:[#allocation15 + $0x3a8] sm:$0xff] }
 0x32a   :  { %1437 = vmatpush2.msra.mxu0 %v928_v61  ;;  %1508 = vmatpush2.msra.mxu1 %v1184_v63  ;;  %v1075_v61 = vld [vmem:[#allocation15 + $0xba8] sm:$0xff]  ;;  %v818_v63 = vld [vmem:[#allocation15 + $0x3a0] sm:$0xff] }
 0x32b   :  { %1438 = vmatprep.subr.mxu0 %v921_v0  ;;  %1509 = vmatprep.subr.mxu1 %v1177_v1  ;;  %v1074_v0 = vld [vmem:[#allocation15 + $0xba0] sm:$0xff]  ;;  %v811_v1 = vld [vmem:[#allocation15 + $0x368] sm:$0xff] }
 0x32c   :  { %1439 = vmatpush2.msra.mxu0 %v920_v2  ;;  %1510 = vmatpush2.msra.mxu1 %v1176_v3  ;;  %v1067_v2 = vld [vmem:[#allocation15 + $0xb68] sm:$0xff]  ;;  %v810_v3 = vld [vmem:[#allocation15 + $0x360] sm:$0xff] }
 0x32d   :  { %1440 = vmatprep.subr.mxu0 %v913_v4  ;;  %1511 = vmatprep.subr.mxu1 %v1169_v5  ;;  %v1066_v4 = vld [vmem:[#allocation15 + $0xb60] sm:$0xff]  ;;  %v803_v5 = vld [vmem:[#allocation15 + $0x328] sm:$0xff] }
 0x32e   :  { %1441 = vmatpush2.msra.mxu0 %v912_v6  ;;  %1512 = vmatpush2.msra.mxu1 %v1168_v7  ;;  %v1059_v6 = vld [vmem:[#allocation15 + $0xb28] sm:$0xff]  ;;  %v802_v7 = vld [vmem:[#allocation15 + $0x320] sm:$0xff] }
 0x32f   :  { %1442 = vmatprep.subr.mxu0 %v905_v8  ;;  %1513 = vmatprep.subr.mxu1 %v1161_v9  ;;  %v1058_v8 = vld [vmem:[#allocation15 + $0xb20] sm:$0xff]  ;;  %v795_v9 = vld [vmem:[#allocation15 + $0x2e8] sm:$0xff] }
 0x330   :  { %1443 = vmatpush2.msra.mxu0 %v904_v10  ;;  %1514 = vmatpush2.msra.mxu1 %v1160_v11  ;;  %v1051_v10 = vld [vmem:[#allocation15 + $0xae8] sm:$0xff]  ;;  %v794_v11 = vld [vmem:[#allocation15 + $0x2e0] sm:$0xff] }
 0x331   :  { %1444 = vmatprep.subr.mxu0 %v897_v12  ;;  %1515 = vmatprep.subr.mxu1 %v1153_v13  ;;  %v1050_v12 = vld [vmem:[#allocation15 + $0xae0] sm:$0xff]  ;;  %v787_v13 = vld [vmem:[#allocation15 + $0x2a8] sm:$0xff] }
 0x332   :  { %1445 = vmatpush2.msra.mxu0 %v896_v14  ;;  %1516 = vmatpush2.msra.mxu1 %v1152_v16  ;;  %v1043_v14 = vld [vmem:[#allocation15 + $0xaa8] sm:$0xff]  ;;  %v786_v16 = vld [vmem:[#allocation15 + $0x2a0] sm:$0xff] }
 0x333   :  { %1446 = vmatprep.subr.mxu0 %v889_v18  ;;  %1517 = vmatprep.subr.mxu1 %v1145_v19  ;;  %v1042_v18 = vld [vmem:[#allocation15 + $0xaa0] sm:$0xff]  ;;  %v779_v19 = vld [vmem:[#allocation15 + $0x268] sm:$0xff] }
 0x334   :  { %1447 = vmatpush2.msra.mxu0 %v888_v20  ;;  %1518 = vmatpush2.msra.mxu1 %v1144_v21  ;;  %v1035_v20 = vld [vmem:[#allocation15 + $0xa68] sm:$0xff]  ;;  %v778_v21 = vld [vmem:[#allocation15 + $0x260] sm:$0xff] }
 0x335   :  { %1448 = vmatprep.subr.mxu0 %v881_v22  ;;  %1519 = vmatprep.subr.mxu1 %v1137_v23  ;;  %v1034_v22 = vld [vmem:[#allocation15 + $0xa60] sm:$0xff]  ;;  %v771_v23 = vld [vmem:[#allocation15 + $0x228] sm:$0xff] }
 0x336   :  { %1449 = vmatpush2.msra.mxu0 %v880_v24  ;;  %1520 = vmatpush2.msra.mxu1 %v1136_v25  ;;  %v1027_v24 = vld [vmem:[#allocation15 + $0xa28] sm:$0xff]  ;;  %v770_v25 = vld [vmem:[#allocation15 + $0x220] sm:$0xff] }
 0x337   :  { %1450 = vmatprep.subr.mxu0 %v873_v26  ;;  %1521 = vmatprep.subr.mxu1 %v1129_v27  ;;  %v1026_v26 = vld [vmem:[#allocation15 + $0xa20] sm:$0xff]  ;;  %v763_v27 = vld [vmem:[#allocation15 + $0x1e8] sm:$0xff] }
 0x338   :  { %1451 = vmatpush2.msra.mxu0 %v872_v28  ;;  %1522 = vmatpush2.msra.mxu1 %v1128_v29  ;;  %v1019_v28 = vld [vmem:[#allocation15 + $0x9e8] sm:$0xff]  ;;  %v762_v29 = vld [vmem:[#allocation15 + $0x1e0] sm:$0xff] }
 0x339   :  { %1452 = vmatprep.subr.mxu0 %v865_v30  ;;  %1523 = vmatprep.subr.mxu1 %v1121_v31  ;;  %v1018_v30 = vld [vmem:[#allocation15 + $0x9e0] sm:$0xff]  ;;  %v755_v31 = vld [vmem:[#allocation15 + $0x1a8] sm:$0xff] }
 0x33a   :  { %1453 = vmatpush2.msra.mxu0 %v864_v32  ;;  %1524 = vmatpush2.msra.mxu1 %v1120_v33  ;;  %v1011_v32 = vld [vmem:[#allocation15 + $0x9a8] sm:$0xff]  ;;  %v754_v33 = vld [vmem:[#allocation15 + $0x1a0] sm:$0xff] }
 0x33b   :  { %1454 = vmatprep.subr.mxu0 %v857_v36  ;;  %1525 = vmatprep.subr.mxu1 %v1113_v37  ;;  %v1010_v36 = vld [vmem:[#allocation15 + $0x9a0] sm:$0xff]  ;;  %v747_v37 = vld [vmem:[#allocation15 + $0x168] sm:$0xff] }
 0x33c   :  { %1455 = vmatpush2.msra.mxu0 %v856_v40  ;;  %1526 = vmatpush2.msra.mxu1 %v1112_v41  ;;  %v1003_v40 = vld [vmem:[#allocation15 + $0x968] sm:$0xff]  ;;  %v746_v41 = vld [vmem:[#allocation15 + $0x160] sm:$0xff] }
 0x33d   :  { %1456 = vmatprep.subr.mxu0 %v849_v42  ;;  %1527 = vmatprep.subr.mxu1 %v1105_v43  ;;  %v1002_v42 = vld [vmem:[#allocation15 + $0x960] sm:$0xff]  ;;  %v739_v43 = vld [vmem:[#allocation15 + $0x128] sm:$0xff] }
 0x33e   :  { %1457 = vmatpush2.msra.mxu0 %v848_v44  ;;  %1528 = vmatpush2.msra.mxu1 %v1104_v45  ;;  %v995_v44 = vld [vmem:[#allocation15 + $0x928] sm:$0xff]  ;;  %v738_v45 = vld [vmem:[#allocation15 + $0x120] sm:$0xff] }
 0x33f   :  { %1458 = vmatprep.subr.mxu0 %v841_v46  ;;  %1529 = vmatprep.subr.mxu1 %v1097_v47  ;;  %v994_v46 = vld [vmem:[#allocation15 + $0x920] sm:$0xff]  ;;  %v731_v47 = vld [vmem:[#allocation15 + $0xe8] sm:$0xff] }
 0x340   :  { %1459 = vmatpush2.msra.mxu0 %v840_v48  ;;  %1530 = vmatpush2.msra.mxu1 %v1096_v49  ;;  %v987_v48 = vld [vmem:[#allocation15 + $0x8e8] sm:$0xff]  ;;  %v730_v49 = vld [vmem:[#allocation15 + $0xe0] sm:$0xff] }
 0x341   :  { %1460 = vmatprep.subr.mxu0 %v833_v50  ;;  %1531 = vmatprep.subr.mxu1 %v1089_v51  ;;  %v986_v50 = vld [vmem:[#allocation15 + $0x8e0] sm:$0xff]  ;;  %v723_v51 = vld [vmem:[#allocation15 + $0xa8] sm:$0xff] }
 0x342   :  { %1461 = vmatpush2.msra.mxu0 %v832_v52  ;;  %1532 = vmatpush2.msra.mxu1 %v1088_v53  ;;  %v979_v52 = vld [vmem:[#allocation15 + $0x8a8] sm:$0xff]  ;;  %v722_v53 = vld [vmem:[#allocation15 + $0xa0] sm:$0xff] }
 0x343   :  { %1463 = vmatmul.mubr.f32.vlgmr.msra.gmra.mxu0 %v2937_v38  ;;  %1534 = vmatmul.mubr.f32.vlgmr.msra.gmra.mxu1 %v2939_v39 }
 0x344   :  { %1540 = vmatprep.subr.mxu0 %v827_v54  ;;  %1611 = vmatprep.subr.mxu1 %v1083_v55  ;;  %v978_v54 = vld [vmem:[#allocation15 + $0x8a0] sm:$0xff]  ;;  %v715_v55 = vld [vmem:[#allocation15 + $0x68] sm:$0xff] }
 0x345   :  { %1541 = vmatpush1.msra.mxu0 %v826_v56  ;;  %1604 = vmatprep.mubr.f32.mxu0 %v2931_v34  ;;  %v971_v56 = vld [vmem:[#allocation15 + $0x868] sm:$0xff] }
 0x346   :  { %1612 = vmatpush1.msra.mxu1 %v1082_v57  ;;  %1675 = vmatprep.mubr.f32.mxu1 %v2933_v35  ;;  %v714_v57 = vld [vmem:[#allocation15 + $0x60] sm:$0xff] }
 0x347   :  { %1542 = vmatprep.subr.mxu0 %v819_v58  ;;  %1613 = vmatprep.subr.mxu1 %v1075_v61  ;;  %v970_v58 = vld [vmem:[#allocation15 + $0x860] sm:$0xff]  ;;  %v707_v61 = vld [vmem:[#allocation15 + $0x28] sm:$0xff] }
 0x348   :  { %1543 = vmatpush1.msra.mxu0 %v818_v63  ;;  %1614 = vmatpush1.msra.mxu1 %v1074_v0  ;;  %v963_v63 = vld [vmem:[#allocation15 + $0x828] sm:$0xff]  ;;  %v706_v0 = vld [vmem:[#allocation15 + $0x20] sm:$0xff] }
 0x349   :  { %1544 = vmatprep.subr.mxu0 %v811_v1  ;;  %1615 = vmatprep.subr.mxu1 %v1067_v2  ;;  %v962_v1 = vld [vmem:[#allocation15 + $0x820] sm:$0xff]  ;;  %v955_v2 = vld [vmem:[#allocation15 + $0x7e8] sm:$0xff] }
 0x34a   :  { %1545 = vmatpush1.msra.mxu0 %v810_v3  ;;  %1616 = vmatpush1.msra.mxu1 %v1066_v4  ;;  %v1211_v3 = vld [vmem:[#allocation15 + $0xfe8] sm:$0xff]  ;;  %v954_v4 = vld [vmem:[#allocation15 + $0x7e0] sm:$0xff] }
 0x34b   :  { %1546 = vmatprep.subr.mxu0 %v803_v5  ;;  %1617 = vmatprep.subr.mxu1 %v1059_v6  ;;  %v1210_v5 = vld [vmem:[#allocation15 + $0xfe0] sm:$0xff]  ;;  %v947_v6 = vld [vmem:[#allocation15 + $0x7a8] sm:$0xff] }
 0x34c   :  { %1547 = vmatpush1.msra.mxu0 %v802_v7  ;;  %1618 = vmatpush1.msra.mxu1 %v1058_v8  ;;  %v1203_v7 = vld [vmem:[#allocation15 + $0xfa8] sm:$0xff]  ;;  %v946_v8 = vld [vmem:[#allocation15 + $0x7a0] sm:$0xff] }
 0x34d   :  { %1548 = vmatprep.subr.mxu0 %v795_v9  ;;  %1619 = vmatprep.subr.mxu1 %v1051_v10  ;;  %v1202_v9 = vld [vmem:[#allocation15 + $0xfa0] sm:$0xff]  ;;  %v939_v10 = vld [vmem:[#allocation15 + $0x768] sm:$0xff] }
 0x34e   :  { %1549 = vmatpush1.msra.mxu0 %v794_v11  ;;  %1620 = vmatpush1.msra.mxu1 %v1050_v12  ;;  %v1195_v11 = vld [vmem:[#allocation15 + $0xf68] sm:$0xff]  ;;  %v938_v12 = vld [vmem:[#allocation15 + $0x760] sm:$0xff] }
 0x34f   :  { %1550 = vmatprep.subr.mxu0 %v787_v13  ;;  %1621 = vmatprep.subr.mxu1 %v1043_v14  ;;  %v1194_v13 = vld [vmem:[#allocation15 + $0xf60] sm:$0xff]  ;;  %v931_v14 = vld [vmem:[#allocation15 + $0x728] sm:$0xff] }
 0x350   :  { %1551 = vmatpush1.msra.mxu0 %v786_v16  ;;  %1622 = vmatpush1.msra.mxu1 %v1042_v18  ;;  %v1187_v16 = vld [vmem:[#allocation15 + $0xf28] sm:$0xff]  ;;  %v930_v18 = vld [vmem:[#allocation15 + $0x720] sm:$0xff] }
 0x351   :  { %1552 = vmatprep.subr.mxu0 %v779_v19  ;;  %1623 = vmatprep.subr.mxu1 %v1035_v20  ;;  %v1186_v19 = vld [vmem:[#allocation15 + $0xf20] sm:$0xff]  ;;  %v923_v20 = vld [vmem:[#allocation15 + $0x6e8] sm:$0xff] }
 0x352   :  { %1553 = vmatpush1.msra.mxu0 %v778_v21  ;;  %1624 = vmatpush1.msra.mxu1 %v1034_v22  ;;  %v1179_v21 = vld [vmem:[#allocation15 + $0xee8] sm:$0xff]  ;;  %v922_v22 = vld [vmem:[#allocation15 + $0x6e0] sm:$0xff] }
 0x353   :  { %1554 = vmatprep.subr.mxu0 %v771_v23  ;;  %1625 = vmatprep.subr.mxu1 %v1027_v24  ;;  %v1178_v23 = vld [vmem:[#allocation15 + $0xee0] sm:$0xff]  ;;  %v915_v24 = vld [vmem:[#allocation15 + $0x6a8] sm:$0xff] }
 0x354   :  { %1555 = vmatpush1.msra.mxu0 %v770_v25  ;;  %1626 = vmatpush1.msra.mxu1 %v1026_v26  ;;  %v1171_v25 = vld [vmem:[#allocation15 + $0xea8] sm:$0xff]  ;;  %v914_v26 = vld [vmem:[#allocation15 + $0x6a0] sm:$0xff] }
 0x355   :  { %1556 = vmatprep.subr.mxu0 %v763_v27  ;;  %1627 = vmatprep.subr.mxu1 %v1019_v28  ;;  %v1170_v27 = vld [vmem:[#allocation15 + $0xea0] sm:$0xff]  ;;  %v907_v28 = vld [vmem:[#allocation15 + $0x668] sm:$0xff] }
 0x356   :  { %1557 = vmatpush1.msra.mxu0 %v762_v29  ;;  %1628 = vmatpush1.msra.mxu1 %v1018_v30  ;;  %v1163_v29 = vld [vmem:[#allocation15 + $0xe68] sm:$0xff]  ;;  %v906_v30 = vld [vmem:[#allocation15 + $0x660] sm:$0xff] }
 0x357   :  { %1558 = vmatprep.subr.mxu0 %v755_v31  ;;  %1629 = vmatprep.subr.mxu1 %v1011_v32  ;;  %v1162_v31 = vld [vmem:[#allocation15 + $0xe60] sm:$0xff]  ;;  %v899_v32 = vld [vmem:[#allocation15 + $0x628] sm:$0xff] }
 0x358   :  { %1559 = vmatpush1.msra.mxu0 %v754_v33  ;;  %1630 = vmatpush1.msra.mxu1 %v1010_v36  ;;  %v1155_v33 = vld [vmem:[#allocation15 + $0xe28] sm:$0xff]  ;;  %v898_v36 = vld [vmem:[#allocation15 + $0x620] sm:$0xff] }
 0x359   :  { %1560 = vmatprep.subr.mxu0 %v747_v37  ;;  %1631 = vmatprep.subr.mxu1 %v1003_v40  ;;  %v1154_v37 = vld [vmem:[#allocation15 + $0xe20] sm:$0xff]  ;;  %v891_v40 = vld [vmem:[#allocation15 + $0x5e8] sm:$0xff] }
 0x35a   :  { %1561 = vmatpush1.msra.mxu0 %v746_v41  ;;  %1632 = vmatpush1.msra.mxu1 %v1002_v42  ;;  %v1147_v41 = vld [vmem:[#allocation15 + $0xde8] sm:$0xff]  ;;  %v890_v42 = vld [vmem:[#allocation15 + $0x5e0] sm:$0xff] }
 0x35b   :  { %1562 = vmatprep.subr.mxu0 %v739_v43  ;;  %1633 = vmatprep.subr.mxu1 %v995_v44  ;;  %v1146_v43 = vld [vmem:[#allocation15 + $0xde0] sm:$0xff]  ;;  %v883_v44 = vld [vmem:[#allocation15 + $0x5a8] sm:$0xff] }
 0x35c   :  { %1563 = vmatpush1.msra.mxu0 %v738_v45  ;;  %1634 = vmatpush1.msra.mxu1 %v994_v46  ;;  %v1139_v45 = vld [vmem:[#allocation15 + $0xda8] sm:$0xff]  ;;  %v882_v46 = vld [vmem:[#allocation15 + $0x5a0] sm:$0xff] }
 0x35d   :  { %1564 = vmatprep.subr.mxu0 %v731_v47  ;;  %1635 = vmatprep.subr.mxu1 %v987_v48  ;;  %v1138_v47 = vld [vmem:[#allocation15 + $0xda0] sm:$0xff]  ;;  %v875_v48 = vld [vmem:[#allocation15 + $0x568] sm:$0xff] }
 0x35e   :  { %1565 = vmatpush1.msra.mxu0 %v730_v49  ;;  %1636 = vmatpush1.msra.mxu1 %v986_v50  ;;  %v1131_v49 = vld [vmem:[#allocation15 + $0xd68] sm:$0xff]  ;;  %v874_v50 = vld [vmem:[#allocation15 + $0x560] sm:$0xff] }
 0x35f   :  { %1566 = vmatprep.subr.mxu0 %v723_v51  ;;  %1637 = vmatprep.subr.mxu1 %v979_v52  ;;  %v1130_v51 = vld [vmem:[#allocation15 + $0xd60] sm:$0xff]  ;;  %v867_v52 = vld [vmem:[#allocation15 + $0x528] sm:$0xff] }
 0x360   :  { %1567 = vmatpush1.msra.mxu0 %v722_v53  ;;  %1638 = vmatpush1.msra.mxu1 %v978_v54  ;;  %v1123_v53 = vld [vmem:[#allocation15 + $0xd28] sm:$0xff]  ;;  %v866_v54 = vld [vmem:[#allocation15 + $0x520] sm:$0xff] }
 0x361   :  { %1568 = vmatprep.subr.mxu0 %v715_v55  ;;  %1639 = vmatprep.subr.mxu1 %v971_v56  ;;  %v1122_v55 = vld [vmem:[#allocation15 + $0xd20] sm:$0xff]  ;;  %v859_v56 = vld [vmem:[#allocation15 + $0x4e8] sm:$0xff] }
 0x362   :  { %1569 = vmatpush1.msra.mxu0 %v714_v57  ;;  %1640 = vmatpush1.msra.mxu1 %v970_v58  ;;  %v1115_v57 = vld [vmem:[#allocation15 + $0xce8] sm:$0xff]  ;;  %v858_v58 = vld [vmem:[#allocation15 + $0x4e0] sm:$0xff] }
 0x363   :  { %1570 = vmatprep.subr.mxu0 %v707_v61  ;;  %1641 = vmatprep.subr.mxu1 %v963_v63  ;;  %v1114_v61 = vld [vmem:[#allocation15 + $0xce0] sm:$0xff]  ;;  %v851_v63 = vld [vmem:[#allocation15 + $0x4a8] sm:$0xff] }
 0x364   :  { %1571 = vmatpush1.msra.mxu0 %v706_v0  ;;  %1642 = vmatpush1.msra.mxu1 %v962_v1  ;;  %v1107_v0 = vld [vmem:[#allocation15 + $0xca8] sm:$0xff]  ;;  %v850_v1 = vld [vmem:[#allocation15 + $0x4a0] sm:$0xff] }
 0x365   :  { %1572 = vmatprep.subr.mxu0 %v955_v2  ;;  %1643 = vmatprep.subr.mxu1 %v1211_v3  ;;  %v1106_v2 = vld [vmem:[#allocation15 + $0xca0] sm:$0xff]  ;;  %v843_v3 = vld [vmem:[#allocation15 + $0x468] sm:$0xff] }
 0x366   :  { %1573 = vmatpush2.msra.mxu0 %v954_v4  ;;  %1644 = vmatpush2.msra.mxu1 %v1210_v5  ;;  %v1099_v4 = vld [vmem:[#allocation15 + $0xc68] sm:$0xff]  ;;  %v842_v5 = vld [vmem:[#allocation15 + $0x460] sm:$0xff] }
 0x367   :  { %1574 = vmatprep.subr.mxu0 %v947_v6  ;;  %1645 = vmatprep.subr.mxu1 %v1203_v7  ;;  %v1098_v6 = vld [vmem:[#allocation15 + $0xc60] sm:$0xff]  ;;  %v835_v7 = vld [vmem:[#allocation15 + $0x428] sm:$0xff] }
 0x368   :  { %1575 = vmatpush2.msra.mxu0 %v946_v8  ;;  %1646 = vmatpush2.msra.mxu1 %v1202_v9  ;;  %v1091_v8 = vld [vmem:[#allocation15 + $0xc28] sm:$0xff]  ;;  %v834_v9 = vld [vmem:[#allocation15 + $0x420] sm:$0xff] }
 0x369   :  { %1576 = vmatprep.subr.mxu0 %v939_v10  ;;  %1647 = vmatprep.subr.mxu1 %v1195_v11  ;;  %v1090_v10 = vld [vmem:[#allocation15 + $0xc20] sm:$0xff]  ;;  %v829_v11 = vld [vmem:[#allocation15 + $0x3f8] sm:$0xff] }
 0x36a   :  { %1577 = vmatpush2.msra.mxu0 %v938_v12  ;;  %1648 = vmatpush2.msra.mxu1 %v1194_v13  ;;  %v1085_v12 = vld [vmem:[#allocation15 + $0xbf8] sm:$0xff]  ;;  %v828_v13 = vld [vmem:[#allocation15 + $0x3f0] sm:$0xff] }
 0x36b   :  { %1578 = vmatprep.subr.mxu0 %v931_v14  ;;  %1649 = vmatprep.subr.mxu1 %v1187_v16  ;;  %v1084_v14 = vld [vmem:[#allocation15 + $0xbf0] sm:$0xff]  ;;  %v821_v16 = vld [vmem:[#allocation15 + $0x3b8] sm:$0xff] }
 0x36c   :  { %1579 = vmatpush2.msra.mxu0 %v930_v18  ;;  %1650 = vmatpush2.msra.mxu1 %v1186_v19  ;;  %v1077_v18 = vld [vmem:[#allocation15 + $0xbb8] sm:$0xff]  ;;  %v820_v19 = vld [vmem:[#allocation15 + $0x3b0] sm:$0xff] }
 0x36d   :  { %1580 = vmatprep.subr.mxu0 %v923_v20  ;;  %1651 = vmatprep.subr.mxu1 %v1179_v21  ;;  %v1076_v20 = vld [vmem:[#allocation15 + $0xbb0] sm:$0xff]  ;;  %v813_v21 = vld [vmem:[#allocation15 + $0x378] sm:$0xff] }
 0x36e   :  { %1581 = vmatpush2.msra.mxu0 %v922_v22  ;;  %1652 = vmatpush2.msra.mxu1 %v1178_v23  ;;  %v1069_v22 = vld [vmem:[#allocation15 + $0xb78] sm:$0xff]  ;;  %v812_v23 = vld [vmem:[#allocation15 + $0x370] sm:$0xff] }
 0x36f   :  { %1582 = vmatprep.subr.mxu0 %v915_v24  ;;  %1653 = vmatprep.subr.mxu1 %v1171_v25  ;;  %v1068_v24 = vld [vmem:[#allocation15 + $0xb70] sm:$0xff]  ;;  %v805_v25 = vld [vmem:[#allocation15 + $0x338] sm:$0xff] }
 0x370   :  { %1583 = vmatpush2.msra.mxu0 %v914_v26  ;;  %1654 = vmatpush2.msra.mxu1 %v1170_v27  ;;  %v1061_v26 = vld [vmem:[#allocation15 + $0xb38] sm:$0xff]  ;;  %v804_v27 = vld [vmem:[#allocation15 + $0x330] sm:$0xff] }
 0x371   :  { %1584 = vmatprep.subr.mxu0 %v907_v28  ;;  %1655 = vmatprep.subr.mxu1 %v1163_v29  ;;  %v1060_v28 = vld [vmem:[#allocation15 + $0xb30] sm:$0xff]  ;;  %v1053_v29 = vld [vmem:[#allocation15 + $0xaf8] sm:$0xff] }
 0x372   :  { %1585 = vmatpush2.msra.mxu0 %v906_v30  ;;  %1656 = vmatpush2.msra.mxu1 %v1162_v31  ;;  %v1052_v30 = vld [vmem:[#allocation15 + $0xaf0] sm:$0xff]  ;;  %v789_v31 = vld [vmem:[#allocation15 + $0x2b8] sm:$0xff] }
 0x373   :  { %1586 = vmatprep.subr.mxu0 %v899_v32  ;;  %1657 = vmatprep.subr.mxu1 %v1155_v33  ;;  %v1045_v32 = vld [vmem:[#allocation15 + $0xab8] sm:$0xff]  ;;  %v788_v33 = vld [vmem:[#allocation15 + $0x2b0] sm:$0xff] }
 0x374   :  { %1587 = vmatpush2.msra.mxu0 %v898_v36  ;;  %1658 = vmatpush2.msra.mxu1 %v1154_v37  ;;  %v1044_v36 = vld [vmem:[#allocation15 + $0xab0] sm:$0xff]  ;;  %v781_v37 = vld [vmem:[#allocation15 + $0x278] sm:$0xff] }
 0x375   :  { %1588 = vmatprep.subr.mxu0 %v891_v40  ;;  %1659 = vmatprep.subr.mxu1 %v1147_v41  ;;  %v1037_v40 = vld [vmem:[#allocation15 + $0xa78] sm:$0xff]  ;;  %v780_v41 = vld [vmem:[#allocation15 + $0x270] sm:$0xff] }
 0x376   :  { %1589 = vmatpush2.msra.mxu0 %v890_v42  ;;  %1660 = vmatpush2.msra.mxu1 %v1146_v43  ;;  %v1036_v42 = vld [vmem:[#allocation15 + $0xa70] sm:$0xff]  ;;  %v773_v43 = vld [vmem:[#allocation15 + $0x238] sm:$0xff] }
 0x377   :  { %1590 = vmatprep.subr.mxu0 %v883_v44  ;;  %1661 = vmatprep.subr.mxu1 %v1139_v45  ;;  %v1029_v44 = vld [vmem:[#allocation15 + $0xa38] sm:$0xff]  ;;  %v772_v45 = vld [vmem:[#allocation15 + $0x230] sm:$0xff] }
 0x378   :  { %1591 = vmatpush2.msra.mxu0 %v882_v46  ;;  %1662 = vmatpush2.msra.mxu1 %v1138_v47  ;;  %v1028_v46 = vld [vmem:[#allocation15 + $0xa30] sm:$0xff]  ;;  %v765_v47 = vld [vmem:[#allocation15 + $0x1f8] sm:$0xff] }
 0x379   :  { %1592 = vmatprep.subr.mxu0 %v875_v48  ;;  %1663 = vmatprep.subr.mxu1 %v1131_v49  ;;  %v1021_v48 = vld [vmem:[#allocation15 + $0x9f8] sm:$0xff]  ;;  %v764_v49 = vld [vmem:[#allocation15 + $0x1f0] sm:$0xff] }
 0x37a   :  { %1593 = vmatpush2.msra.mxu0 %v874_v50  ;;  %1664 = vmatpush2.msra.mxu1 %v1130_v51  ;;  %v1020_v50 = vld [vmem:[#allocation15 + $0x9f0] sm:$0xff]  ;;  %v757_v51 = vld [vmem:[#allocation15 + $0x1b8] sm:$0xff] }
 0x37b   :  { %1594 = vmatprep.subr.mxu0 %v867_v52  ;;  %1665 = vmatprep.subr.mxu1 %v1123_v53  ;;  %v1013_v52 = vld [vmem:[#allocation15 + $0x9b8] sm:$0xff]  ;;  %v756_v53 = vld [vmem:[#allocation15 + $0x1b0] sm:$0xff] }
 0x37c   :  { %1595 = vmatpush2.msra.mxu0 %v866_v54  ;;  %1666 = vmatpush2.msra.mxu1 %v1122_v55  ;;  %v1012_v54 = vld [vmem:[#allocation15 + $0x9b0] sm:$0xff]  ;;  %v749_v55 = vld [vmem:[#allocation15 + $0x178] sm:$0xff] }
 0x37d   :  { %1596 = vmatprep.subr.mxu0 %v859_v56  ;;  %1667 = vmatprep.subr.mxu1 %v1115_v57  ;;  %v1005_v56 = vld [vmem:[#allocation15 + $0x978] sm:$0xff]  ;;  %v748_v57 = vld [vmem:[#allocation15 + $0x170] sm:$0xff] }
 0x37e   :  { %1597 = vmatpush2.msra.mxu0 %v858_v58  ;;  %1668 = vmatpush2.msra.mxu1 %v1114_v61  ;;  %v1004_v58 = vld [vmem:[#allocation15 + $0x970] sm:$0xff]  ;;  %v741_v61 = vld [vmem:[#allocation15 + $0x138] sm:$0xff] }
 0x37f   :  { %1598 = vmatprep.subr.mxu0 %v851_v63  ;;  %1669 = vmatprep.subr.mxu1 %v1107_v0  ;;  %v997_v63 = vld [vmem:[#allocation15 + $0x938] sm:$0xff]  ;;  %v740_v0 = vld [vmem:[#allocation15 + $0x130] sm:$0xff] }
 0x380   :  { %1599 = vmatpush2.msra.mxu0 %v850_v1  ;;  %1670 = vmatpush2.msra.mxu1 %v1106_v2  ;;  %v996_v1 = vld [vmem:[#allocation15 + $0x930] sm:$0xff]  ;;  %v733_v2 = vld [vmem:[#allocation15 + $0xf8] sm:$0xff] }
 0x381   :  { %1600 = vmatprep.subr.mxu0 %v843_v3  ;;  %1671 = vmatprep.subr.mxu1 %v1099_v4  ;;  %v989_v3 = vld [vmem:[#allocation15 + $0x8f8] sm:$0xff]  ;;  %v732_v4 = vld [vmem:[#allocation15 + $0xf0] sm:$0xff] }
 0x382   :  { %1601 = vmatpush2.msra.mxu0 %v842_v5  ;;  %1672 = vmatpush2.msra.mxu1 %v1098_v6  ;;  %v988_v5 = vld [vmem:[#allocation15 + $0x8f0] sm:$0xff]  ;;  %v725_v6 = vld [vmem:[#allocation15 + $0xb8] sm:$0xff] }
 0x383   :  { %1602 = vmatprep.subr.mxu0 %v835_v7  ;;  %1673 = vmatprep.subr.mxu1 %v1091_v8  ;;  %v981_v7 = vld [vmem:[#allocation15 + $0x8b8] sm:$0xff]  ;;  %v724_v8 = vld [vmem:[#allocation15 + $0xb0] sm:$0xff] }
 0x384   :  { %1603 = vmatpush2.msra.mxu0 %v834_v9  ;;  %1674 = vmatpush2.msra.mxu1 %v1090_v10  ;;  %v980_v9 = vld [vmem:[#allocation15 + $0x8b0] sm:$0xff]  ;;  %v717_v10 = vld [vmem:[#allocation15 + $0x78] sm:$0xff] }
 0x385   :  { %1605 = vmatmul.mubr.f32.vlgmr.msra.gmra.mxu0 %v2937_v38  ;;  %1676 = vmatmul.mubr.f32.vlgmr.msra.gmra.mxu1 %v2939_v39 }
 0x386   :  { %1682 = vmatprep.subr.mxu0 %v829_v11  ;;  %1753 = vmatprep.subr.mxu1 %v1085_v12  ;;  %v973_v11 = vld [vmem:[#allocation15 + $0x878] sm:$0xff]  ;;  %v716_v12 = vld [vmem:[#allocation15 + $0x70] sm:$0xff] }
 0x387   :  { %1683 = vmatpush1.msra.mxu0 %v828_v13  ;;  %1746 = vmatprep.mubr.f32.mxu0 %v2931_v34  ;;  %v797_v34 = vld [vmem:[#allocation15 + $0x2f8] sm:$0xff]  ;;  %v972_v13 = vld [vmem:[#allocation15 + $0x870] sm:$0xff] }
 0x388   :  { %1754 = vmatpush1.msra.mxu1 %v1084_v14  ;;  %1817 = vmatprep.mubr.f32.mxu1 %v2933_v35  ;;  %v796_v35 = vld [vmem:[#allocation15 + $0x2f0] sm:$0xff]  ;;  %v709_v14 = vld [vmem:[#allocation15 + $0x38] sm:$0xff] }
 0x389   :  { %1684 = vmatprep.subr.mxu0 %v821_v16  ;;  %1755 = vmatprep.subr.mxu1 %v1077_v18  ;;  %v965_v16 = vld [vmem:[#allocation15 + $0x838] sm:$0xff]  ;;  %v708_v18 = vld [vmem:[#allocation15 + $0x30] sm:$0xff] }
 0x38a   :  { %1685 = vmatpush1.msra.mxu0 %v820_v19  ;;  %1756 = vmatpush1.msra.mxu1 %v1076_v20  ;;  %v964_v19 = vld [vmem:[#allocation15 + $0x830] sm:$0xff]  ;;  %v957_v20 = vld [vmem:[#allocation15 + $0x7f8] sm:$0xff] }
 0x38b   :  { %1686 = vmatprep.subr.mxu0 %v813_v21  ;;  %1757 = vmatprep.subr.mxu1 %v1069_v22  ;;  %v1213_v21 = vld [vmem:[#allocation15 + $0xff8] sm:$0xff]  ;;  %v956_v22 = vld [vmem:[#allocation15 + $0x7f0] sm:$0xff] }
 0x38c   :  { %1687 = vmatpush1.msra.mxu0 %v812_v23  ;;  %1758 = vmatpush1.msra.mxu1 %v1068_v24  ;;  %v1212_v23 = vld [vmem:[#allocation15 + $0xff0] sm:$0xff]  ;;  %v949_v24 = vld [vmem:[#allocation15 + $0x7b8] sm:$0xff] }
 0x38d   :  { %1688 = vmatprep.subr.mxu0 %v805_v25  ;;  %1759 = vmatprep.subr.mxu1 %v1061_v26  ;;  %v1205_v25 = vld [vmem:[#allocation15 + $0xfb8] sm:$0xff]  ;;  %v948_v26 = vld [vmem:[#allocation15 + $0x7b0] sm:$0xff] }
 0x38e   :  { %1689 = vmatpush1.msra.mxu0 %v804_v27  ;;  %1760 = vmatpush1.msra.mxu1 %v1060_v28  ;;  %v1204_v27 = vld [vmem:[#allocation15 + $0xfb0] sm:$0xff]  ;;  %v941_v28 = vld [vmem:[#allocation15 + $0x778] sm:$0xff] }
 0x38f   :  { %1690 = vmatprep.subr.mxu0 %v797_v34  ;;  %1761 = vmatprep.subr.mxu1 %v1053_v29  ;;  %v1197_v34 = vld [vmem:[#allocation15 + $0xf78] sm:$0xff]  ;;  %v940_v29 = vld [vmem:[#allocation15 + $0x770] sm:$0xff] }
 0x390   :  { %1691 = vmatpush1.msra.mxu0 %v796_v35  ;;  %1762 = vmatpush1.msra.mxu1 %v1052_v30  ;;  %v1196_v35 = vld [vmem:[#allocation15 + $0xf70] sm:$0xff]  ;;  %v933_v30 = vld [vmem:[#allocation15 + $0x738] sm:$0xff] }
 0x391   :  { %1692 = vmatprep.subr.mxu0 %v789_v31  ;;  %1763 = vmatprep.subr.mxu1 %v1045_v32  ;;  %v1189_v31 = vld [vmem:[#allocation15 + $0xf38] sm:$0xff]  ;;  %v932_v32 = vld [vmem:[#allocation15 + $0x730] sm:$0xff] }
 0x392   :  { %1693 = vmatpush1.msra.mxu0 %v788_v33  ;;  %1764 = vmatpush1.msra.mxu1 %v1044_v36  ;;  %v1188_v33 = vld [vmem:[#allocation15 + $0xf30] sm:$0xff]  ;;  %v925_v36 = vld [vmem:[#allocation15 + $0x6f8] sm:$0xff] }
 0x393   :  { %1694 = vmatprep.subr.mxu0 %v781_v37  ;;  %1765 = vmatprep.subr.mxu1 %v1037_v40  ;;  %v1181_v37 = vld [vmem:[#allocation15 + $0xef8] sm:$0xff]  ;;  %v924_v40 = vld [vmem:[#allocation15 + $0x6f0] sm:$0xff] }
 0x394   :  { %1695 = vmatpush1.msra.mxu0 %v780_v41  ;;  %1766 = vmatpush1.msra.mxu1 %v1036_v42  ;;  %v1180_v41 = vld [vmem:[#allocation15 + $0xef0] sm:$0xff]  ;;  %v917_v42 = vld [vmem:[#allocation15 + $0x6b8] sm:$0xff] }
 0x395   :  { %1696 = vmatprep.subr.mxu0 %v773_v43  ;;  %1767 = vmatprep.subr.mxu1 %v1029_v44  ;;  %v1173_v43 = vld [vmem:[#allocation15 + $0xeb8] sm:$0xff]  ;;  %v916_v44 = vld [vmem:[#allocation15 + $0x6b0] sm:$0xff] }
 0x396   :  { %1697 = vmatpush1.msra.mxu0 %v772_v45  ;;  %1768 = vmatpush1.msra.mxu1 %v1028_v46  ;;  %v1172_v45 = vld [vmem:[#allocation15 + $0xeb0] sm:$0xff]  ;;  %v909_v46 = vld [vmem:[#allocation15 + $0x678] sm:$0xff] }
 0x397   :  { %1698 = vmatprep.subr.mxu0 %v765_v47  ;;  %1769 = vmatprep.subr.mxu1 %v1021_v48  ;;  %v1165_v47 = vld [vmem:[#allocation15 + $0xe78] sm:$0xff]  ;;  %v908_v48 = vld [vmem:[#allocation15 + $0x670] sm:$0xff] }
 0x398   :  { %1699 = vmatpush1.msra.mxu0 %v764_v49  ;;  %1770 = vmatpush1.msra.mxu1 %v1020_v50  ;;  %v1164_v49 = vld [vmem:[#allocation15 + $0xe70] sm:$0xff]  ;;  %v901_v50 = vld [vmem:[#allocation15 + $0x638] sm:$0xff] }
 0x399   :  { %1700 = vmatprep.subr.mxu0 %v757_v51  ;;  %1771 = vmatprep.subr.mxu1 %v1013_v52  ;;  %v1157_v51 = vld [vmem:[#allocation15 + $0xe38] sm:$0xff]  ;;  %v900_v52 = vld [vmem:[#allocation15 + $0x630] sm:$0xff] }
 0x39a   :  { %1701 = vmatpush1.msra.mxu0 %v756_v53  ;;  %1772 = vmatpush1.msra.mxu1 %v1012_v54  ;;  %v1156_v53 = vld [vmem:[#allocation15 + $0xe30] sm:$0xff]  ;;  %v893_v54 = vld [vmem:[#allocation15 + $0x5f8] sm:$0xff] }
 0x39b   :  { %1702 = vmatprep.subr.mxu0 %v749_v55  ;;  %1773 = vmatprep.subr.mxu1 %v1005_v56  ;;  %v1149_v55 = vld [vmem:[#allocation15 + $0xdf8] sm:$0xff]  ;;  %v892_v56 = vld [vmem:[#allocation15 + $0x5f0] sm:$0xff] }
 0x39c   :  { %1703 = vmatpush1.msra.mxu0 %v748_v57  ;;  %1774 = vmatpush1.msra.mxu1 %v1004_v58  ;;  %v1148_v57 = vld [vmem:[#allocation15 + $0xdf0] sm:$0xff]  ;;  %v885_v58 = vld [vmem:[#allocation15 + $0x5b8] sm:$0xff] }
 0x39d   :  { %1704 = vmatprep.subr.mxu0 %v741_v61  ;;  %1775 = vmatprep.subr.mxu1 %v997_v63  ;;  %v1141_v61 = vld [vmem:[#allocation15 + $0xdb8] sm:$0xff]  ;;  %v884_v63 = vld [vmem:[#allocation15 + $0x5b0] sm:$0xff] }
 0x39e   :  { %1705 = vmatpush1.msra.mxu0 %v740_v0  ;;  %1776 = vmatpush1.msra.mxu1 %v996_v1  ;;  %v1140_v0 = vld [vmem:[#allocation15 + $0xdb0] sm:$0xff]  ;;  %v877_v1 = vld [vmem:[#allocation15 + $0x578] sm:$0xff] }
 0x39f   :  { %1706 = vmatprep.subr.mxu0 %v733_v2  ;;  %1777 = vmatprep.subr.mxu1 %v989_v3  ;;  %v1133_v2 = vld [vmem:[#allocation15 + $0xd78] sm:$0xff]  ;;  %v876_v3 = vld [vmem:[#allocation15 + $0x570] sm:$0xff] }
 0x3a0   :  { %1707 = vmatpush1.msra.mxu0 %v732_v4  ;;  %1778 = vmatpush1.msra.mxu1 %v988_v5  ;;  %v1132_v4 = vld [vmem:[#allocation15 + $0xd70] sm:$0xff]  ;;  %v869_v5 = vld [vmem:[#allocation15 + $0x538] sm:$0xff] }
 0x3a1   :  { %1708 = vmatprep.subr.mxu0 %v725_v6  ;;  %1779 = vmatprep.subr.mxu1 %v981_v7  ;;  %v1125_v6 = vld [vmem:[#allocation15 + $0xd38] sm:$0xff]  ;;  %v868_v7 = vld [vmem:[#allocation15 + $0x530] sm:$0xff] }
 0x3a2   :  { %1709 = vmatpush1.msra.mxu0 %v724_v8  ;;  %1780 = vmatpush1.msra.mxu1 %v980_v9  ;;  %v1124_v8 = vld [vmem:[#allocation15 + $0xd30] sm:$0xff]  ;;  %v861_v9 = vld [vmem:[#allocation15 + $0x4f8] sm:$0xff] }
 0x3a3   :  { %1710 = vmatprep.subr.mxu0 %v717_v10  ;;  %1781 = vmatprep.subr.mxu1 %v973_v11  ;;  %v1117_v10 = vld [vmem:[#allocation15 + $0xcf8] sm:$0xff]  ;;  %v860_v11 = vld [vmem:[#allocation15 + $0x4f0] sm:$0xff] }
 0x3a4   :  { %1711 = vmatpush1.msra.mxu0 %v716_v12  ;;  %1782 = vmatpush1.msra.mxu1 %v972_v13  ;;  %v1116_v12 = vld [vmem:[#allocation15 + $0xcf0] sm:$0xff]  ;;  %v853_v13 = vld [vmem:[#allocation15 + $0x4b8] sm:$0xff] }
 0x3a5   :  { %1712 = vmatprep.subr.mxu0 %v709_v14  ;;  %1783 = vmatprep.subr.mxu1 %v965_v16  ;;  %v1109_v14 = vld [vmem:[#allocation15 + $0xcb8] sm:$0xff]  ;;  %v852_v16 = vld [vmem:[#allocation15 + $0x4b0] sm:$0xff] }
 0x3a6   :  { %1713 = vmatpush1.msra.mxu0 %v708_v18  ;;  %1784 = vmatpush1.msra.mxu1 %v964_v19  ;;  %v1108_v18 = vld [vmem:[#allocation15 + $0xcb0] sm:$0xff]  ;;  %v845_v19 = vld [vmem:[#allocation15 + $0x478] sm:$0xff] }
 0x3a7   :  { %1714 = vmatprep.subr.mxu0 %v957_v20  ;;  %1785 = vmatprep.subr.mxu1 %v1213_v21  ;;  %v1101_v20 = vld [vmem:[#allocation15 + $0xc78] sm:$0xff]  ;;  %v2953_v21 = vld [vmem:[#allocation17] sm:$0xff] }
 0x3a8   :  { %1715 = vmatpush2.msra.mxu0 %v956_v22  ;;  %1786 = vmatpush2.msra.mxu1 %v1212_v23  ;;  %v844_v22 = vld [vmem:[#allocation15 + $0x470] sm:$0xff] }
 0x3a9   :  { %1716 = vmatprep.subr.mxu0 %v949_v24  ;;  %1787 = vmatprep.subr.mxu1 %v1205_v25  ;;  %v1100_v23 = vld [vmem:[#allocation15 + $0xc70] sm:$0xff]  ;;  %v1223_v24 = vrot.slane %v2953_v21, %v2919_v62  ;;  %v837_v25 = vld [vmem:[#allocation15 + $0x438] sm:$0xff] }
 0x3aa   :  { %1717 = vmatpush2.msra.mxu0 %v948_v26  ;;  %1788 = vmatpush2.msra.mxu1 %v1204_v27  ;;  %v1093_v26 = vld [vmem:[#allocation15 + $0xc38] sm:$0xff] }
 0x3ab   :  { %1718 = vmatprep.subr.mxu0 %v941_v28  ;;  %1789 = vmatprep.subr.mxu1 %v1197_v34  ;;  %v836_v34 = vld [vmem:[#allocation15 + $0x430] sm:$0xff] }
 0x3ac   :  { %1719 = vmatpush2.msra.mxu0 %v940_v29  ;;  %1790 = vmatpush2.msra.mxu1 %v1196_v35  ;;  %v1092_v29 = vld [vmem:[#allocation15 + $0xc30] sm:$0xff] }
 0x3ad   :  { %1720 = vmatprep.subr.mxu0 %v933_v30  ;;  %1791 = vmatprep.subr.mxu1 %v1189_v31  ;;  %v1895_v30 = vld [vmem:[#allocation18 + $0xf8] sm:$0xff] }
 0x3ae   :  { %1721 = vmatpush2.msra.mxu0 %v932_v32  ;;  %1792 = vmatpush2.msra.mxu1 %v1188_v33  ;;  %v1959_v32 = vld [vmem:[#allocation18 + $0x2f8] sm:$0xff]  ;;  %v1894_v33 = vld [vmem:[#allocation18 + $0xf0] sm:$0xff] }
 0x3af   :  { %1722 = vmatprep.subr.mxu0 %v925_v36  ;;  %1793 = vmatprep.subr.mxu1 %v1181_v37  ;;  %v1958_v37 = vld [vmem:[#allocation18 + $0x2f0] sm:$0xff] }
 0x3b0   :  { %1723 = vmatpush2.msra.mxu0 %v924_v40  ;;  %1794 = vmatpush2.msra.mxu1 %v1180_v41  ;;  %v1893_v40 = vld [vmem:[#allocation18 + $0xe8] sm:$0xff] }
 0x3b1   :  { %1724 = vmatprep.subr.mxu0 %v917_v42  ;;  %1795 = vmatprep.subr.mxu1 %v1173_v43  ;;  %v1957_v42 = vld [vmem:[#allocation18 + $0x2e8] sm:$0xff]  ;;  %v1892_v43 = vld [vmem:[#allocation18 + $0xe0] sm:$0xff] }
 0x3b2   :  { %1725 = vmatpush2.msra.mxu0 %v916_v44  ;;  %1796 = vmatpush2.msra.mxu1 %v1172_v45  ;;  %v1956_v44 = vld [vmem:[#allocation18 + $0x2e0] sm:$0xff] }
 0x3b3   :  { %1726 = vmatprep.subr.mxu0 %v909_v46  ;;  %1797 = vmatprep.subr.mxu1 %v1165_v47  ;;  %v1891_v46 = vld [vmem:[#allocation18 + $0xd8] sm:$0xff]  ;;  %v1890_v47 = vld [vmem:[#allocation18 + $0xd0] sm:$0xff] }
 0x3b4   :  { %1727 = vmatpush2.msra.mxu0 %v908_v48  ;;  %1798 = vmatpush2.msra.mxu1 %v1164_v49  ;;  %v1955_v48 = vld [vmem:[#allocation18 + $0x2d8] sm:$0xff] }
 0x3b5   :  { %1728 = vmatprep.subr.mxu0 %v901_v50  ;;  %1799 = vmatprep.subr.mxu1 %v1157_v51  ;;  %v1888_v50 = vld [vmem:[#allocation18 + $0xc0] sm:$0xff]  ;;  %v1953_v51 = vld [vmem:[#allocation18 + $0x2c8] sm:$0xff] }
 0x3b6   :  { %1729 = vmatpush2.msra.mxu0 %v900_v52  ;;  %1800 = vmatpush2.msra.mxu1 %v1156_v53  ;;  %v1887_v52 = vld [vmem:[#allocation18 + $0xb8] sm:$0xff]  ;;  %v1952_v53 = vld [vmem:[#allocation18 + $0x2c0] sm:$0xff] }
 0x3b7   :  { %1730 = vmatprep.subr.mxu0 %v893_v54  ;;  %1801 = vmatprep.subr.mxu1 %v1149_v55  ;;  %v1886_v54 = vld [vmem:[#allocation18 + $0xb0] sm:$0xff]  ;;  %v1951_v55 = vld [vmem:[#allocation18 + $0x2b8] sm:$0xff] }
 0x3b8   :  { %1731 = vmatpush2.msra.mxu0 %v892_v56  ;;  %1802 = vmatpush2.msra.mxu1 %v1148_v57  ;;  %v1885_v56 = vld [vmem:[#allocation18 + $0xa8] sm:$0xff]  ;;  %v1950_v57 = vld [vmem:[#allocation18 + $0x2b0] sm:$0xff] }
 0x3b9   :  { %1732 = vmatprep.subr.mxu0 %v885_v58  ;;  %1803 = vmatprep.subr.mxu1 %v1141_v61  ;;  %v1884_v58 = vld [vmem:[#allocation18 + $0xa0] sm:$0xff]  ;;  %v1949_v61 = vld [vmem:[#allocation18 + $0x2a8] sm:$0xff] }
 0x3ba   :  { %1733 = vmatpush2.msra.mxu0 %v884_v63  ;;  %1804 = vmatpush2.msra.mxu1 %v1140_v0  ;;  %v1883_v63 = vld [vmem:[#allocation18 + $0x98] sm:$0xff]  ;;  %v1948_v0 = vld [vmem:[#allocation18 + $0x2a0] sm:$0xff] }
 0x3bb   :  { %1734 = vmatprep.subr.mxu0 %v877_v1  ;;  %1805 = vmatprep.subr.mxu1 %v1133_v2  ;;  %v1882_v1 = vld [vmem:[#allocation18 + $0x90] sm:$0xff]  ;;  %v1947_v2 = vld [vmem:[#allocation18 + $0x298] sm:$0xff] }
 0x3bc   :  { %1735 = vmatpush2.msra.mxu0 %v876_v3  ;;  %1806 = vmatpush2.msra.mxu1 %v1132_v4  ;;  %v1881_v3 = vld [vmem:[#allocation18 + $0x88] sm:$0xff]  ;;  %v1946_v4 = vld [vmem:[#allocation18 + $0x290] sm:$0xff] }
 0x3bd   :  { %1736 = vmatprep.subr.mxu0 %v869_v5  ;;  %1807 = vmatprep.subr.mxu1 %v1125_v6  ;;  %v1880_v5 = vld [vmem:[#allocation18 + $0x80] sm:$0xff]  ;;  %v1945_v6 = vld [vmem:[#allocation18 + $0x288] sm:$0xff] }
 0x3be   :  { %1737 = vmatpush2.msra.mxu0 %v868_v7  ;;  %1808 = vmatpush2.msra.mxu1 %v1124_v8  ;;  %v1879_v7 = vld [vmem:[#allocation18 + $0x78] sm:$0xff]  ;;  %v1944_v8 = vld [vmem:[#allocation18 + $0x280] sm:$0xff] }
 0x3bf   :  { %1738 = vmatprep.subr.mxu0 %v861_v9  ;;  %1809 = vmatprep.subr.mxu1 %v1117_v10  ;;  %v1878_v9 = vld [vmem:[#allocation18 + $0x70] sm:$0xff]  ;;  %v1943_v10 = vld [vmem:[#allocation18 + $0x278] sm:$0xff] }
 0x3c0   :  { %1739 = vmatpush2.msra.mxu0 %v860_v11  ;;  %1810 = vmatpush2.msra.mxu1 %v1116_v12  ;;  %v1877_v11 = vld [vmem:[#allocation18 + $0x68] sm:$0xff]  ;;  %v1942_v12 = vld [vmem:[#allocation18 + $0x270] sm:$0xff] }
 0x3c1   :  { %1740 = vmatprep.subr.mxu0 %v853_v13  ;;  %1811 = vmatprep.subr.mxu1 %v1109_v14  ;;  %v1876_v13 = vld [vmem:[#allocation18 + $0x60] sm:$0xff]  ;;  %v1941_v14 = vld [vmem:[#allocation18 + $0x268] sm:$0xff] }
 0x3c2   :  { %1741 = vmatpush2.msra.mxu0 %v852_v16  ;;  %1812 = vmatpush2.msra.mxu1 %v1108_v18  ;;  %v2957_v27 = vpop.f32.mrf.mxu0  ;;  %v2959_v28 = vpop.f32.mrf.mxu1  ;;  %v1875_v16 = vld [vmem:[#allocation18 + $0x58] sm:$0xff]  ;;  %v1940_v18 = vld [vmem:[#allocation18 + $0x260] sm:$0xff] }
 0x3c3   :  { %1742 = vmatprep.subr.mxu0 %v845_v19  ;;  %1813 = vmatprep.subr.mxu1 %v1101_v20  ;;  %v1874_v19 = vld [vmem:[#allocation18 + $0x50] sm:$0xff]  ;;  %v1939_v20 = vld [vmem:[#allocation18 + $0x258] sm:$0xff] }
 0x3c4   :  { %1743 = vmatpush2.msra.mxu0 %v844_v22  ;;  %1814 = vmatpush2.msra.mxu1 %v1100_v23  ;;  %v1324_v35 = vpop.f32.mrf.mxu0  ;;  %v1395_v36 = vpop.f32.mrf.mxu1  ;;  %v1873_v22 = vld [vmem:[#allocation18 + $0x48] sm:$0xff]  ;;  %v1938_v23 = vld [vmem:[#allocation18 + $0x250] sm:$0xff] }
 0x3c5   :  { %1744 = vmatprep.subr.mxu0 %v837_v25  ;;  %1815 = vmatprep.subr.mxu1 %v1093_v26  ;;  %v1325_v31 = vadd.f32 %v1324_v35, %v1223_v24  ;;  %v1872_v24 = vld [vmem:[#allocation18 + $0x40] sm:$0xff]  ;;  %v1937_v25 = vld [vmem:[#allocation18 + $0x248] sm:$0xff]  ;;  %v1871_v26 = vld [vmem:[#allocation18 + $0x38] sm:$0xff] }
 0x3c6   :  { %1745 = vmatpush2.msra.mxu0 %v836_v34  ;;  %1816 = vmatpush2.msra.mxu1 %v1092_v29  ;;  %v1936_v34 = vld [vmem:[#allocation18 + $0x240] sm:$0xff]  ;;  %v1870_v29 = vld [vmem:[#allocation18 + $0x30] sm:$0xff]  ;;  %v1935_v35 = vld [vmem:[#allocation18 + $0x238] sm:$0xff] }
 0x3c7   :  { %1747 = vmatmul.mubr.f32.vlgmr.msra.gmra.mxu0 %v2937_v38  ;;  %1818 = vmatmul.mubr.f32.vlgmr.msra.gmra.mxu1 %v2939_v39  ;;  %v1396_v41 = vadd.f32 %v1395_v36, %v1325_v31  ;;  %v1889_v38 = vld [vmem:[#allocation18 + $0xc8] sm:$0xff]  ;;  %v1954_v39 = vld [vmem:[#allocation18 + $0x2d0] sm:$0xff]  ;;  %v1867_v36 = vld [vmem:[#allocation18 + $0x18] sm:$0xff] }
 0x3c8   :  { %2132 = vmatprep.subr.mxu0 %v1895_v30  ;;  %2203 = vmatprep.subr.mxu1 %v1959_v32  ;;  %v1869_v30 = vld [vmem:[#allocation18 + $0x28] sm:$0xff]  ;;  %v1934_v31 = vld [vmem:[#allocation18 + $0x230] sm:$0xff]  ;;  %v1868_v32 = vld [vmem:[#allocation18 + $0x20] sm:$0xff] }
 0x3c9   :  { %2133 = vmatpush1.msra.mxu0 %v1894_v33  ;;  %v1833_v45 = vmul.f32 0.2, %v1396_v41  ;;  %vm1825_vm8 = vcmp.gt.f32.partialorder %v1396_v41, 0.0  ;;  %2204 = vmatpush1.msra.mxu1 %v1958_v37  ;;  %v1933_v33 = vld [vmem:[#allocation18 + $0x228] sm:$0xff]  ;;  %v1932_v37 = vld [vmem:[#allocation18 + $0x220] sm:$0xff] }
 0x3ca   :  { %2134 = vmatprep.subr.mxu0 %v1893_v40  ;;  %2205 = vmatprep.subr.mxu1 %v1957_v42  ;;  %v1866_v40 = vld [vmem:[#allocation18 + $0x10] sm:$0xff]  ;;  %v1865_v42 = vld [vmem:[#allocation18 + $0x8] sm:$0xff] }
 0x3cb   :  { %2135 = vmatpush1.msra.mxu0 %v1892_v43  ;;  %v1841_v49 = vsel %vm1825_vm8, %v1396_v41, %v1833_v45  ;;  %2206 = vmatpush1.msra.mxu1 %v1956_v44  ;;  %v1931_v41 = vld [vmem:[#allocation18 + $0x218] sm:$0xff]  ;;  %v1930_v43 = vld [vmem:[#allocation18 + $0x210] sm:$0xff]  ;;  %v1864_v44 = vld [vmem:[#allocation18] sm:$0xff] }
 0x3cc   :  { %2136 = vmatprep.subr.mxu0 %v1891_v46  ;;  %2196 = vmatprep.mubr.f32.mxu0 %v1841_v49  ;;  %v1929_v45 = vld [vmem:[#allocation18 + $0x208] sm:$0xff]  ;;  %v1927_v46 = vld [vmem:[#allocation18 + $0x1f8] sm:$0xff] }
 0x3cd   :  { %2137 = vmatpush1.msra.mxu0 %v1890_v47  ;;  %2207 = vmatprep.subr.mxu1 %v1955_v48  ;;  %v1928_v47 = vld [vmem:[#allocation18 + $0x200] sm:$0xff]  ;;  %v1926_v48 = vld [vmem:[#allocation18 + $0x1f0] sm:$0xff]  ;;  %v1925_v49 = vld [vmem:[#allocation18 + $0x1e8] sm:$0xff] }
 0x3ce   :  { %2138 = vmatprep.subr.mxu0 %v1889_v38  ;;  %2208 = vmatpush1.msra.mxu1 %v1954_v39  ;;  %v1991_v38 = vld [vmem:[#allocation18 + $0x3f8] sm:$0xff]  ;;  %v1990_v39 = vld [vmem:[#allocation18 + $0x3f0] sm:$0xff] }
 0x3cf   :  { %2139 = vmatpush1.msra.mxu0 %v1888_v50  ;;  %2209 = vmatprep.subr.mxu1 %v1953_v51  ;;  %v1924_v50 = vld [vmem:[#allocation18 + $0x1e0] sm:$0xff]  ;;  %v1989_v51 = vld [vmem:[#allocation18 + $0x3e8] sm:$0xff] }
 0x3d0   :  { %2140 = vmatprep.subr.mxu0 %v1887_v52  ;;  %2210 = vmatpush1.msra.mxu1 %v1952_v53  ;;  %v1923_v52 = vld [vmem:[#allocation18 + $0x1d8] sm:$0xff]  ;;  %v1988_v53 = vld [vmem:[#allocation18 + $0x3e0] sm:$0xff] }
 0x3d1   :  { %2141 = vmatpush1.msra.mxu0 %v1886_v54  ;;  %2211 = vmatprep.subr.mxu1 %v1951_v55  ;;  %v1922_v54 = vld [vmem:[#allocation18 + $0x1d0] sm:$0xff]  ;;  %v1987_v55 = vld [vmem:[#allocation18 + $0x3d8] sm:$0xff] }
 0x3d2   :  { %2142 = vmatprep.subr.mxu0 %v1885_v56  ;;  %2212 = vmatpush1.msra.mxu1 %v1950_v57  ;;  %v1921_v56 = vld [vmem:[#allocation18 + $0x1c8] sm:$0xff]  ;;  %v1986_v57 = vld [vmem:[#allocation18 + $0x3d0] sm:$0xff] }
 0x3d3   :  { %2143 = vmatpush1.msra.mxu0 %v1884_v58  ;;  %2213 = vmatprep.subr.mxu1 %v1949_v61  ;;  %v1920_v58 = vld [vmem:[#allocation18 + $0x1c0] sm:$0xff]  ;;  %v1985_v61 = vld [vmem:[#allocation18 + $0x3c8] sm:$0xff] }
 0x3d4   :  { %2144 = vmatprep.subr.mxu0 %v1883_v63  ;;  %2214 = vmatpush1.msra.mxu1 %v1948_v0  ;;  %v1919_v63 = vld [vmem:[#allocation18 + $0x1b8] sm:$0xff]  ;;  %v1984_v0 = vld [vmem:[#allocation18 + $0x3c0] sm:$0xff] }
 0x3d5   :  { %2145 = vmatpush1.msra.mxu0 %v1882_v1  ;;  %2215 = vmatprep.subr.mxu1 %v1947_v2  ;;  %v1918_v1 = vld [vmem:[#allocation18 + $0x1b0] sm:$0xff]  ;;  %v1983_v2 = vld [vmem:[#allocation18 + $0x3b8] sm:$0xff] }
 0x3d6   :  { %2146 = vmatprep.subr.mxu0 %v1881_v3  ;;  %2216 = vmatpush1.msra.mxu1 %v1946_v4  ;;  %v1917_v3 = vld [vmem:[#allocation18 + $0x1a8] sm:$0xff]  ;;  %v1982_v4 = vld [vmem:[#allocation18 + $0x3b0] sm:$0xff] }
 0x3d7   :  { %2147 = vmatpush1.msra.mxu0 %v1880_v5  ;;  %2217 = vmatprep.subr.mxu1 %v1945_v6  ;;  %v1916_v5 = vld [vmem:[#allocation18 + $0x1a0] sm:$0xff]  ;;  %v1981_v6 = vld [vmem:[#allocation18 + $0x3a8] sm:$0xff] }
 0x3d8   :  { %2148 = vmatprep.subr.mxu0 %v1879_v7  ;;  %2218 = vmatpush1.msra.mxu1 %v1944_v8  ;;  %v1915_v7 = vld [vmem:[#allocation18 + $0x198] sm:$0xff]  ;;  %v1980_v8 = vld [vmem:[#allocation18 + $0x3a0] sm:$0xff] }
 0x3d9   :  { %2149 = vmatpush1.msra.mxu0 %v1878_v9  ;;  %2219 = vmatprep.subr.mxu1 %v1943_v10  ;;  %v1914_v9 = vld [vmem:[#allocation18 + $0x190] sm:$0xff]  ;;  %v1979_v10 = vld [vmem:[#allocation18 + $0x398] sm:$0xff] }
 0x3da   :  { %2150 = vmatprep.subr.mxu0 %v1877_v11  ;;  %2220 = vmatpush1.msra.mxu1 %v1942_v12  ;;  %v1913_v11 = vld [vmem:[#allocation18 + $0x188] sm:$0xff]  ;;  %v1978_v12 = vld [vmem:[#allocation18 + $0x390] sm:$0xff] }
 0x3db   :  { %2151 = vmatpush1.msra.mxu0 %v1876_v13  ;;  %2221 = vmatprep.subr.mxu1 %v1941_v14  ;;  %v1912_v13 = vld [vmem:[#allocation18 + $0x180] sm:$0xff]  ;;  %v1977_v14 = vld [vmem:[#allocation18 + $0x388] sm:$0xff] }
 0x3dc   :  { %2152 = vmatprep.subr.mxu0 %v1875_v16  ;;  %2222 = vmatpush1.msra.mxu1 %v1940_v18  ;;  %v1911_v16 = vld [vmem:[#allocation18 + $0x178] sm:$0xff]  ;;  %v1976_v18 = vld [vmem:[#allocation18 + $0x380] sm:$0xff] }
 0x3dd   :  { %2153 = vmatpush1.msra.mxu0 %v1874_v19  ;;  %2223 = vmatprep.subr.mxu1 %v1939_v20  ;;  %v1910_v19 = vld [vmem:[#allocation18 + $0x170] sm:$0xff]  ;;  %v1975_v20 = vld [vmem:[#allocation18 + $0x378] sm:$0xff] }
 0x3de   :  { %2154 = vmatprep.subr.mxu0 %v1873_v22  ;;  %2224 = vmatpush1.msra.mxu1 %v1938_v23  ;;  %v1219_v22 = vrot.slane %v2953_v21, %v2916_v60  ;;  %v1909_v23 = vld [vmem:[#allocation18 + $0x168] sm:$0xff] }
 0x3df   :  { %2155 = vmatpush1.msra.mxu0 %v1872_v24  ;;  %2225 = vmatprep.subr.mxu1 %v1937_v25  ;;  %v1974_v24 = vld [vmem:[#allocation18 + $0x370] sm:$0xff]  ;;  %v1908_v25 = vld [vmem:[#allocation18 + $0x160] sm:$0xff] }
 0x3e0   :  { %2156 = vmatprep.subr.mxu0 %v1871_v26  ;;  %2226 = vmatpush1.msra.mxu1 %v1936_v34  ;;  %v1973_v26 = vld [vmem:[#allocation18 + $0x368] sm:$0xff]  ;;  %v1907_v34 = vld [vmem:[#allocation18 + $0x158] sm:$0xff] }
 0x3e1   :  { %2157 = vmatpush1.msra.mxu0 %v1870_v29  ;;  %2227 = vmatprep.subr.mxu1 %v1935_v35  ;;  %v1972_v29 = vld [vmem:[#allocation18 + $0x360] sm:$0xff]  ;;  %v1906_v35 = vld [vmem:[#allocation18 + $0x150] sm:$0xff] }
 0x3e2   :  { %2158 = vmatprep.subr.mxu0 %v1869_v30  ;;  %2228 = vmatpush1.msra.mxu1 %v1934_v31  ;;  %v1971_v30 = vld [vmem:[#allocation18 + $0x358] sm:$0xff]  ;;  %v1323_v31 = vadd.f32 %v2957_v27, %v1219_v22  ;;  %v1901_v27 = vld [vmem:[#allocation18 + $0x128] sm:$0xff]  ;;  %v2014_v22 = vld [vmem:[#allocation18 + $0x4b0] sm:$0xff] }
 0x3e3   :  { %2159 = vmatpush1.msra.mxu0 %v1868_v32  ;;  %2229 = vmatprep.subr.mxu1 %v1933_v33  ;;  %v1905_v32 = vld [vmem:[#allocation18 + $0x148] sm:$0xff]  ;;  %v1970_v33 = vld [vmem:[#allocation18 + $0x350] sm:$0xff] }
 0x3e4   :  { %2160 = vmatprep.subr.mxu0 %v1867_v36  ;;  %2230 = vmatpush1.msra.mxu1 %v1932_v37  ;;  %v1904_v36 = vld [vmem:[#allocation18 + $0x140] sm:$0xff]  ;;  %v1969_v37 = vld [vmem:[#allocation18 + $0x348] sm:$0xff] }
 0x3e5   :  { %2161 = vmatpush1.msra.mxu0 %v1866_v40  ;;  %2231 = vmatprep.subr.mxu1 %v1931_v41  ;;  %v1903_v40 = vld [vmem:[#allocation18 + $0x138] sm:$0xff]  ;;  %v1968_v41 = vld [vmem:[#allocation18 + $0x340] sm:$0xff] }
 0x3e6   :  { %2162 = vmatprep.subr.mxu0 %v1865_v42  ;;  %2232 = vmatpush1.msra.mxu1 %v1930_v43  ;;  %v1902_v42 = vld [vmem:[#allocation18 + $0x130] sm:$0xff]  ;;  %v1967_v43 = vld [vmem:[#allocation18 + $0x338] sm:$0xff] }
 0x3e7   :  { %2163 = vmatpush1.msra.mxu0 %v1864_v44  ;;  %2233 = vmatprep.subr.mxu1 %v1929_v45  ;;  %v1394_v44 = vadd.f32 %v2959_v28, %v1323_v31  ;;  %v1966_v45 = vld [vmem:[#allocation18 + $0x330] sm:$0xff]  ;;  %v1231_v28 = vrot.slane %v2953_v21, %v542_v17  ;;  %v2079_v31 = vld [vmem:[#allocation18 + $0x6b8] sm:$0xff] }
 0x3e8   :  { %2164 = vmatprep.subr.mxu0 %v1927_v46  ;;  %2234 = vmatpush1.msra.mxu1 %v1928_v47  ;;  %v1900_v46 = vld [vmem:[#allocation18 + $0x120] sm:$0xff]  ;;  %v1227_v47 = vrot.slane %v2953_v21, %v538_v15  ;;  %v1962_v15 = vld [vmem:[#allocation18 + $0x310] sm:$0xff] }
 0x3e9   :  { %2165 = vmatpush2.msra.mxu0 %v1926_v48  ;;  %2235 = vmatprep.subr.mxu1 %v1991_v38  ;;  %v1965_v48 = vld [vmem:[#allocation18 + $0x328] sm:$0xff]  ;;  %v1899_v38 = vld [vmem:[#allocation18 + $0x118] sm:$0xff]  ;;  %vm1824_vm9 = vcmp.gt.f32.partialorder %v1394_v44, 0.0 }
 0x3ea   :  { %2166 = vmatprep.subr.mxu0 %v1925_v49  ;;  %2236 = vmatpush2.msra.mxu1 %v1990_v39  ;;  %v1964_v49 = vld [vmem:[#allocation18 + $0x320] sm:$0xff]  ;;  %v1898_v39 = vld [vmem:[#allocation18 + $0x110] sm:$0xff] }
 0x3eb   :  { %2167 = vmatpush2.msra.mxu0 %v1924_v50  ;;  %2237 = vmatprep.subr.mxu1 %v1989_v51  ;;  %v1963_v50 = vld [vmem:[#allocation18 + $0x318] sm:$0xff]  ;;  %v1832_v51 = vmul.f32 0.2, %v1394_v44 }
 0x3ec   :  { %2168 = vmatprep.subr.mxu0 %v1923_v52  ;;  %2238 = vmatpush2.msra.mxu1 %v1988_v53  ;;  %v1897_v52 = vld [vmem:[#allocation18 + $0x108] sm:$0xff] }
 0x3ed   :  { %2169 = vmatpush2.msra.mxu0 %v1922_v54  ;;  %2239 = vmatprep.subr.mxu1 %v1987_v55  ;;  %v1896_v55 = vld [vmem:[#allocation18 + $0x100] sm:$0xff] }
 0x3ee   :  { %2170 = vmatprep.subr.mxu0 %v1921_v56  ;;  %2240 = vmatpush2.msra.mxu1 %v1986_v57  ;;  %v1961_v57 = vld [vmem:[#allocation18 + $0x308] sm:$0xff] }
 0x3ef   :  { %2171 = vmatpush2.msra.mxu0 %v1920_v58  ;;  %2241 = vmatprep.subr.mxu1 %v1985_v61  ;;  %v1960_v61 = vld [vmem:[#allocation18 + $0x300] sm:$0xff] }
 0x3f0   :  { %2172 = vmatprep.subr.mxu0 %v1919_v63  ;;  %2242 = vmatpush2.msra.mxu1 %v1984_v0  ;;  %v2023_v63 = vld [vmem:[#allocation18 + $0x4f8] sm:$0xff] }
 0x3f1   :  { %2173 = vmatpush2.msra.mxu0 %v1918_v1  ;;  %2243 = vmatprep.subr.mxu1 %v1983_v2  ;;  %v2087_v0 = vld [vmem:[#allocation18 + $0x6f8] sm:$0xff]  ;;  %v1840_v1 = vsel %vm1824_vm9, %v1394_v44, %v1832_v51  ;;  %v2005_v44 = vld [vmem:[#allocation18 + $0x468] sm:$0xff] }
 0x3f2   :  { %2174 = vmatprep.subr.mxu0 %v1917_v3  ;;  %2244 = vmatpush2.msra.mxu1 %v1982_v4  ;;  %v2022_v3 = vld [vmem:[#allocation18 + $0x4f0] sm:$0xff]  ;;  %v2069_v51 = vld [vmem:[#allocation18 + $0x668] sm:$0xff] }
 0x3f3   :  { %2175 = vmatpush2.msra.mxu0 %v1916_v5  ;;  %2245 = vmatprep.subr.mxu1 %v1981_v6  ;;  %v2021_v5 = vld [vmem:[#allocation18 + $0x4e8] sm:$0xff] }
 0x3f4   :  { %2176 = vmatprep.subr.mxu0 %v1915_v7  ;;  %2246 = vmatpush2.msra.mxu1 %v1980_v8  ;;  %v2020_v7 = vld [vmem:[#allocation18 + $0x4e0] sm:$0xff] }
 0x3f5   :  { %2177 = vmatpush2.msra.mxu0 %v1914_v9  ;;  %2247 = vmatprep.subr.mxu1 %v1979_v10  ;;  %v2019_v9 = vld [vmem:[#allocation18 + $0x4d8] sm:$0xff]  ;;  %v2018_v10 = vld [vmem:[#allocation18 + $0x4d0] sm:$0xff] }
 0x3f6   :  { %2178 = vmatprep.subr.mxu0 %v1913_v11  ;;  %2248 = vmatpush2.msra.mxu1 %v1978_v12  ;;  %v2017_v12 = vld [vmem:[#allocation18 + $0x4c8] sm:$0xff] }
 0x3f7   :  { %2179 = vmatpush2.msra.mxu0 %v1912_v13  ;;  %2249 = vmatprep.subr.mxu1 %v1977_v14  ;;  %v2086_v13 = vld [vmem:[#allocation18 + $0x6f0] sm:$0xff] }
 0x3f8   :  { %2180 = vmatprep.subr.mxu0 %v1911_v16  ;;  %2250 = vmatpush2.msra.mxu1 %v1976_v18  ;;  %v2016_v16 = vld [vmem:[#allocation18 + $0x4c0] sm:$0xff]  ;;  %v2085_v18 = vld [vmem:[#allocation18 + $0x6e8] sm:$0xff] }
 0x3f9   :  { %2181 = vmatpush2.msra.mxu0 %v1910_v19  ;;  %2251 = vmatprep.subr.mxu1 %v1975_v20  ;;  %v2015_v19 = vld [vmem:[#allocation18 + $0x4b8] sm:$0xff]  ;;  %v2084_v20 = vld [vmem:[#allocation18 + $0x6e0] sm:$0xff] }
 0x3fa   :  { %2182 = vmatprep.subr.mxu0 %v1909_v23  ;;  %2252 = vmatpush2.msra.mxu1 %v1974_v24  ;;  %v2083_v23 = vld [vmem:[#allocation18 + $0x6d8] sm:$0xff]  ;;  %v2013_v24 = vld [vmem:[#allocation18 + $0x4a8] sm:$0xff] }
 0x3fb   :  { %2183 = vmatpush2.msra.mxu0 %v1908_v25  ;;  %2253 = vmatprep.subr.mxu1 %v1973_v26  ;;  %v2082_v25 = vld [vmem:[#allocation18 + $0x6d0] sm:$0xff]  ;;  %v2012_v26 = vld [vmem:[#allocation18 + $0x4a0] sm:$0xff] }
 0x3fc   :  { %2184 = vmatprep.subr.mxu0 %v1907_v34  ;;  %2254 = vmatpush2.msra.mxu1 %v1972_v29  ;;  %v2081_v34 = vld [vmem:[#allocation18 + $0x6c8] sm:$0xff]  ;;  %v2011_v29 = vld [vmem:[#allocation18 + $0x498] sm:$0xff] }
 0x3fd   :  { %2185 = vmatpush2.msra.mxu0 %v1906_v35  ;;  %2255 = vmatprep.subr.mxu1 %v1971_v30  ;;  %v2080_v35 = vld [vmem:[#allocation18 + $0x6c0] sm:$0xff]  ;;  %v2010_v30 = vld [vmem:[#allocation18 + $0x490] sm:$0xff] }
 0x3fe   :  { %2186 = vmatprep.subr.mxu0 %v1905_v32  ;;  %2256 = vmatpush2.msra.mxu1 %v1970_v33  ;;  %v2009_v32 = vld [vmem:[#allocation18 + $0x488] sm:$0xff]  ;;  %v2078_v33 = vld [vmem:[#allocation18 + $0x6b0] sm:$0xff] }
 0x3ff   :  { %2187 = vmatpush2.msra.mxu0 %v1904_v36  ;;  %2257 = vmatprep.subr.mxu1 %v1969_v37  ;;  %v2008_v36 = vld [vmem:[#allocation18 + $0x480] sm:$0xff]  ;;  %v2077_v37 = vld [vmem:[#allocation18 + $0x6a8] sm:$0xff] }
 0x400   :  { %2188 = vmatprep.subr.mxu0 %v1903_v40  ;;  %2258 = vmatpush2.msra.mxu1 %v1968_v41  ;;  %v2007_v40 = vld [vmem:[#allocation18 + $0x478] sm:$0xff]  ;;  %v2076_v41 = vld [vmem:[#allocation18 + $0x6a0] sm:$0xff] }
 0x401   :  { %2189 = vmatpush2.msra.mxu0 %v1902_v42  ;;  %2259 = vmatprep.subr.mxu1 %v1967_v43  ;;  %v2006_v42 = vld [vmem:[#allocation18 + $0x470] sm:$0xff]  ;;  %v2075_v43 = vld [vmem:[#allocation18 + $0x698] sm:$0xff] }
 0x402   :  { %2190 = vmatprep.subr.mxu0 %v1901_v27  ;;  %2260 = vmatpush2.msra.mxu1 %v1966_v45  ;;  %v2074_v27 = vld [vmem:[#allocation18 + $0x690] sm:$0xff]  ;;  %v2004_v45 = vld [vmem:[#allocation18 + $0x460] sm:$0xff] }
 0x403   :  { %2191 = vmatpush2.msra.mxu0 %v1900_v46  ;;  %v1464_v53 = vpop.f32.mrf.mxu0  ;;  %v1535_v54 = vpop.f32.mrf.mxu1  ;;  %2261 = vmatprep.subr.mxu1 %v1965_v48  ;;  %v2073_v46 = vld [vmem:[#allocation18 + $0x688] sm:$0xff]  ;;  %v2072_v48 = vld [vmem:[#allocation18 + $0x680] sm:$0xff] }
 0x404   :  { %2192 = vmatprep.subr.mxu0 %v1899_v38  ;;  %v1465_v56 = vadd.f32 %v1464_v53, %v1227_v47  ;;  %2262 = vmatpush2.msra.mxu1 %v1964_v49  ;;  %v2003_v47 = vld [vmem:[#allocation18 + $0x458] sm:$0xff]  ;;  %v2002_v38 = vld [vmem:[#allocation18 + $0x450] sm:$0xff]  ;;  %v2068_v53 = vld [vmem:[#allocation18 + $0x660] sm:$0xff] }
 0x405   :  { %2193 = vmatpush2.msra.mxu0 %v1898_v39  ;;  %v1466_v58 = vpop.f32.mrf.mxu0  ;;  %2263 = vmatprep.subr.mxu1 %v1963_v50  ;;  %v1537_v2 = vpop.f32.mrf.mxu1  ;;  %v2071_v49 = vld [vmem:[#allocation18 + $0x678] sm:$0xff]  ;;  %v2001_v39 = vld [vmem:[#allocation18 + $0x448] sm:$0xff]  ;;  %v2000_v50 = vld [vmem:[#allocation18 + $0x440] sm:$0xff] }
 0x406   :  { %2194 = vmatprep.subr.mxu0 %v1897_v52  ;;  %v1536_v17 = vadd.f32 %v1535_v54, %v1465_v56  ;;  %v1467_v21 = vadd.f32 %v1466_v58, %v1231_v28  ;;  %2264 = vmatpush2.msra.mxu1 %v1962_v15  ;;  %v2070_v28 = vld [vmem:[#allocation18 + $0x670] sm:$0xff]  ;;  %v1999_v52 = vld [vmem:[#allocation18 + $0x438] sm:$0xff]  ;;  %v2065_v58 = vld [vmem:[#allocation18 + $0x648] sm:$0xff] }
 0x407   :  { %2195 = vmatpush2.msra.mxu0 %v1896_v55  ;;  %2265 = vmatprep.subr.mxu1 %v1961_v57  ;;  %v1998_v54 = vld [vmem:[#allocation18 + $0x430] sm:$0xff]  ;;  %v2067_v15 = vld [vmem:[#allocation18 + $0x658] sm:$0xff]  ;;  %v1997_v55 = vld [vmem:[#allocation18 + $0x428] sm:$0xff] }
 0x408   :  { %2197 = vmatmul.mubr.f32.vlgmr.msra.gmra.mxu0 %v1840_v1  ;;  %v1538_v4 = vadd.f32 %v1537_v2, %v1467_v21  ;;  %2266 = vmatpush2.msra.mxu1 %v1960_v61  ;;  %v1834_v6 = vmul.f32 0.2, %v1536_v17  ;;  %vm1826_vm10 = vcmp.gt.f32.partialorder %v1536_v17, 0.0  ;;  %v2066_v56 = vld [vmem:[#allocation18 + $0x650] sm:$0xff]  ;;  %v1996_v57 = vld [vmem:[#allocation18 + $0x420] sm:$0xff]  ;;  %v1995_v61 = vld [vmem:[#allocation18 + $0x418] sm:$0xff] }
 0x409   :  { %2274 = vmatprep.subr.mxu0 %v2023_v63  ;;  %2345 = vmatprep.subr.mxu1 %v2087_v0  ;;  %v1994_v21 = vld [vmem:[#allocation18 + $0x410] sm:$0xff]  ;;  %v2063_v63 = vld [vmem:[#allocation18 + $0x638] sm:$0xff]  ;;  %v1993_v0 = vld [vmem:[#allocation18 + $0x408] sm:$0xff] }
 0x40a   :  { %v1835_v8 = vmul.f32 0.2, %v1538_v4  ;;  %vm1827_vm11 = vcmp.gt.f32.partialorder %v1538_v4, 0.0  ;;  %2275 = vmatpush1.msra.mxu0 %v2022_v3  ;;  %v1842_v14 = vsel %vm1826_vm10, %v1536_v17, %v1834_v6  ;;  %v2064_v17 = vld [vmem:[#allocation18 + $0x640] sm:$0xff]  ;;  %v2062_v1 = vld [vmem:[#allocation18 + $0x630] sm:$0xff]  ;;  %v2061_v3 = vld [vmem:[#allocation18 + $0x628] sm:$0xff] }
 0x40b   :  { %2276 = vmatprep.subr.mxu0 %v2021_v5  ;;  %v1992_v2 = vld [vmem:[#allocation18 + $0x400] sm:$0xff]  ;;  %v2054_v6 = vld [vmem:[#allocation18 + $0x5f0] sm:$0xff] }
 0x40c   :  { %v1843_v11 = vsel %vm1827_vm11, %v1538_v4, %v1835_v8  ;;  %2277 = vmatpush1.msra.mxu0 %v2020_v7  ;;  %v2055_v4 = vld [vmem:[#allocation18 + $0x5f8] sm:$0xff]  ;;  %v2060_v5 = vld [vmem:[#allocation18 + $0x620] sm:$0xff]  ;;  %v2053_v8 = vld [vmem:[#allocation18 + $0x5e8] sm:$0xff] }
 0x40d   :  { %2267 = vmatprep.mubr.f32.mxu1 %v1843_v11  ;;  %2278 = vmatprep.subr.mxu0 %v2019_v9  ;;  %v2059_v7 = vld [vmem:[#allocation18 + $0x618] sm:$0xff]  ;;  %v2058_v9 = vld [vmem:[#allocation18 + $0x610] sm:$0xff]  ;;  %v2057_v11 = vld [vmem:[#allocation18 + $0x608] sm:$0xff] }
 0x40e   :  { %2268 = vmatmul.mubr.f32.vlgmr.msra.gmra.mxu1 %v1842_v14  ;;  %2279 = vmatpush1.msra.mxu0 %v2018_v10  ;;  %v2052_v10 = vld [vmem:[#allocation18 + $0x5e0] sm:$0xff]  ;;  %v2050_v14 = vld [vmem:[#allocation18 + $0x5d0] sm:$0xff] }
 0x40f   :  { %2280 = vmatprep.subr.mxu0 %v2017_v12  ;;  %2346 = vmatpush1.msra.mxu1 %v2086_v13  ;;  %v2051_v12 = vld [vmem:[#allocation18 + $0x5d8] sm:$0xff]  ;;  %v2056_v13 = vld [vmem:[#allocation18 + $0x600] sm:$0xff] }
 0x410   :  { %2281 = vmatpush1.msra.mxu0 %v2016_v16  ;;  %2347 = vmatprep.subr.mxu1 %v2085_v18  ;;  %v2119_v16 = vld [vmem:[#allocation18 + $0x7f8] sm:$0xff]  ;;  %v2049_v18 = vld [vmem:[#allocation18 + $0x5c8] sm:$0xff] }
 0x411   :  { %2282 = vmatprep.subr.mxu0 %v2015_v19  ;;  %2348 = vmatpush1.msra.mxu1 %v2084_v20  ;;  %v2118_v19 = vld [vmem:[#allocation18 + $0x7f0] sm:$0xff]  ;;  %v2048_v20 = vld [vmem:[#allocation18 + $0x5c0] sm:$0xff] }
 0x412   :  { %2283 = vmatpush1.msra.mxu0 %v2014_v22  ;;  %2349 = vmatprep.subr.mxu1 %v2083_v23  ;;  %v2117_v22 = vld [vmem:[#allocation18 + $0x7e8] sm:$0xff]  ;;  %v2047_v23 = vld [vmem:[#allocation18 + $0x5b8] sm:$0xff] }
 0x413   :  { %2284 = vmatprep.subr.mxu0 %v2013_v24  ;;  %2350 = vmatpush1.msra.mxu1 %v2082_v25  ;;  %v2116_v24 = vld [vmem:[#allocation18 + $0x7e0] sm:$0xff]  ;;  %v2046_v25 = vld [vmem:[#allocation18 + $0x5b0] sm:$0xff] }
 0x414   :  { %2285 = vmatpush1.msra.mxu0 %v2012_v26  ;;  %2351 = vmatprep.subr.mxu1 %v2081_v34  ;;  %v2115_v26 = vld [vmem:[#allocation18 + $0x7d8] sm:$0xff]  ;;  %v2045_v34 = vld [vmem:[#allocation18 + $0x5a8] sm:$0xff] }
 0x415   :  { %2286 = vmatprep.subr.mxu0 %v2011_v29  ;;  %2352 = vmatpush1.msra.mxu1 %v2080_v35  ;;  %v2114_v29 = vld [vmem:[#allocation18 + $0x7d0] sm:$0xff]  ;;  %v2044_v35 = vld [vmem:[#allocation18 + $0x5a0] sm:$0xff] }
 0x416   :  { %2287 = vmatpush1.msra.mxu0 %v2010_v30  ;;  %2353 = vmatprep.subr.mxu1 %v2079_v31  ;;  %v2113_v30 = vld [vmem:[#allocation18 + $0x7c8] sm:$0xff]  ;;  %v2043_v31 = vld [vmem:[#allocation18 + $0x598] sm:$0xff] }
 0x417   :  { %2288 = vmatprep.subr.mxu0 %v2009_v32  ;;  %2354 = vmatpush1.msra.mxu1 %v2078_v33  ;;  %v2112_v32 = vld [vmem:[#allocation18 + $0x7c0] sm:$0xff]  ;;  %v2042_v33 = vld [vmem:[#allocation18 + $0x590] sm:$0xff] }
 0x418   :  { %2289 = vmatpush1.msra.mxu0 %v2008_v36  ;;  %2355 = vmatprep.subr.mxu1 %v2077_v37  ;;  %v2111_v36 = vld [vmem:[#allocation18 + $0x7b8] sm:$0xff]  ;;  %v2041_v37 = vld [vmem:[#allocation18 + $0x588] sm:$0xff] }
 0x419   :  { %2290 = vmatprep.subr.mxu0 %v2007_v40  ;;  %2356 = vmatpush1.msra.mxu1 %v2076_v41  ;;  %v2110_v40 = vld [vmem:[#allocation18 + $0x7b0] sm:$0xff]  ;;  %v2040_v41 = vld [vmem:[#allocation18 + $0x580] sm:$0xff] }
 0x41a   :  { %2291 = vmatpush1.msra.mxu0 %v2006_v42  ;;  %2357 = vmatprep.subr.mxu1 %v2075_v43  ;;  %v2109_v42 = vld [vmem:[#allocation18 + $0x7a8] sm:$0xff]  ;;  %v2039_v43 = vld [vmem:[#allocation18 + $0x578] sm:$0xff] }
 0x41b   :  { %2292 = vmatprep.subr.mxu0 %v2005_v44  ;;  %2358 = vmatpush1.msra.mxu1 %v2074_v27  ;;  %v2108_v44 = vld [vmem:[#allocation18 + $0x7a0] sm:$0xff]  ;;  %v2038_v27 = vld [vmem:[#allocation18 + $0x570] sm:$0xff] }
 0x41c   :  { %2293 = vmatpush1.msra.mxu0 %v2004_v45  ;;  %2359 = vmatprep.subr.mxu1 %v2073_v46  ;;  %v2107_v45 = vld [vmem:[#allocation18 + $0x798] sm:$0xff]  ;;  %v2037_v46 = vld [vmem:[#allocation18 + $0x568] sm:$0xff] }
 0x41d   :  { %2294 = vmatprep.subr.mxu0 %v2003_v47  ;;  %2360 = vmatpush1.msra.mxu1 %v2072_v48  ;;  %v2106_v47 = vld [vmem:[#allocation18 + $0x790] sm:$0xff]  ;;  %v2036_v48 = vld [vmem:[#allocation18 + $0x560] sm:$0xff] }
 0x41e   :  { %2295 = vmatpush1.msra.mxu0 %v2002_v38  ;;  %2361 = vmatprep.subr.mxu1 %v2071_v49  ;;  %v2105_v38 = vld [vmem:[#allocation18 + $0x788] sm:$0xff]  ;;  %v2035_v49 = vld [vmem:[#allocation18 + $0x558] sm:$0xff] }
 0x41f   :  { %2296 = vmatprep.subr.mxu0 %v2001_v39  ;;  %2362 = vmatpush1.msra.mxu1 %v2070_v28  ;;  %v2104_v39 = vld [vmem:[#allocation18 + $0x780] sm:$0xff]  ;;  %v2034_v28 = vld [vmem:[#allocation18 + $0x550] sm:$0xff] }
 0x420   :  { %2297 = vmatpush1.msra.mxu0 %v2000_v50  ;;  %2363 = vmatprep.subr.mxu1 %v2069_v51  ;;  %v2103_v50 = vld [vmem:[#allocation18 + $0x778] sm:$0xff]  ;;  %v2033_v51 = vld [vmem:[#allocation18 + $0x548] sm:$0xff] }
 0x421   :  { %2298 = vmatprep.subr.mxu0 %v1999_v52  ;;  %2364 = vmatpush1.msra.mxu1 %v2068_v53  ;;  %v2102_v52 = vld [vmem:[#allocation18 + $0x770] sm:$0xff]  ;;  %v2032_v53 = vld [vmem:[#allocation18 + $0x540] sm:$0xff] }
 0x422   :  { %2299 = vmatpush1.msra.mxu0 %v1998_v54  ;;  %2365 = vmatprep.subr.mxu1 %v2067_v15  ;;  %v2101_v54 = vld [vmem:[#allocation18 + $0x768] sm:$0xff]  ;;  %v1234_v15 = vsub.s32 4, %v2913_v59 }
 0x423   :  { %2300 = vmatprep.subr.mxu0 %v1997_v55  ;;  %2366 = vmatpush1.msra.mxu1 %v2066_v56  ;;  %v2031_v55 = vld [vmem:[#allocation18 + $0x538] sm:$0xff]  ;;  %v2100_v56 = vld [vmem:[#allocation18 + $0x760] sm:$0xff] }
 0x424   :  { %2301 = vmatpush1.msra.mxu0 %v1996_v57  ;;  %2367 = vmatprep.subr.mxu1 %v2065_v58  ;;  %v2030_v57 = vld [vmem:[#allocation18 + $0x530] sm:$0xff]  ;;  %v2099_v58 = vld [vmem:[#allocation18 + $0x758] sm:$0xff] }
 0x425   :  { %2302 = vmatprep.subr.mxu0 %v1995_v61  ;;  %2368 = vmatpush1.msra.mxu1 %v2064_v17  ;;  %v1238_v61 = vsub.s32 5, %v2913_v59  ;;  %v2029_v17 = vld [vmem:[#allocation18 + $0x528] sm:$0xff] }
 0x426   :  { %2303 = vmatpush1.msra.mxu0 %v1994_v21  ;;  %2369 = vmatprep.subr.mxu1 %v2063_v63  ;;  %v2098_v21 = vld [vmem:[#allocation18 + $0x750] sm:$0xff]  ;;  %v2028_v63 = vld [vmem:[#allocation18 + $0x520] sm:$0xff] }
 0x427   :  { %2304 = vmatprep.subr.mxu0 %v1993_v0  ;;  %2370 = vmatpush1.msra.mxu1 %v2062_v1  ;;  %v2097_v0 = vld [vmem:[#allocation18 + $0x748] sm:$0xff]  ;;  %v2519_v1 = vld [vmem:[#allocation17] sm:$0xff] }
 0x428   :  { %2305 = vmatpush1.msra.mxu0 %v1992_v2  ;;  %2371 = vmatprep.subr.mxu1 %v2061_v3  ;;  %v1235_v2 = vrot.slane %v2519_v1, %v1234_v15  ;;  %v2027_v3 = vld [vmem:[#allocation18 + $0x518] sm:$0xff] }
 0x429   :  { %2306 = vmatprep.subr.mxu0 %v2055_v4  ;;  %2372 = vmatpush1.msra.mxu1 %v2060_v5  ;;  %v2096_v4 = vld [vmem:[#allocation18 + $0x740] sm:$0xff]  ;;  %v2026_v5 = vld [vmem:[#allocation18 + $0x510] sm:$0xff] }
 0x42a   :  { %2307 = vmatpush2.msra.mxu0 %v2054_v6  ;;  %2373 = vmatprep.subr.mxu1 %v2059_v7  ;;  %v2095_v6 = vld [vmem:[#allocation18 + $0x738] sm:$0xff]  ;;  %v1239_v7 = vrot.slane %v2519_v1, %v1238_v61 }
 0x42b   :  { %2308 = vmatprep.subr.mxu0 %v2053_v8  ;;  %2374 = vmatpush1.msra.mxu1 %v2058_v9  ;;  %v2025_v8 = vld [vmem:[#allocation18 + $0x508] sm:$0xff]  ;;  %v2094_v9 = vld [vmem:[#allocation18 + $0x730] sm:$0xff] }
 0x42c   :  { %2309 = vmatpush2.msra.mxu0 %v2052_v10  ;;  %2375 = vmatprep.subr.mxu1 %v2057_v11 }
 0x42d   :  { %2310 = vmatprep.subr.mxu0 %v2051_v12  ;;  %2376 = vmatpush1.msra.mxu1 %v2056_v13  ;;  %v2024_v12 = vld [vmem:[#allocation18 + $0x500] sm:$0xff]  ;;  %v2093_v13 = vld [vmem:[#allocation18 + $0x728] sm:$0xff] }
 0x42e   :  { %2311 = vmatpush2.msra.mxu0 %v2050_v14  ;;  %2377 = vmatprep.subr.mxu1 %v2119_v16  ;;  %v2092_v16 = vld [vmem:[#allocation18 + $0x720] sm:$0xff] }
 0x42f   :  { %2312 = vmatprep.subr.mxu0 %v2049_v18  ;;  %2378 = vmatpush2.msra.mxu1 %v2118_v19  ;;  %v2091_v19 = vld [vmem:[#allocation18 + $0x718] sm:$0xff] }
 0x430   :  { %2313 = vmatpush2.msra.mxu0 %v2048_v20  ;;  %2379 = vmatprep.subr.mxu1 %v2117_v22 }
 0x431   :  { %2314 = vmatprep.subr.mxu0 %v2047_v23  ;;  %2380 = vmatpush2.msra.mxu1 %v2116_v24  ;;  %v2090_v23 = vld [vmem:[#allocation18 + $0x710] sm:$0xff] }
 0x432   :  { %2315 = vmatpush2.msra.mxu0 %v2046_v25  ;;  %2381 = vmatprep.subr.mxu1 %v2115_v26  ;;  %v2089_v25 = vld [vmem:[#allocation18 + $0x708] sm:$0xff] }
 0x433   :  { %2316 = vmatprep.subr.mxu0 %v2045_v34  ;;  %2382 = vmatpush2.msra.mxu1 %v2114_v29  ;;  %v2088_v34 = vld [vmem:[#allocation18 + $0x700] sm:$0xff] }
 0x434   :  { %2317 = vmatpush2.msra.mxu0 %v2044_v35  ;;  %2383 = vmatprep.subr.mxu1 %v2113_v30 }
 0x435   :  { %2318 = vmatprep.subr.mxu0 %v2043_v31  ;;  %2384 = vmatpush2.msra.mxu1 %v2112_v32  ;;  %v1242_v32 = vsub.s32 6, %v2913_v59 }
 0x436   :  { %2319 = vmatpush2.msra.mxu0 %v2042_v33  ;;  %2385 = vmatprep.subr.mxu1 %v2111_v36  ;;  %v1246_v33 = vsub.s32 7, %v2913_v59 }
 0x437   :  { %2320 = vmatprep.subr.mxu0 %v2041_v37  ;;  %2386 = vmatpush2.msra.mxu1 %v2110_v40  ;;  %v1243_v36 = vrot.slane %v2519_v1, %v1242_v32 }
 0x438   :  { %2321 = vmatpush2.msra.mxu0 %v2040_v41  ;;  %2387 = vmatprep.subr.mxu1 %v2109_v42  ;;  %v1247_v37 = vrot.slane %v2519_v1, %v1246_v33 }
 0x439   :  { %2322 = vmatprep.subr.mxu0 %v2039_v43  ;;  %2388 = vmatpush2.msra.mxu1 %v2108_v44 }
 0x43a   :  { %2323 = vmatpush2.msra.mxu0 %v2038_v27  ;;  %2389 = vmatprep.subr.mxu1 %v2107_v45 }
 0x43b   :  { %2324 = vmatprep.subr.mxu0 %v2037_v46  ;;  %2390 = vmatpush2.msra.mxu1 %v2106_v47 }
 0x43c   :  { %2325 = vmatpush2.msra.mxu0 %v2036_v48  ;;  %2391 = vmatprep.subr.mxu1 %v2105_v38 }
 0x43d   :  { %2326 = vmatprep.subr.mxu0 %v2035_v49  ;;  %2392 = vmatpush2.msra.mxu1 %v2104_v39  ;;  %v2120_v39 = vld [vmem:[#allocation20] sm:$0x3] }
 0x43e   :  { %2327 = vmatpush2.msra.mxu0 %v2034_v28  ;;  %2393 = vmatprep.subr.mxu1 %v2103_v50  ;;  %v2125_v28 = vrot.slane %v2120_v39, %v2916_v60 }
 0x43f   :  { %2328 = vmatprep.subr.mxu0 %v2033_v51  ;;  %2394 = vmatpush2.msra.mxu1 %v2102_v52  ;;  %v2129_v52 = vrot.slane %v2120_v39, %v2919_v62 }
 0x440   :  { %2329 = vmatpush2.msra.mxu0 %v2032_v53  ;;  %2395 = vmatprep.subr.mxu1 %v2101_v54 }
 0x441   :  { %2330 = vmatprep.subr.mxu0 %v2031_v55  ;;  %2396 = vmatpush2.msra.mxu1 %v2100_v56 }
 0x442   :  { %2331 = vmatpush2.msra.mxu0 %v2030_v57  ;;  %2397 = vmatprep.subr.mxu1 %v2099_v58 }
 0x443   :  { %2332 = vmatprep.subr.mxu0 %v2029_v17  ;;  %2398 = vmatpush2.msra.mxu1 %v2098_v21 }
 0x444   :  { %2333 = vmatpush2.msra.mxu0 %v2028_v63  ;;  %2399 = vmatprep.subr.mxu1 %v2097_v0 }
 0x445   :  { %v1606_v10 = vpop.f32.mrf.mxu0  ;;  %v1677_v11 = vpop.f32.mrf.mxu1  ;;  %2334 = vmatprep.subr.mxu0 %v2027_v3  ;;  %2400 = vmatpush2.msra.mxu1 %v2096_v4 }
 0x446   :  { %v1607_v14 = vadd.f32 %v1606_v10, %v1235_v2  ;;  %2335 = vmatpush2.msra.mxu0 %v2026_v5  ;;  %2401 = vmatprep.subr.mxu1 %v2095_v6 }
 0x447   :  { %v1608_v18 = vpop.f32.mrf.mxu0  ;;  %2336 = vmatprep.subr.mxu0 %v2025_v8  ;;  %2402 = vmatpush2.msra.mxu1 %v2094_v9  ;;  %v1679_v24 = vpop.f32.mrf.mxu1 }
 0x448   :  { %v1678_v20 = vadd.f32 %v1677_v11, %v1607_v14  ;;  %v1609_v22 = vadd.f32 %v1608_v18, %v1239_v7  ;;  %2337 = vmatpush2.msra.mxu0 %v2024_v12  ;;  %2403 = vmatprep.subr.mxu1 %v2093_v13 }
 0x449   :  { %2404 = vmatpush2.msra.mxu1 %v2092_v16 }
 0x44a   :  { %v1680_v26 = vadd.f32 %v1679_v24, %v1609_v22  ;;  %2405 = vmatprep.subr.mxu1 %v2091_v19  ;;  %v1836_v29 = vmul.f32 0.2, %v1678_v20  ;;  %vm1828_vm12 = vcmp.gt.f32.partialorder %v1678_v20, 0.0 }
 0x44b   :  { %2406 = vmatpush2.msra.mxu1 %v2090_v23 }
 0x44c   :  { %v1837_v35 = vmul.f32 0.2, %v1680_v26  ;;  %vm1829_vm13 = vcmp.gt.f32.partialorder %v1680_v26, 0.0  ;;  %2407 = vmatprep.subr.mxu1 %v2089_v25  ;;  %v1844_v31 = vsel %vm1828_vm12, %v1678_v20, %v1836_v29 }
 0x44d   :  { %2408 = vmatpush2.msra.mxu1 %v2088_v34 }
 0x44e   :  { %v1845_v30 = vsel %vm1829_vm13, %v1680_v26, %v1837_v35 }
 0x44f   :  { %2338 = vmatprep.mubr.f32.mxu0 %v1845_v30 }
 0x450   :  { %2339 = vmatmul.mubr.f32.vlgmr.msra.gmra.mxu0 %v1844_v31 }
 0x487   :  { %v1748_v40 = vpop.f32.mrf.mxu0  ;;  %v1819_v41 = vpop.f32.mrf.mxu1 }
 0x488   :  { %v1749_v42 = vadd.f32 %v1748_v40, %v1243_v36 }
 0x489   :  { %v1750_v43 = vpop.f32.mrf.mxu0  ;;  %v1821_v45 = vpop.f32.mrf.mxu1 }
 0x48a   :  { %v1820_v44 = vadd.f32 %v1819_v41, %v1749_v42  ;;  %v1751_v27 = vadd.f32 %v1750_v43, %v1247_v37 }
 0x48c   :  { %v1822_v46 = vadd.f32 %v1821_v45, %v1751_v27  ;;  %v1838_v47 = vmul.f32 0.2, %v1820_v44  ;;  %vm1830_vm14 = vcmp.gt.f32.partialorder %v1820_v44, 0.0 }
 0x48e   :  { %v1839_v48 = vmul.f32 0.2, %v1822_v46  ;;  %vm1831_vm15 = vcmp.gt.f32.partialorder %v1822_v46, 0.0  ;;  %v1846_v49 = vsel %vm1830_vm14, %v1820_v44, %v1838_v47 }
 0x490   :  { %v1847_v38 = vsel %vm1831_vm15, %v1822_v46, %v1839_v48 }
 0x491   :  { %2409 = vmatprep.mubr.f32.mxu1 %v1847_v38 }
 0x492   :  { %2410 = vmatmul.mubr.f32.vlgmr.msra.gmra.mxu1 %v1846_v49 }
 0x4c8   :  { %v2198_v59 = vpop.f32.mrf.mxu0 }
 0x4c9   :  { %v2199_v54 = vadd.f32 %v2198_v59, %v2125_v28 }
 0x4ca   :  { %v2200_v50 = vpop.f32.mrf.mxu0 }
 0x4cb   :  { %v2201_v55 = vadd.f32 %v2200_v50, %v2129_v52 }
 0x4ce   :  { %v2269_v51 = vpop.f32.mrf.mxu1 }
 0x4cf   :  { %v2270_v56 = vadd.f32 %v2269_v51, %v2199_v54 }
 0x4d0   :  { %v2271_v15 = vpop.f32.mrf.mxu1 }
 0x4d1   :  { %v2272_v58 = vadd.f32 %v2271_v15, %v2201_v55 }
 0x510   :  { %v2340_v53 = vpop.f32.mrf.mxu0 }
 0x511   :  { %v2341_v61 = vadd.f32 %v2340_v53, %v2270_v56 }
 0x512   :  { %v2342_v57 = vpop.f32.mrf.mxu0 }
 0x513   :  { %v2343_v21 = vadd.f32 %v2342_v57, %v2272_v58 }
 0x552   :  { %v2411_v17 = vpop.f32.mrf.mxu1 }
 0x553   :  { %v2412_v63 = vadd.f32 %v2411_v17, %v2341_v61 }
 0x554   :  { %v2413_v0 = vpop.f32.mrf.mxu1 }
 0x555   :  { %2515 = vtanh.f32 %v2412_v63  ;;  %v2414_v1 = vadd.f32 %v2413_v0, %v2343_v21 }
 0x557   :  { %2517 = vtanh.f32 %v2414_v1 }
 0x562   :  { %v2516_v60 = vpop.eup %2515 }
 0x563   :  { %2418 = vst [vmem:[#allocation21] sm:$0xff] %v2516_v60 }
 0x564   :  { %v2518_v62 = vpop.eup %2517 }
 0x565   :  { %2419 = vst [vmem:[#allocation21 + $0x8] sm:$0xff] %v2518_v62 }
 0x566   :  { %2751 = shalt.err (!%p2748_p3)
}
 0x567   :  { %2429 = dma.vmem_to_hbm [thread:$0]  %s2427_s10, 256, %s2994_s11, [#allocation5]  }
 0x568   :  { %2772 = dma.done.wait [#allocation5], 256  }
 0x569   :  { %2773 = vsyncadd [#allocation5], 4294967040 }
 0x56a   :  { %2433 = vsyncpa [#allocation4], 1 }
 0x56b   :  { %2434 = vsyncpa [#allocation7], 1 }
 0x56c   :  { %2435 = vsyncpa [#allocation10], 1 }
 0x56d   :  { %2436 = vsyncpa [#allocation13], 1 }
 0x56e   :  { %2437 = vsyncpa [#allocation16], 1 }
 0x56f   :  { %2438 = vsyncpa [#allocation19], 1 }
 0x570   :  { %2439 = vsyncpa [#allocation5], 1 }

</bundles_post_ra>
